<compile_context>
chip_gen: v7x
topology: tpu7x:2x2x1
jax: 0.10.0
libtpu: 0.0.40
codegen_flags: <defaults>
</compile_context>

<pallas_src>
import jax
import jax.numpy as jnp
from jax.experimental import pallas as pl
from jax.experimental.pallas import tpu as pltpu


# ----------------------------------------------------------------------------
# Kernel 1: conv1 + ReLU + conv2 + ReLU + 2x2 max-pool (one image per step)
# ----------------------------------------------------------------------------

def _conv_stack_kernel(x_ref, w1_ref, b1_ref, w2_ref, b2_ref, o_ref,
                       h1_ref, row_ref):
    # x_ref : (32, 32, 3)   bf16  one NHWC image
    # w1_ref: (9, 3, 32)    bf16  conv1 taps (kh*3+kw, IC, OC)
    # b1_ref: (1, 32)       f32
    # w2_ref: (9, 32, 64)   bf16  conv2 taps
    # b2_ref: (1, 64)       f32
    # o_ref : (14, 14, 64)  bf16  pooled output (HWC order)
    # h1_ref: (30, 30, 32)  bf16  VMEM scratch: conv1 activation
    # row_ref: (28, 64)     f32   VMEM scratch for horizontal pooling
    b1 = b1_ref[...]
    b2 = b2_ref[...]

    # ---- conv1 (valid, stride 1) + ReLU, row by row, im2col in registers ----
    @pl.loop(0, 30)
    def _(oh):
        acc = jnp.zeros((30, 32), jnp.float32)
        for di in range(3):
            xrow = x_ref[oh + di]                       # (32, 3) bf16
            for dj in range(3):
                acc += jnp.dot(xrow[dj:dj + 30, :], w1_ref[3 * di + dj],
                               preferred_element_type=jnp.float32)
        h1_ref[oh] = jnp.maximum(acc + b1, 0.0).astype(h1_ref.dtype)

    # ---- conv2 + ReLU + 2x2 max-pool, one pooled output row per iteration --
    def conv2_row(oh):
        acc = jnp.zeros((28, 64), jnp.float32)
        for di in range(3):
            hrow = h1_ref[oh + di]                      # (30, 32) bf16
            for dj in range(3):
                acc += jnp.dot(hrow[dj:dj + 28, :], w2_ref[3 * di + dj],
                               preferred_element_type=jnp.float32)
        return jnp.maximum(acc + b2, 0.0)               # (28, 64) f32

    @pl.loop(0, 14)
    def _(p):
        # vertical pool: max of the two conv rows feeding pooled row p
        m = jnp.maximum(conv2_row(2 * p), conv2_row(2 * p + 1))   # (28, 64)
        row_ref[...] = m
        # horizontal pool via stride-2 sublane reads of the scratch
        even = row_ref[pl.ds(0, 14, 2), :]
        odd = row_ref[pl.ds(1, 14, 2), :]
        o_ref[p] = jnp.maximum(even, odd).astype(o_ref.dtype)     # (14, 64)


def _conv_stack(x_nhwc, w1, b1, w2, b2):
    n = x_nhwc.shape[0]
    return pl.pallas_call(
        _conv_stack_kernel,
        out_shape=jax.ShapeDtypeStruct((n, 14, 14, 64), jnp.bfloat16),
        grid_spec=pltpu.PrefetchScalarGridSpec(
            num_scalar_prefetch=0,
            grid=(n,),
            in_specs=[
                pl.BlockSpec((None, 32, 32, 3), lambda i: (i, 0, 0, 0)),
                pl.BlockSpec((9, 3, 32), lambda i: (0, 0, 0)),
                pl.BlockSpec((1, 32), lambda i: (0, 0)),
                pl.BlockSpec((9, 32, 64), lambda i: (0, 0, 0)),
                pl.BlockSpec((1, 64), lambda i: (0, 0)),
            ],
            out_specs=pl.BlockSpec((None, 14, 14, 64), lambda i: (i, 0, 0, 0)),
            scratch_shapes=[
                pltpu.VMEM((30, 30, 32), jnp.bfloat16),   # conv1 activation
                pltpu.VMEM((28, 64), jnp.float32),        # pooling staging row
            ],
        ),
        compiler_params=pltpu.CompilerParams(
            dimension_semantics=("parallel",),
            vmem_limit_bytes=32 * 1024 * 1024,
        ),
    )(x_nhwc, w1, b1, w2, b2)


# ----------------------------------------------------------------------------
# Kernel 2: fc1 + ReLU + fc2 + log_softmax (row-tiled)
# ----------------------------------------------------------------------------

def _fc_head_kernel(x_ref, w1_ref, b1_ref, w2_ref, b2_ref, o_ref):
    h = jnp.dot(x_ref[...], w1_ref[...], preferred_element_type=jnp.float32)
    h = jnp.maximum(h + b1_ref[...], 0.0)                         # (TM, 128) f32
    logits = jnp.dot(h.astype(jnp.bfloat16), w2_ref[...],
                     preferred_element_type=jnp.float32) + b2_ref[...]
    m = jnp.max(logits, axis=-1, keepdims=True)
    s = logits - m
    lse = jnp.log(jnp.sum(jnp.exp(s), axis=-1, keepdims=True))
    o_ref[...] = (s - lse).astype(o_ref.dtype)


def _fc_head(flat, fc1_w, fc1_b, fc2_w, fc2_b):
    m, k = flat.shape
    hidden = fc1_w.shape[1]
    ncls = fc2_w.shape[1]
    tm = m if m <= 128 else 128
    return pl.pallas_call(
        _fc_head_kernel,
        out_shape=jax.ShapeDtypeStruct((m, ncls), jnp.float32),
        grid_spec=pltpu.PrefetchScalarGridSpec(
            num_scalar_prefetch=0,
            grid=(pl.cdiv(m, tm),),
            in_specs=[
                pl.BlockSpec((tm, k), lambda i: (i, 0)),
                pl.BlockSpec((k, hidden), lambda i: (0, 0)),
                pl.BlockSpec((1, hidden), lambda i: (0, 0)),
                pl.BlockSpec((hidden, ncls), lambda i: (0, 0)),
                pl.BlockSpec((1, ncls), lambda i: (0, 0)),
            ],
            out_specs=pl.BlockSpec((tm, ncls), lambda i: (i, 0)),
        ),
        compiler_params=pltpu.CompilerParams(
            dimension_semantics=("parallel",),
            vmem_limit_bytes=32 * 1024 * 1024,
        ),
    )(flat, fc1_w, fc1_b, fc2_w, fc2_b)


# ----------------------------------------------------------------------------
# Parameters (PyTorch layouts) and one-time kernel-layout preparation
# ----------------------------------------------------------------------------

def init_params(key):
    ks = jax.random.split(key, 8)

    def u(k, shape, fan_in):
        bound = 1.0 / jnp.sqrt(fan_in)
        return jax.random.uniform(k, shape, jnp.float32, -bound, bound)

    return {
        "conv1_w": u(ks[0], (32, 3, 3, 3), 3 * 3 * 3),
        "conv1_b": u(ks[1], (32,), 3 * 3 * 3),
        "conv2_w": u(ks[2], (64, 32, 3, 3), 32 * 3 * 3),
        "conv2_b": u(ks[3], (64,), 32 * 3 * 3),
        "fc1_w": u(ks[4], (128, 64 * 14 * 14), 64 * 14 * 14),
        "fc1_b": u(ks[5], (128,), 64 * 14 * 14),
        "fc2_w": u(ks[6], (10, 128), 128),
        "fc2_b": u(ks[7], (10,), 128),
    }


def prepare_params(params):
    """One-time re-layout: conv taps, bf16 casts, flatten folded into fc1."""
    w1 = jnp.transpose(params["conv1_w"], (2, 3, 1, 0)).reshape(9, 3, 32)
    w2 = jnp.transpose(params["conv2_w"], (2, 3, 1, 0)).reshape(9, 32, 64)
    # fc1: PyTorch flatten order is (C,H,W); our activation is (H,W,C).
    fc1 = params["fc1_w"].reshape(128, 64, 14, 14)
    fc1 = jnp.transpose(fc1, (2, 3, 1, 0)).reshape(14 * 14 * 64, 128)
    return {
        "w1": w1.astype(jnp.bfloat16),
        "b1": params["conv1_b"].reshape(1, 32).astype(jnp.float32),
        "w2": w2.astype(jnp.bfloat16),
        "b2": params["conv2_b"].reshape(1, 64).astype(jnp.float32),
        "fc1_w": fc1.astype(jnp.bfloat16),
        "fc1_b": params["fc1_b"].reshape(1, 128).astype(jnp.float32),
        "fc2_w": params["fc2_w"].T.astype(jnp.bfloat16),
        "fc2_b": params["fc2_b"].reshape(1, 10).astype(jnp.float32),
    }


def svhn_net_forward(prep, x_nchw):
    """Forward pass equivalent to SVHNNet.forward (eval mode)."""
    n = x_nchw.shape[0]
    x = jnp.transpose(x_nchw, (0, 2, 3, 1)).astype(jnp.bfloat16)   # NHWC bf16
    pooled = _conv_stack(x, prep["w1"], prep["b1"], prep["w2"], prep["b2"])
    flat = pooled.reshape(n, 14 * 14 * 64)                         # (N, 12544)
    return _fc_head(flat, prep["fc1_w"], prep["fc1_b"],
                    prep["fc2_w"], prep["fc2_b"])                  # (N, 10)


# ----------------------------------------------------------------------------
# Plain-JAX reference (f32) for a correctness sanity check
# ----------------------------------------------------------------------------

def reference_forward(params, x):
    dn = ("NCHW", "OIHW", "NCHW")
    h = jax.lax.conv_general_dilated(x, params["conv1_w"], (1, 1), "VALID",
                                     dimension_numbers=dn)
    h = jax.nn.relu(h + params["conv1_b"][None, :, None, None])
    h = jax.lax.conv_general_dilated(h, params["conv2_w"], (1, 1), "VALID",
                                     dimension_numbers=dn)
    h = jax.nn.relu(h + params["conv2_b"][None, :, None, None])
    n = h.shape[0]
    h = h.reshape(n, 64, 14, 2, 14, 2).max(axis=(3, 5))
    h = h.reshape(n, 64 * 14 * 14)
    h = jax.nn.relu(h @ params["fc1_w"].T + params["fc1_b"])
    logits = h @ params["fc2_w"].T + params["fc2_b"]
    return jax.nn.log_softmax(logits, axis=-1)


if __name__ == "__main__":
    key = jax.random.PRNGKey(0)
    pkey, xkey = jax.random.split(key)
    params = init_params(pkey)
    prep = prepare_params(params)

    # SVHN-style input, NCHW [2, 3, 32, 32] (32x32 required by fc1's 64*14*14)
    x = jax.random.normal(xkey, (2, 3, 32, 32), dtype=jnp.float32)

    fwd = jax.jit(svhn_net_forward)
    out = jax.block_until_ready(fwd(prep, x))

    assert out.shape == (2, 10)
    # log_softmax rows must exponentiate-sum to ~1
    assert jnp.allclose(jnp.exp(out).sum(axis=1), 1.0, atol=1e-4)
    # compare against the f32 XLA reference (loose tol for bf16 matmuls)
    ref = reference_forward(params, x)
    err = float(jnp.max(jnp.abs(out - ref)))
    assert err < 5e-2, f"mismatch vs reference: {err}"
    print("KERNEL_OK")
</pallas_src>

<mosaic_0001>
module attributes {stable_mosaic.version = 11 : i64} {
  func.func @_conv_stack_kernel(%arg0: i32, %arg1: memref<1x32x32x3xbf16, #tpu.memory_space<vmem>>, %arg2: memref<9x3x32xbf16, #tpu.memory_space<vmem>>, %arg3: memref<1x32xf32, #tpu.memory_space<vmem>>, %arg4: memref<9x32x64xbf16, #tpu.memory_space<vmem>>, %arg5: memref<1x64xf32, #tpu.memory_space<vmem>>, %arg6: memref<1x14x14x64xbf16, #tpu.memory_space<vmem>>, %arg7: memref<30x30x32xbf16, #tpu.memory_space<vmem>>, %arg8: memref<28x64xf32, #tpu.memory_space<vmem>>) attributes {dimension_semantics = [#tpu.dimension_semantics<parallel>], iteration_bounds = array<i64: 2>, scalar_prefetch = 0 : i64, scratch_operands = 2 : i64, tpu.core_type = #tpu.core_type<tc>, window_params = [{transform_indices = @transform_0, window_bounds = array<i64: 1, 32, 32, 3>}, {pipeline_mode = #tpu.pipeline_mode<synchronous>, transform_indices = @transform_1, window_bounds = array<i64: 9, 3, 32>}, {pipeline_mode = #tpu.pipeline_mode<synchronous>, transform_indices = @transform_2, window_bounds = array<i64: 1, 32>}, {pipeline_mode = #tpu.pipeline_mode<synchronous>, transform_indices = @transform_3, window_bounds = array<i64: 9, 32, 64>}, {pipeline_mode = #tpu.pipeline_mode<synchronous>, transform_indices = @transform_4, window_bounds = array<i64: 1, 64>}, {transform_indices = @transform_5, window_bounds = array<i64: 1, 14, 14, 64>}]} {
    %c0 = arith.constant 0 : index
    %c0_0 = arith.constant 0 : index
    %0 = vector.load %arg3[%c0, %c0_0] : memref<1x32xf32, #tpu.memory_space<vmem>>, vector<1x32xf32>
    %c0_1 = arith.constant 0 : index
    %c0_2 = arith.constant 0 : index
    %1 = vector.load %arg5[%c0_1, %c0_2] : memref<1x64xf32, #tpu.memory_space<vmem>>, vector<1x64xf32>
    %c0_i32 = arith.constant 0 : i32
    %c30_i32 = arith.constant 30 : i32
    %2 = arith.addi %c0_i32, %c30_i32 : i32
    %c1_i32 = arith.constant 1 : i32
    scf.for %arg9 = %c0_i32 to %2 step %c1_i32  : i32 {
      %c1_i32_7 = arith.constant 1 : i32
      %4 = arith.muli %arg9, %c1_i32_7 : i32
      %c0_i32_8 = arith.constant 0 : i32
      %5 = arith.addi %c0_i32_8, %4 : i32
      %cst = arith.constant 0.000000e+00 : f32
      %6 = vector.broadcast %cst : f32 to vector<30x32xf32>
      %c0_i32_9 = arith.constant 0 : i32
      %7 = arith.addi %5, %c0_i32_9 : i32
      %c0_10 = arith.constant 0 : index
      %8 = arith.index_cast %7 : i32 to index
      %c0_11 = arith.constant 0 : index
      %c0_12 = arith.constant 0 : index
      %9 = vector.load %arg1[%c0_10, %8, %c0_11, %c0_12] : memref<1x32x32x3xbf16, #tpu.memory_space<vmem>>, vector<1x1x32x3xbf16>
      %10 = vector.shape_cast %9 : vector<1x1x32x3xbf16> to vector<32x3xbf16>
      %11 = vector.extract_strided_slice %10 {offsets = [0, 0], sizes = [30, 3], strides = [1, 1]} : vector<32x3xbf16> to vector<30x3xbf16>
      %c0_13 = arith.constant 0 : index
      %c0_14 = arith.constant 0 : index
      %c0_15 = arith.constant 0 : index
      %12 = vector.load %arg2[%c0_13, %c0_14, %c0_15] : memref<9x3x32xbf16, #tpu.memory_space<vmem>>, vector<1x3x32xbf16>
      %13 = vector.shape_cast %12 : vector<1x3x32xbf16> to vector<3x32xbf16>
      %cst_16 = arith.constant dense<0.000000e+00> : vector<30x32xf32>
      %14 = tpu.matmul %11, %13, %cst_16 {dimension_numbers = #tpu.dot_dimension_numbers<[1], [0], [0], [1], [0, 0, 1, 1], [], []>} : vector<30x3xbf16>, vector<3x32xbf16>, vector<30x32xf32> -> vector<30x32xf32>
      %15 = arith.addf %6, %14 : vector<30x32xf32>
      %16 = vector.extract_strided_slice %10 {offsets = [1, 0], sizes = [30, 3], strides = [1, 1]} : vector<32x3xbf16> to vector<30x3xbf16>
      %c1 = arith.constant 1 : index
      %c0_17 = arith.constant 0 : index
      %c0_18 = arith.constant 0 : index
      %17 = vector.load %arg2[%c1, %c0_17, %c0_18] : memref<9x3x32xbf16, #tpu.memory_space<vmem>>, vector<1x3x32xbf16>
      %18 = vector.shape_cast %17 : vector<1x3x32xbf16> to vector<3x32xbf16>
      %cst_19 = arith.constant dense<0.000000e+00> : vector<30x32xf32>
      %19 = tpu.matmul %16, %18, %cst_19 {dimension_numbers = #tpu.dot_dimension_numbers<[1], [0], [0], [1], [0, 0, 1, 1], [], []>} : vector<30x3xbf16>, vector<3x32xbf16>, vector<30x32xf32> -> vector<30x32xf32>
      %20 = arith.addf %15, %19 : vector<30x32xf32>
      %21 = vector.extract_strided_slice %10 {offsets = [2, 0], sizes = [30, 3], strides = [1, 1]} : vector<32x3xbf16> to vector<30x3xbf16>
      %c2 = arith.constant 2 : index
      %c0_20 = arith.constant 0 : index
      %c0_21 = arith.constant 0 : index
      %22 = vector.load %arg2[%c2, %c0_20, %c0_21] : memref<9x3x32xbf16, #tpu.memory_space<vmem>>, vector<1x3x32xbf16>
      %23 = vector.shape_cast %22 : vector<1x3x32xbf16> to vector<3x32xbf16>
      %cst_22 = arith.constant dense<0.000000e+00> : vector<30x32xf32>
      %24 = tpu.matmul %21, %23, %cst_22 {dimension_numbers = #tpu.dot_dimension_numbers<[1], [0], [0], [1], [0, 0, 1, 1], [], []>} : vector<30x3xbf16>, vector<3x32xbf16>, vector<30x32xf32> -> vector<30x32xf32>
      %25 = arith.addf %20, %24 : vector<30x32xf32>
      %c1_i32_23 = arith.constant 1 : i32
      %26 = arith.addi %5, %c1_i32_23 : i32
      %c0_24 = arith.constant 0 : index
      %27 = arith.index_cast %26 : i32 to index
      %c0_25 = arith.constant 0 : index
      %c0_26 = arith.constant 0 : index
      %28 = vector.load %arg1[%c0_24, %27, %c0_25, %c0_26] : memref<1x32x32x3xbf16, #tpu.memory_space<vmem>>, vector<1x1x32x3xbf16>
      %29 = vector.shape_cast %28 : vector<1x1x32x3xbf16> to vector<32x3xbf16>
      %30 = vector.extract_strided_slice %29 {offsets = [0, 0], sizes = [30, 3], strides = [1, 1]} : vector<32x3xbf16> to vector<30x3xbf16>
      %c3 = arith.constant 3 : index
      %c0_27 = arith.constant 0 : index
      %c0_28 = arith.constant 0 : index
      %31 = vector.load %arg2[%c3, %c0_27, %c0_28] : memref<9x3x32xbf16, #tpu.memory_space<vmem>>, vector<1x3x32xbf16>
      %32 = vector.shape_cast %31 : vector<1x3x32xbf16> to vector<3x32xbf16>
      %cst_29 = arith.constant dense<0.000000e+00> : vector<30x32xf32>
      %33 = tpu.matmul %30, %32, %cst_29 {dimension_numbers = #tpu.dot_dimension_numbers<[1], [0], [0], [1], [0, 0, 1, 1], [], []>} : vector<30x3xbf16>, vector<3x32xbf16>, vector<30x32xf32> -> vector<30x32xf32>
      %34 = arith.addf %25, %33 : vector<30x32xf32>
      %35 = vector.extract_strided_slice %29 {offsets = [1, 0], sizes = [30, 3], strides = [1, 1]} : vector<32x3xbf16> to vector<30x3xbf16>
      %c4 = arith.constant 4 : index
      %c0_30 = arith.constant 0 : index
      %c0_31 = arith.constant 0 : index
      %36 = vector.load %arg2[%c4, %c0_30, %c0_31] : memref<9x3x32xbf16, #tpu.memory_space<vmem>>, vector<1x3x32xbf16>
      %37 = vector.shape_cast %36 : vector<1x3x32xbf16> to vector<3x32xbf16>
      %cst_32 = arith.constant dense<0.000000e+00> : vector<30x32xf32>
      %38 = tpu.matmul %35, %37, %cst_32 {dimension_numbers = #tpu.dot_dimension_numbers<[1], [0], [0], [1], [0, 0, 1, 1], [], []>} : vector<30x3xbf16>, vector<3x32xbf16>, vector<30x32xf32> -> vector<30x32xf32>
      %39 = arith.addf %34, %38 : vector<30x32xf32>
      %40 = vector.extract_strided_slice %29 {offsets = [2, 0], sizes = [30, 3], strides = [1, 1]} : vector<32x3xbf16> to vector<30x3xbf16>
      %c5 = arith.constant 5 : index
      %c0_33 = arith.constant 0 : index
      %c0_34 = arith.constant 0 : index
      %41 = vector.load %arg2[%c5, %c0_33, %c0_34] : memref<9x3x32xbf16, #tpu.memory_space<vmem>>, vector<1x3x32xbf16>
      %42 = vector.shape_cast %41 : vector<1x3x32xbf16> to vector<3x32xbf16>
      %cst_35 = arith.constant dense<0.000000e+00> : vector<30x32xf32>
      %43 = tpu.matmul %40, %42, %cst_35 {dimension_numbers = #tpu.dot_dimension_numbers<[1], [0], [0], [1], [0, 0, 1, 1], [], []>} : vector<30x3xbf16>, vector<3x32xbf16>, vector<30x32xf32> -> vector<30x32xf32>
      %44 = arith.addf %39, %43 : vector<30x32xf32>
      %c2_i32 = arith.constant 2 : i32
      %45 = arith.addi %5, %c2_i32 : i32
      %c0_36 = arith.constant 0 : index
      %46 = arith.index_cast %45 : i32 to index
      %c0_37 = arith.constant 0 : index
      %c0_38 = arith.constant 0 : index
      %47 = vector.load %arg1[%c0_36, %46, %c0_37, %c0_38] : memref<1x32x32x3xbf16, #tpu.memory_space<vmem>>, vector<1x1x32x3xbf16>
      %48 = vector.shape_cast %47 : vector<1x1x32x3xbf16> to vector<32x3xbf16>
      %49 = vector.extract_strided_slice %48 {offsets = [0, 0], sizes = [30, 3], strides = [1, 1]} : vector<32x3xbf16> to vector<30x3xbf16>
      %c6 = arith.constant 6 : index
      %c0_39 = arith.constant 0 : index
      %c0_40 = arith.constant 0 : index
      %50 = vector.load %arg2[%c6, %c0_39, %c0_40] : memref<9x3x32xbf16, #tpu.memory_space<vmem>>, vector<1x3x32xbf16>
      %51 = vector.shape_cast %50 : vector<1x3x32xbf16> to vector<3x32xbf16>
      %cst_41 = arith.constant dense<0.000000e+00> : vector<30x32xf32>
      %52 = tpu.matmul %49, %51, %cst_41 {dimension_numbers = #tpu.dot_dimension_numbers<[1], [0], [0], [1], [0, 0, 1, 1], [], []>} : vector<30x3xbf16>, vector<3x32xbf16>, vector<30x32xf32> -> vector<30x32xf32>
      %53 = arith.addf %44, %52 : vector<30x32xf32>
      %54 = vector.extract_strided_slice %48 {offsets = [1, 0], sizes = [30, 3], strides = [1, 1]} : vector<32x3xbf16> to vector<30x3xbf16>
      %c7 = arith.constant 7 : index
      %c0_42 = arith.constant 0 : index
      %c0_43 = arith.constant 0 : index
      %55 = vector.load %arg2[%c7, %c0_42, %c0_43] : memref<9x3x32xbf16, #tpu.memory_space<vmem>>, vector<1x3x32xbf16>
      %56 = vector.shape_cast %55 : vector<1x3x32xbf16> to vector<3x32xbf16>
      %cst_44 = arith.constant dense<0.000000e+00> : vector<30x32xf32>
      %57 = tpu.matmul %54, %56, %cst_44 {dimension_numbers = #tpu.dot_dimension_numbers<[1], [0], [0], [1], [0, 0, 1, 1], [], []>} : vector<30x3xbf16>, vector<3x32xbf16>, vector<30x32xf32> -> vector<30x32xf32>
      %58 = arith.addf %53, %57 : vector<30x32xf32>
      %59 = vector.extract_strided_slice %48 {offsets = [2, 0], sizes = [30, 3], strides = [1, 1]} : vector<32x3xbf16> to vector<30x3xbf16>
      %c8 = arith.constant 8 : index
      %c0_45 = arith.constant 0 : index
      %c0_46 = arith.constant 0 : index
      %60 = vector.load %arg2[%c8, %c0_45, %c0_46] : memref<9x3x32xbf16, #tpu.memory_space<vmem>>, vector<1x3x32xbf16>
      %61 = vector.shape_cast %60 : vector<1x3x32xbf16> to vector<3x32xbf16>
      %cst_47 = arith.constant dense<0.000000e+00> : vector<30x32xf32>
      %62 = tpu.matmul %59, %61, %cst_47 {dimension_numbers = #tpu.dot_dimension_numbers<[1], [0], [0], [1], [0, 0, 1, 1], [], []>} : vector<30x3xbf16>, vector<3x32xbf16>, vector<30x32xf32> -> vector<30x32xf32>
      %63 = arith.addf %58, %62 : vector<30x32xf32>
      %64 = vector.broadcast %0 : vector<1x32xf32> to vector<30x32xf32>
      %65 = arith.addf %63, %64 : vector<30x32xf32>
      %cst_48 = arith.constant 0.000000e+00 : f32
      %66 = vector.broadcast %cst_48 : f32 to vector<30x32xf32>
      %67 = arith.maximumf %65, %66 : vector<30x32xf32>
      %68 = arith.truncf %67 : vector<30x32xf32> to vector<30x32xbf16>
      %69 = arith.index_cast %5 : i32 to index
      %c0_49 = arith.constant 0 : index
      %c0_50 = arith.constant 0 : index
      %70 = vector.load %arg7[%69, %c0_49, %c0_50] : memref<30x30x32xbf16, #tpu.memory_space<vmem>>, vector<1x30x32xbf16>
      %71 = vector.shape_cast %70 : vector<1x30x32xbf16> to vector<30x32xbf16>
      %72 = vector.shape_cast %68 : vector<30x32xbf16> to vector<1x30x32xbf16>
      tpu.vector_store %arg7[%69, %c0_49, %c0_50], %72 {strides = array<i32>} : memref<30x30x32xbf16, #tpu.memory_space<vmem>>, vector<1x30x32xbf16>,
    }
    %c30_i32_3 = arith.constant 30 : i32
    %c0_i32_4 = arith.constant 0 : i32
    %c14_i32 = arith.constant 14 : i32
    %3 = arith.addi %c0_i32_4, %c14_i32 : i32
    %c1_i32_5 = arith.constant 1 : i32
    scf.for %arg9 = %c0_i32_4 to %3 step %c1_i32_5  : i32 {
      %c1_i32_7 = arith.constant 1 : i32
      %4 = arith.muli %arg9, %c1_i32_7 : i32
      %c0_i32_8 = arith.constant 0 : i32
      %5 = arith.addi %c0_i32_8, %4 : i32
      %c2_i32 = arith.constant 2 : i32
      %6 = arith.muli %c2_i32, %5 : i32
      %cst = arith.constant 0.000000e+00 : f32
      %7 = vector.broadcast %cst : f32 to vector<28x64xf32>
      %c0_i32_9 = arith.constant 0 : i32
      %8 = arith.addi %6, %c0_i32_9 : i32
      %9 = arith.index_cast %8 : i32 to index
      %c0_10 = arith.constant 0 : index
      %c0_11 = arith.constant 0 : index
      %10 = vector.load %arg7[%9, %c0_10, %c0_11] : memref<30x30x32xbf16, #tpu.memory_space<vmem>>, vector<1x30x32xbf16>
      %11 = vector.shape_cast %10 : vector<1x30x32xbf16> to vector<30x32xbf16>
      %12 = vector.extract_strided_slice %11 {offsets = [0, 0], sizes = [28, 32], strides = [1, 1]} : vector<30x32xbf16> to vector<28x32xbf16>
      %c0_12 = arith.constant 0 : index
      %c0_13 = arith.constant 0 : index
      %c0_14 = arith.constant 0 : index
      %13 = vector.load %arg4[%c0_12, %c0_13, %c0_14] : memref<9x32x64xbf16, #tpu.memory_space<vmem>>, vector<1x32x64xbf16>
      %14 = vector.shape_cast %13 : vector<1x32x64xbf16> to vector<32x64xbf16>
      %cst_15 = arith.constant dense<0.000000e+00> : vector<28x64xf32>
      %15 = tpu.matmul %12, %14, %cst_15 {dimension_numbers = #tpu.dot_dimension_numbers<[1], [0], [0], [1], [0, 0, 1, 1], [], []>} : vector<28x32xbf16>, vector<32x64xbf16>, vector<28x64xf32> -> vector<28x64xf32>
      %16 = arith.addf %7, %15 : vector<28x64xf32>
      %17 = vector.extract_strided_slice %11 {offsets = [1, 0], sizes = [28, 32], strides = [1, 1]} : vector<30x32xbf16> to vector<28x32xbf16>
      %c1 = arith.constant 1 : index
      %c0_16 = arith.constant 0 : index
      %c0_17 = arith.constant 0 : index
      %18 = vector.load %arg4[%c1, %c0_16, %c0_17] : memref<9x32x64xbf16, #tpu.memory_space<vmem>>, vector<1x32x64xbf16>
      %19 = vector.shape_cast %18 : vector<1x32x64xbf16> to vector<32x64xbf16>
      %cst_18 = arith.constant dense<0.000000e+00> : vector<28x64xf32>
      %20 = tpu.matmul %17, %19, %cst_18 {dimension_numbers = #tpu.dot_dimension_numbers<[1], [0], [0], [1], [0, 0, 1, 1], [], []>} : vector<28x32xbf16>, vector<32x64xbf16>, vector<28x64xf32> -> vector<28x64xf32>
      %21 = arith.addf %16, %20 : vector<28x64xf32>
      %22 = vector.extract_strided_slice %11 {offsets = [2, 0], sizes = [28, 32], strides = [1, 1]} : vector<30x32xbf16> to vector<28x32xbf16>
      %c2 = arith.constant 2 : index
      %c0_19 = arith.constant 0 : index
      %c0_20 = arith.constant 0 : index
      %23 = vector.load %arg4[%c2, %c0_19, %c0_20] : memref<9x32x64xbf16, #tpu.memory_space<vmem>>, vector<1x32x64xbf16>
      %24 = vector.shape_cast %23 : vector<1x32x64xbf16> to vector<32x64xbf16>
      %cst_21 = arith.constant dense<0.000000e+00> : vector<28x64xf32>
      %25 = tpu.matmul %22, %24, %cst_21 {dimension_numbers = #tpu.dot_dimension_numbers<[1], [0], [0], [1], [0, 0, 1, 1], [], []>} : vector<28x32xbf16>, vector<32x64xbf16>, vector<28x64xf32> -> vector<28x64xf32>
      %26 = arith.addf %21, %25 : vector<28x64xf32>
      %c1_i32_22 = arith.constant 1 : i32
      %27 = arith.addi %6, %c1_i32_22 : i32
      %28 = arith.index_cast %27 : i32 to index
      %c0_23 = arith.constant 0 : index
      %c0_24 = arith.constant 0 : index
      %29 = vector.load %arg7[%28, %c0_23, %c0_24] : memref<30x30x32xbf16, #tpu.memory_space<vmem>>, vector<1x30x32xbf16>
      %30 = vector.shape_cast %29 : vector<1x30x32xbf16> to vector<30x32xbf16>
      %31 = vector.extract_strided_slice %30 {offsets = [0, 0], sizes = [28, 32], strides = [1, 1]} : vector<30x32xbf16> to vector<28x32xbf16>
      %c3 = arith.constant 3 : index
      %c0_25 = arith.constant 0 : index
      %c0_26 = arith.constant 0 : index
      %32 = vector.load %arg4[%c3, %c0_25, %c0_26] : memref<9x32x64xbf16, #tpu.memory_space<vmem>>, vector<1x32x64xbf16>
      %33 = vector.shape_cast %32 : vector<1x32x64xbf16> to vector<32x64xbf16>
      %cst_27 = arith.constant dense<0.000000e+00> : vector<28x64xf32>
      %34 = tpu.matmul %31, %33, %cst_27 {dimension_numbers = #tpu.dot_dimension_numbers<[1], [0], [0], [1], [0, 0, 1, 1], [], []>} : vector<28x32xbf16>, vector<32x64xbf16>, vector<28x64xf32> -> vector<28x64xf32>
      %35 = arith.addf %26, %34 : vector<28x64xf32>
      %36 = vector.extract_strided_slice %30 {offsets = [1, 0], sizes = [28, 32], strides = [1, 1]} : vector<30x32xbf16> to vector<28x32xbf16>
      %c4 = arith.constant 4 : index
      %c0_28 = arith.constant 0 : index
      %c0_29 = arith.constant 0 : index
      %37 = vector.load %arg4[%c4, %c0_28, %c0_29] : memref<9x32x64xbf16, #tpu.memory_space<vmem>>, vector<1x32x64xbf16>
      %38 = vector.shape_cast %37 : vector<1x32x64xbf16> to vector<32x64xbf16>
      %cst_30 = arith.constant dense<0.000000e+00> : vector<28x64xf32>
      %39 = tpu.matmul %36, %38, %cst_30 {dimension_numbers = #tpu.dot_dimension_numbers<[1], [0], [0], [1], [0, 0, 1, 1], [], []>} : vector<28x32xbf16>, vector<32x64xbf16>, vector<28x64xf32> -> vector<28x64xf32>
      %40 = arith.addf %35, %39 : vector<28x64xf32>
      %41 = vector.extract_strided_slice %30 {offsets = [2, 0], sizes = [28, 32], strides = [1, 1]} : vector<30x32xbf16> to vector<28x32xbf16>
      %c5 = arith.constant 5 : index
      %c0_31 = arith.constant 0 : index
      %c0_32 = arith.constant 0 : index
      %42 = vector.load %arg4[%c5, %c0_31, %c0_32] : memref<9x32x64xbf16, #tpu.memory_space<vmem>>, vector<1x32x64xbf16>
      %43 = vector.shape_cast %42 : vector<1x32x64xbf16> to vector<32x64xbf16>
      %cst_33 = arith.constant dense<0.000000e+00> : vector<28x64xf32>
      %44 = tpu.matmul %41, %43, %cst_33 {dimension_numbers = #tpu.dot_dimension_numbers<[1], [0], [0], [1], [0, 0, 1, 1], [], []>} : vector<28x32xbf16>, vector<32x64xbf16>, vector<28x64xf32> -> vector<28x64xf32>
      %45 = arith.addf %40, %44 : vector<28x64xf32>
      %c2_i32_34 = arith.constant 2 : i32
      %46 = arith.addi %6, %c2_i32_34 : i32
      %47 = arith.index_cast %46 : i32 to index
      %c0_35 = arith.constant 0 : index
      %c0_36 = arith.constant 0 : index
      %48 = vector.load %arg7[%47, %c0_35, %c0_36] : memref<30x30x32xbf16, #tpu.memory_space<vmem>>, vector<1x30x32xbf16>
      %49 = vector.shape_cast %48 : vector<1x30x32xbf16> to vector<30x32xbf16>
      %50 = vector.extract_strided_slice %49 {offsets = [0, 0], sizes = [28, 32], strides = [1, 1]} : vector<30x32xbf16> to vector<28x32xbf16>
      %c6 = arith.constant 6 : index
      %c0_37 = arith.constant 0 : index
      %c0_38 = arith.constant 0 : index
      %51 = vector.load %arg4[%c6, %c0_37, %c0_38] : memref<9x32x64xbf16, #tpu.memory_space<vmem>>, vector<1x32x64xbf16>
      %52 = vector.shape_cast %51 : vector<1x32x64xbf16> to vector<32x64xbf16>
      %cst_39 = arith.constant dense<0.000000e+00> : vector<28x64xf32>
      %53 = tpu.matmul %50, %52, %cst_39 {dimension_numbers = #tpu.dot_dimension_numbers<[1], [0], [0], [1], [0, 0, 1, 1], [], []>} : vector<28x32xbf16>, vector<32x64xbf16>, vector<28x64xf32> -> vector<28x64xf32>
      %54 = arith.addf %45, %53 : vector<28x64xf32>
      %55 = vector.extract_strided_slice %49 {offsets = [1, 0], sizes = [28, 32], strides = [1, 1]} : vector<30x32xbf16> to vector<28x32xbf16>
      %c7 = arith.constant 7 : index
      %c0_40 = arith.constant 0 : index
      %c0_41 = arith.constant 0 : index
      %56 = vector.load %arg4[%c7, %c0_40, %c0_41] : memref<9x32x64xbf16, #tpu.memory_space<vmem>>, vector<1x32x64xbf16>
      %57 = vector.shape_cast %56 : vector<1x32x64xbf16> to vector<32x64xbf16>
      %cst_42 = arith.constant dense<0.000000e+00> : vector<28x64xf32>
      %58 = tpu.matmul %55, %57, %cst_42 {dimension_numbers = #tpu.dot_dimension_numbers<[1], [0], [0], [1], [0, 0, 1, 1], [], []>} : vector<28x32xbf16>, vector<32x64xbf16>, vector<28x64xf32> -> vector<28x64xf32>
      %59 = arith.addf %54, %58 : vector<28x64xf32>
      %60 = vector.extract_strided_slice %49 {offsets = [2, 0], sizes = [28, 32], strides = [1, 1]} : vector<30x32xbf16> to vector<28x32xbf16>
      %c8 = arith.constant 8 : index
      %c0_43 = arith.constant 0 : index
      %c0_44 = arith.constant 0 : index
      %61 = vector.load %arg4[%c8, %c0_43, %c0_44] : memref<9x32x64xbf16, #tpu.memory_space<vmem>>, vector<1x32x64xbf16>
      %62 = vector.shape_cast %61 : vector<1x32x64xbf16> to vector<32x64xbf16>
      %cst_45 = arith.constant dense<0.000000e+00> : vector<28x64xf32>
      %63 = tpu.matmul %60, %62, %cst_45 {dimension_numbers = #tpu.dot_dimension_numbers<[1], [0], [0], [1], [0, 0, 1, 1], [], []>} : vector<28x32xbf16>, vector<32x64xbf16>, vector<28x64xf32> -> vector<28x64xf32>
      %64 = arith.addf %59, %63 : vector<28x64xf32>
      %65 = vector.broadcast %1 : vector<1x64xf32> to vector<28x64xf32>
      %66 = arith.addf %64, %65 : vector<28x64xf32>
      %cst_46 = arith.constant 0.000000e+00 : f32
      %67 = vector.broadcast %cst_46 : f32 to vector<28x64xf32>
      %68 = arith.maximumf %66, %67 : vector<28x64xf32>
      %c2_i32_47 = arith.constant 2 : i32
      %69 = arith.muli %c2_i32_47, %5 : i32
      %c1_i32_48 = arith.constant 1 : i32
      %70 = arith.addi %69, %c1_i32_48 : i32
      %cst_49 = arith.constant 0.000000e+00 : f32
      %71 = vector.broadcast %cst_49 : f32 to vector<28x64xf32>
      %c0_i32_50 = arith.constant 0 : i32
      %72 = arith.addi %70, %c0_i32_50 : i32
      %73 = arith.index_cast %72 : i32 to index
      %c0_51 = arith.constant 0 : index
      %c0_52 = arith.constant 0 : index
      %74 = vector.load %arg7[%73, %c0_51, %c0_52] : memref<30x30x32xbf16, #tpu.memory_space<vmem>>, vector<1x30x32xbf16>
      %75 = vector.shape_cast %74 : vector<1x30x32xbf16> to vector<30x32xbf16>
      %76 = vector.extract_strided_slice %75 {offsets = [0, 0], sizes = [28, 32], strides = [1, 1]} : vector<30x32xbf16> to vector<28x32xbf16>
      %c0_53 = arith.constant 0 : index
      %c0_54 = arith.constant 0 : index
      %c0_55 = arith.constant 0 : index
      %77 = vector.load %arg4[%c0_53, %c0_54, %c0_55] : memref<9x32x64xbf16, #tpu.memory_space<vmem>>, vector<1x32x64xbf16>
      %78 = vector.shape_cast %77 : vector<1x32x64xbf16> to vector<32x64xbf16>
      %cst_56 = arith.constant dense<0.000000e+00> : vector<28x64xf32>
      %79 = tpu.matmul %76, %78, %cst_56 {dimension_numbers = #tpu.dot_dimension_numbers<[1], [0], [0], [1], [0, 0, 1, 1], [], []>} : vector<28x32xbf16>, vector<32x64xbf16>, vector<28x64xf32> -> vector<28x64xf32>
      %80 = arith.addf %71, %79 : vector<28x64xf32>
      %81 = vector.extract_strided_slice %75 {offsets = [1, 0], sizes = [28, 32], strides = [1, 1]} : vector<30x32xbf16> to vector<28x32xbf16>
      %c1_57 = arith.constant 1 : index
      %c0_58 = arith.constant 0 : index
      %c0_59 = arith.constant 0 : index
      %82 = vector.load %arg4[%c1_57, %c0_58, %c0_59] : memref<9x32x64xbf16, #tpu.memory_space<vmem>>, vector<1x32x64xbf16>
      %83 = vector.shape_cast %82 : vector<1x32x64xbf16> to vector<32x64xbf16>
      %cst_60 = arith.constant dense<0.000000e+00> : vector<28x64xf32>
      %84 = tpu.matmul %81, %83, %cst_60 {dimension_numbers = #tpu.dot_dimension_numbers<[1], [0], [0], [1], [0, 0, 1, 1], [], []>} : vector<28x32xbf16>, vector<32x64xbf16>, vector<28x64xf32> -> vector<28x64xf32>
      %85 = arith.addf %80, %84 : vector<28x64xf32>
      %86 = vector.extract_strided_slice %75 {offsets = [2, 0], sizes = [28, 32], strides = [1, 1]} : vector<30x32xbf16> to vector<28x32xbf16>
      %c2_61 = arith.constant 2 : index
      %c0_62 = arith.constant 0 : index
      %c0_63 = arith.constant 0 : index
      %87 = vector.load %arg4[%c2_61, %c0_62, %c0_63] : memref<9x32x64xbf16, #tpu.memory_space<vmem>>, vector<1x32x64xbf16>
      %88 = vector.shape_cast %87 : vector<1x32x64xbf16> to vector<32x64xbf16>
      %cst_64 = arith.constant dense<0.000000e+00> : vector<28x64xf32>
      %89 = tpu.matmul %86, %88, %cst_64 {dimension_numbers = #tpu.dot_dimension_numbers<[1], [0], [0], [1], [0, 0, 1, 1], [], []>} : vector<28x32xbf16>, vector<32x64xbf16>, vector<28x64xf32> -> vector<28x64xf32>
      %90 = arith.addf %85, %89 : vector<28x64xf32>
      %c1_i32_65 = arith.constant 1 : i32
      %91 = arith.addi %70, %c1_i32_65 : i32
      %92 = arith.index_cast %91 : i32 to index
      %c0_66 = arith.constant 0 : index
      %c0_67 = arith.constant 0 : index
      %93 = vector.load %arg7[%92, %c0_66, %c0_67] : memref<30x30x32xbf16, #tpu.memory_space<vmem>>, vector<1x30x32xbf16>
      %94 = vector.shape_cast %93 : vector<1x30x32xbf16> to vector<30x32xbf16>
      %95 = vector.extract_strided_slice %94 {offsets = [0, 0], sizes = [28, 32], strides = [1, 1]} : vector<30x32xbf16> to vector<28x32xbf16>
      %c3_68 = arith.constant 3 : index
      %c0_69 = arith.constant 0 : index
      %c0_70 = arith.constant 0 : index
      %96 = vector.load %arg4[%c3_68, %c0_69, %c0_70] : memref<9x32x64xbf16, #tpu.memory_space<vmem>>, vector<1x32x64xbf16>
      %97 = vector.shape_cast %96 : vector<1x32x64xbf16> to vector<32x64xbf16>
      %cst_71 = arith.constant dense<0.000000e+00> : vector<28x64xf32>
      %98 = tpu.matmul %95, %97, %cst_71 {dimension_numbers = #tpu.dot_dimension_numbers<[1], [0], [0], [1], [0, 0, 1, 1], [], []>} : vector<28x32xbf16>, vector<32x64xbf16>, vector<28x64xf32> -> vector<28x64xf32>
      %99 = arith.addf %90, %98 : vector<28x64xf32>
      %100 = vector.extract_strided_slice %94 {offsets = [1, 0], sizes = [28, 32], strides = [1, 1]} : vector<30x32xbf16> to vector<28x32xbf16>
      %c4_72 = arith.constant 4 : index
      %c0_73 = arith.constant 0 : index
      %c0_74 = arith.constant 0 : index
      %101 = vector.load %arg4[%c4_72, %c0_73, %c0_74] : memref<9x32x64xbf16, #tpu.memory_space<vmem>>, vector<1x32x64xbf16>
      %102 = vector.shape_cast %101 : vector<1x32x64xbf16> to vector<32x64xbf16>
      %cst_75 = arith.constant dense<0.000000e+00> : vector<28x64xf32>
      %103 = tpu.matmul %100, %102, %cst_75 {dimension_numbers = #tpu.dot_dimension_numbers<[1], [0], [0], [1], [0, 0, 1, 1], [], []>} : vector<28x32xbf16>, vector<32x64xbf16>, vector<28x64xf32> -> vector<28x64xf32>
      %104 = arith.addf %99, %103 : vector<28x64xf32>
      %105 = vector.extract_strided_slice %94 {offsets = [2, 0], sizes = [28, 32], strides = [1, 1]} : vector<30x32xbf16> to vector<28x32xbf16>
      %c5_76 = arith.constant 5 : index
      %c0_77 = arith.constant 0 : index
      %c0_78 = arith.constant 0 : index
      %106 = vector.load %arg4[%c5_76, %c0_77, %c0_78] : memref<9x32x64xbf16, #tpu.memory_space<vmem>>, vector<1x32x64xbf16>
      %107 = vector.shape_cast %106 : vector<1x32x64xbf16> to vector<32x64xbf16>
      %cst_79 = arith.constant dense<0.000000e+00> : vector<28x64xf32>
      %108 = tpu.matmul %105, %107, %cst_79 {dimension_numbers = #tpu.dot_dimension_numbers<[1], [0], [0], [1], [0, 0, 1, 1], [], []>} : vector<28x32xbf16>, vector<32x64xbf16>, vector<28x64xf32> -> vector<28x64xf32>
      %109 = arith.addf %104, %108 : vector<28x64xf32>
      %c2_i32_80 = arith.constant 2 : i32
      %110 = arith.addi %70, %c2_i32_80 : i32
      %111 = arith.index_cast %110 : i32 to index
      %c0_81 = arith.constant 0 : index
      %c0_82 = arith.constant 0 : index
      %112 = vector.load %arg7[%111, %c0_81, %c0_82] : memref<30x30x32xbf16, #tpu.memory_space<vmem>>, vector<1x30x32xbf16>
      %113 = vector.shape_cast %112 : vector<1x30x32xbf16> to vector<30x32xbf16>
      %114 = vector.extract_strided_slice %113 {offsets = [0, 0], sizes = [28, 32], strides = [1, 1]} : vector<30x32xbf16> to vector<28x32xbf16>
      %c6_83 = arith.constant 6 : index
      %c0_84 = arith.constant 0 : index
      %c0_85 = arith.constant 0 : index
      %115 = vector.load %arg4[%c6_83, %c0_84, %c0_85] : memref<9x32x64xbf16, #tpu.memory_space<vmem>>, vector<1x32x64xbf16>
      %116 = vector.shape_cast %115 : vector<1x32x64xbf16> to vector<32x64xbf16>
      %cst_86 = arith.constant dense<0.000000e+00> : vector<28x64xf32>
      %117 = tpu.matmul %114, %116, %cst_86 {dimension_numbers = #tpu.dot_dimension_numbers<[1], [0], [0], [1], [0, 0, 1, 1], [], []>} : vector<28x32xbf16>, vector<32x64xbf16>, vector<28x64xf32> -> vector<28x64xf32>
      %118 = arith.addf %109, %117 : vector<28x64xf32>
      %119 = vector.extract_strided_slice %113 {offsets = [1, 0], sizes = [28, 32], strides = [1, 1]} : vector<30x32xbf16> to vector<28x32xbf16>
      %c7_87 = arith.constant 7 : index
      %c0_88 = arith.constant 0 : index
      %c0_89 = arith.constant 0 : index
      %120 = vector.load %arg4[%c7_87, %c0_88, %c0_89] : memref<9x32x64xbf16, #tpu.memory_space<vmem>>, vector<1x32x64xbf16>
      %121 = vector.shape_cast %120 : vector<1x32x64xbf16> to vector<32x64xbf16>
      %cst_90 = arith.constant dense<0.000000e+00> : vector<28x64xf32>
      %122 = tpu.matmul %119, %121, %cst_90 {dimension_numbers = #tpu.dot_dimension_numbers<[1], [0], [0], [1], [0, 0, 1, 1], [], []>} : vector<28x32xbf16>, vector<32x64xbf16>, vector<28x64xf32> -> vector<28x64xf32>
      %123 = arith.addf %118, %122 : vector<28x64xf32>
      %124 = vector.extract_strided_slice %113 {offsets = [2, 0], sizes = [28, 32], strides = [1, 1]} : vector<30x32xbf16> to vector<28x32xbf16>
      %c8_91 = arith.constant 8 : index
      %c0_92 = arith.constant 0 : index
      %c0_93 = arith.constant 0 : index
      %125 = vector.load %arg4[%c8_91, %c0_92, %c0_93] : memref<9x32x64xbf16, #tpu.memory_space<vmem>>, vector<1x32x64xbf16>
      %126 = vector.shape_cast %125 : vector<1x32x64xbf16> to vector<32x64xbf16>
      %cst_94 = arith.constant dense<0.000000e+00> : vector<28x64xf32>
      %127 = tpu.matmul %124, %126, %cst_94 {dimension_numbers = #tpu.dot_dimension_numbers<[1], [0], [0], [1], [0, 0, 1, 1], [], []>} : vector<28x32xbf16>, vector<32x64xbf16>, vector<28x64xf32> -> vector<28x64xf32>
      %128 = arith.addf %123, %127 : vector<28x64xf32>
      %129 = vector.broadcast %1 : vector<1x64xf32> to vector<28x64xf32>
      %130 = arith.addf %128, %129 : vector<28x64xf32>
      %cst_95 = arith.constant 0.000000e+00 : f32
      %131 = vector.broadcast %cst_95 : f32 to vector<28x64xf32>
      %132 = arith.maximumf %130, %131 : vector<28x64xf32>
      %133 = arith.maximumf %68, %132 : vector<28x64xf32>
      %c0_96 = arith.constant 0 : index
      %c0_97 = arith.constant 0 : index
      %134 = vector.load %arg8[%c0_96, %c0_97] : memref<28x64xf32, #tpu.memory_space<vmem>>, vector<28x64xf32>
      tpu.vector_store %arg8[%c0_96, %c0_97], %133 {strides = array<i32>} : memref<28x64xf32, #tpu.memory_space<vmem>>, vector<28x64xf32>,
      %c0_98 = arith.constant 0 : index
      %c0_99 = arith.constant 0 : index
      %135 = tpu.strided_load %arg8[%c0_98, %c0_99] {strides = array<i32: 2, 1>} : memref<28x64xf32, #tpu.memory_space<vmem>>, vector<14x64xf32>
      %c1_100 = arith.constant 1 : index
      %c0_101 = arith.constant 0 : index
      %136 = tpu.strided_load %arg8[%c1_100, %c0_101] {strides = array<i32: 2, 1>} : memref<28x64xf32, #tpu.memory_space<vmem>>, vector<14x64xf32>
      %137 = arith.maximumf %135, %136 : vector<14x64xf32>
      %138 = arith.truncf %137 : vector<14x64xf32> to vector<14x64xbf16>
      %c0_102 = arith.constant 0 : index
      %139 = arith.index_cast %5 : i32 to index
      %c0_103 = arith.constant 0 : index
      %c0_104 = arith.constant 0 : index
      %140 = vector.load %arg6[%c0_102, %139, %c0_103, %c0_104] : memref<1x14x14x64xbf16, #tpu.memory_space<vmem>>, vector<1x1x14x64xbf16>
      %141 = vector.shape_cast %140 : vector<1x1x14x64xbf16> to vector<14x64xbf16>
      %142 = vector.shape_cast %138 : vector<14x64xbf16> to vector<1x1x14x64xbf16>
      tpu.vector_store %arg6[%c0_102, %139, %c0_103, %c0_104], %142 {strides = array<i32>} : memref<1x14x14x64xbf16, #tpu.memory_space<vmem>>, vector<1x1x14x64xbf16>,
    }
    %c14_i32_6 = arith.constant 14 : i32
    return
  }
  func.func @transform_0(%arg0: i32) -> (i32, i32, i32, i32) {
    %c0_i32 = arith.constant 0 : i32
    %c0_i32_0 = arith.constant 0 : i32
    %c0_i32_1 = arith.constant 0 : i32
    %c0_i32_2 = arith.constant 0 : i32
    return %arg0, %c0_i32, %c0_i32_0, %c0_i32_1 : i32, i32, i32, i32
  }
  func.func @transform_1(%arg0: i32) -> (i32, i32, i32) {
    %c0_i32 = arith.constant 0 : i32
    %c0_i32_0 = arith.constant 0 : i32
    %c0_i32_1 = arith.constant 0 : i32
    %c0_i32_2 = arith.constant 0 : i32
    return %c0_i32, %c0_i32_0, %c0_i32_1 : i32, i32, i32
  }
  func.func @transform_2(%arg0: i32) -> (i32, i32) {
    %c0_i32 = arith.constant 0 : i32
    %c0_i32_0 = arith.constant 0 : i32
    %c0_i32_1 = arith.constant 0 : i32
    return %c0_i32, %c0_i32_0 : i32, i32
  }
  func.func @transform_3(%arg0: i32) -> (i32, i32, i32) {
    %c0_i32 = arith.constant 0 : i32
    %c0_i32_0 = arith.constant 0 : i32
    %c0_i32_1 = arith.constant 0 : i32
    %c0_i32_2 = arith.constant 0 : i32
    return %c0_i32, %c0_i32_0, %c0_i32_1 : i32, i32, i32
  }
  func.func @transform_4(%arg0: i32) -> (i32, i32) {
    %c0_i32 = arith.constant 0 : i32
    %c0_i32_0 = arith.constant 0 : i32
    %c0_i32_1 = arith.constant 0 : i32
    return %c0_i32, %c0_i32_0 : i32, i32
  }
  func.func @transform_5(%arg0: i32) -> (i32, i32, i32, i32) {
    %c0_i32 = arith.constant 0 : i32
    %c0_i32_0 = arith.constant 0 : i32
    %c0_i32_1 = arith.constant 0 : i32
    %c0_i32_2 = arith.constant 0 : i32
    return %arg0, %c0_i32, %c0_i32_0, %c0_i32_1 : i32, i32, i32, i32
  }
}

module attributes {stable_mosaic.version = 11 : i64} {
  func.func @_fc_head_kernel(%arg0: i32, %arg1: memref<2x12544xbf16, #tpu.memory_space<vmem>>, %arg2: memref<12544x128xbf16, #tpu.memory_space<vmem>>, %arg3: memref<1x128xf32, #tpu.memory_space<vmem>>, %arg4: memref<128x10xbf16, #tpu.memory_space<vmem>>, %arg5: memref<1x10xf32, #tpu.memory_space<vmem>>, %arg6: memref<2x10xf32, #tpu.memory_space<vmem>>) attributes {dimension_semantics = [#tpu.dimension_semantics<parallel>], iteration_bounds = array<i64: 1>, scalar_prefetch = 0 : i64, scratch_operands = 0 : i64, tpu.core_type = #tpu.core_type<tc>, window_params = [{transform_indices = @transform_0, window_bounds = array<i64: 2, 12544>}, {pipeline_mode = #tpu.pipeline_mode<synchronous>, transform_indices = @transform_1, window_bounds = array<i64: 12544, 128>}, {pipeline_mode = #tpu.pipeline_mode<synchronous>, transform_indices = @transform_2, window_bounds = array<i64: 1, 128>}, {pipeline_mode = #tpu.pipeline_mode<synchronous>, transform_indices = @transform_3, window_bounds = array<i64: 128, 10>}, {pipeline_mode = #tpu.pipeline_mode<synchronous>, transform_indices = @transform_4, window_bounds = array<i64: 1, 10>}, {transform_indices = @transform_5, window_bounds = array<i64: 2, 10>}]} {
    %c0 = arith.constant 0 : index
    %c0_0 = arith.constant 0 : index
    %0 = vector.load %arg1[%c0, %c0_0] : memref<2x12544xbf16, #tpu.memory_space<vmem>>, vector<2x12544xbf16>
    %c0_1 = arith.constant 0 : index
    %c0_2 = arith.constant 0 : index
    %1 = vector.load %arg2[%c0_1, %c0_2] : memref<12544x128xbf16, #tpu.memory_space<vmem>>, vector<12544x128xbf16>
    %cst = arith.constant dense<0.000000e+00> : vector<2x128xf32>
    %2 = tpu.matmul %0, %1, %cst {dimension_numbers = #tpu.dot_dimension_numbers<[1], [0], [0], [1], [0, 0, 1, 1], [], []>} : vector<2x12544xbf16>, vector<12544x128xbf16>, vector<2x128xf32> -> vector<2x128xf32>
    %c0_3 = arith.constant 0 : index
    %c0_4 = arith.constant 0 : index
    %3 = vector.load %arg3[%c0_3, %c0_4] : memref<1x128xf32, #tpu.memory_space<vmem>>, vector<1x128xf32>
    %4 = vector.broadcast %3 : vector<1x128xf32> to vector<2x128xf32>
    %5 = arith.addf %2, %4 : vector<2x128xf32>
    %cst_5 = arith.constant 0.000000e+00 : f32
    %6 = vector.broadcast %cst_5 : f32 to vector<2x128xf32>
    %7 = arith.maximumf %5, %6 : vector<2x128xf32>
    %8 = arith.truncf %7 : vector<2x128xf32> to vector<2x128xbf16>
    %c0_6 = arith.constant 0 : index
    %c0_7 = arith.constant 0 : index
    %9 = vector.load %arg4[%c0_6, %c0_7] : memref<128x10xbf16, #tpu.memory_space<vmem>>, vector<128x10xbf16>
    %cst_8 = arith.constant dense<0.000000e+00> : vector<2x10xf32>
    %10 = tpu.matmul %8, %9, %cst_8 {dimension_numbers = #tpu.dot_dimension_numbers<[1], [0], [0], [1], [0, 0, 1, 1], [], []>} : vector<2x128xbf16>, vector<128x10xbf16>, vector<2x10xf32> -> vector<2x10xf32>
    %c0_9 = arith.constant 0 : index
    %c0_10 = arith.constant 0 : index
    %11 = vector.load %arg5[%c0_9, %c0_10] : memref<1x10xf32, #tpu.memory_space<vmem>>, vector<1x10xf32>
    %12 = vector.broadcast %11 : vector<1x10xf32> to vector<2x10xf32>
    %13 = arith.addf %10, %12 : vector<2x10xf32>
    %cst_11 = arith.constant dense<0xFF800000> : vector<2xf32>
    %14 = vector.multi_reduction <maximumf>, %13, %cst_11 [1] : vector<2x10xf32> to vector<2xf32>
    %15 = vector.shape_cast %14 : vector<2xf32> to vector<2x1xf32>
    %16 = vector.broadcast %15 : vector<2x1xf32> to vector<2x10xf32>
    %17 = arith.subf %13, %16 : vector<2x10xf32>
    %18 = math.exp %17 : vector<2x10xf32>
    %cst_12 = arith.constant dense<0.000000e+00> : vector<2xf32>
    %19 = vector.multi_reduction <add>, %18, %cst_12 [1] : vector<2x10xf32> to vector<2xf32>
    %20 = vector.shape_cast %19 : vector<2xf32> to vector<2x1xf32>
    %21 = math.log %20 : vector<2x1xf32>
    %22 = vector.broadcast %21 : vector<2x1xf32> to vector<2x10xf32>
    %23 = arith.subf %17, %22 : vector<2x10xf32>
    %c0_13 = arith.constant 0 : index
    %c0_14 = arith.constant 0 : index
    %24 = vector.load %arg6[%c0_13, %c0_14] : memref<2x10xf32, #tpu.memory_space<vmem>>, vector<2x10xf32>
    tpu.vector_store %arg6[%c0_13, %c0_14], %23 {strides = array<i32>} : memref<2x10xf32, #tpu.memory_space<vmem>>, vector<2x10xf32>,
    return
  }
  func.func @transform_0(%arg0: i32) -> (i32, i32) {
    %c0_i32 = arith.constant 0 : i32
    %c0_i32_0 = arith.constant 0 : i32
    return %arg0, %c0_i32 : i32, i32
  }
  func.func @transform_1(%arg0: i32) -> (i32, i32) {
    %c0_i32 = arith.constant 0 : i32
    %c0_i32_0 = arith.constant 0 : i32
    %c0_i32_1 = arith.constant 0 : i32
    return %c0_i32, %c0_i32_0 : i32, i32
  }
  func.func @transform_2(%arg0: i32) -> (i32, i32) {
    %c0_i32 = arith.constant 0 : i32
    %c0_i32_0 = arith.constant 0 : i32
    %c0_i32_1 = arith.constant 0 : i32
    return %c0_i32, %c0_i32_0 : i32, i32
  }
  func.func @transform_3(%arg0: i32) -> (i32, i32) {
    %c0_i32 = arith.constant 0 : i32
    %c0_i32_0 = arith.constant 0 : i32
    %c0_i32_1 = arith.constant 0 : i32
    return %c0_i32, %c0_i32_0 : i32, i32
  }
  func.func @transform_4(%arg0: i32) -> (i32, i32) {
    %c0_i32 = arith.constant 0 : i32
    %c0_i32_0 = arith.constant 0 : i32
    %c0_i32_1 = arith.constant 0 : i32
    return %c0_i32, %c0_i32_0 : i32, i32
  }
  func.func @transform_5(%arg0: i32) -> (i32, i32) {
    %c0_i32 = arith.constant 0 : i32
    %c0_i32_0 = arith.constant 0 : i32
    return %arg0, %c0_i32 : i32, i32
  }
}

</mosaic_0001>

<bundles_post_ra>
// kernel: svhn_net_forward.2
= control target key start
LH: loop header
LB: loop body
LE: loop exit
PB: predicated region body
PF: predicated region fallthrough
CT: control target
= control target key end

     0   :  { %10 = vsyncpa [#allocation5], 0  ;;  %s3670_s0 = inlined_call_operand.vmem [shape: bf16[2,32,32,3], index: 0, kind: input, shape index: {}]   ;;  %s3671_s1 = inlined_call_operand.hbm [shape: bf16[9,3,32], index: 1, kind: input, shape index: {}]   ;;  %s3672_s2 = inlined_call_operand.hbm [shape: f32[1,32], index: 2, kind: input, shape index: {}]   ;;  %s3673_s3 = inlined_call_operand.hbm [shape: bf16[9,32,64], index: 3, kind: input, shape index: {}]   ;;  %s3674_s4 = inlined_call_operand.hbm [shape: f32[1,64], index: 4, kind: input, shape index: {}]   ;;  %s3675_s5 = inlined_call_operand.vmem [shape: bf16[2,14,14,64], index: 5, kind: output, shape index: {}]  }
   0x1   :  { %11 = vsyncpa [#allocation7], 0 }
   0x2   :  { %12 = vsyncpa [#allocation10], 0  ;;  %s3340_s18 = smov 0  }
   0x3 LB: > { %s3301_s19 = smov [#allocation6]   ;;  %s3346_s21 = sadd.s32 4294967295, %s3291_s18   ;;  %s3291_s18 = sphi %s3340_s18, %s18_s18  }
   0x4   : > { %s185_s20 = sshll.u32 %s3301_s19, 4  ;;  %p2497_p0 = scmp.ge.s32.totalorder %s3291_s18, 1  ;;  %s186_s20 = int_to_ptr.vmem [resolvable:$true] %s185_s20 }
   0x5   : > { %p159_p1 = scmp.lt.s32.totalorder %s3291_s18, 3  ;;  %p3676_p2 = scmp.eq.s32.totalorder %s3346_s21, 0 }
   0x6   : > { %s3302_s23 = smov [#allocation4]   ;;  %s3303_s26 = smov [#allocation8]  }
   0x7   : > { %p3351_p3 = pnand %p2497_p0, %p159_p1  ;;  %s171_s24 = sshll.u32 %s3302_s23, 4  ;;  %s3357_s24 = int_to_ptr.vmem [resolvable:$true] %s171_s24 }
   0x8   : > { %s195_s27 = sshll.u32 %s3303_s26, 4  ;;  %s3153_s30 = scalar_lea.hbm %s3672_s2, 16  ;;  %s3365_s27 = int_to_ptr.vmem [resolvable:$true] %s195_s27 }
   0x9   : > { %s3678_s22 = scalar_select %p3351_p3, 1, 0 }
   0xa   : > { %p3067_p4 = pneg %p3351_p3  ;;  %p3154_p6 = scmp.ne.s32.totalorder %s3672_s2, %s3153_s30 }
   0xb   : > { %p3160_p10 = scmp.lt.u32.totalorder %s3153_s30, %s3672_s2 }
   0xc   : > { %p3361_p5 = pnand %p3676_p2, %p3067_p4 }
   0xe   : > { %p3375_p7 = pneg %p3361_p5 }
  0x10   : > { %p3156_p8 = pnand %p3375_p7, %p3154_p6 }
  0x12   : > { %p3157_p9 = pneg %p3156_p8 }
  0x14   : > { %p3162_p11 = pnand %p3160_p10, %p3157_p9 }
  0x16   : > { %3165 = shalt.err (!%p3162_p11)
}
  0x17   : > { %s3166_s11 = scalar_lea.vmem %s186_s20, 16  ;;  %s3173_s12 = scalar_lea.vmem %s186_s20, 32 }
  0x18   : > { %p3167_p12 = scmp.ne.s32.totalorder %s186_s20, %s3166_s11  ;;  %p3174_p1 = scmp.lt.s32.totalorder %s186_s20, %s186_s20 }
  0x19   : > { %p3175_p4 = scmp.lt.s32.totalorder %s3173_s12, %s3166_s11 }
  0x1a   : > { %p3169_p13 = pnand %p3167_p12, %p3375_p7 }
  0x1b   : > { %p3176_p2 = por %p3175_p4, %p3174_p1 }
  0x1c   : > { %p3170_p0 = pneg %p3169_p13 }
  0x1e   : > { %p3177_p3 = pnand %p3176_p2, %p3170_p0 }
  0x20   : > { %3180 = shalt.err (!%p3177_p3)
}
  0x21   : > { %3073 = dma.hbm_to_vmem [thread:$0]  (!%p3361_p5), %s3672_s2, 16, %s186_s20, [#allocation7]  }
  0x22   : > { %s3181_s17 = scalar_lea.hbm %s3671_s1, 288 }
  0x23   : > { %p3182_p6 = scmp.ne.s32.totalorder %s3671_s1, %s3181_s17  ;;  %p3188_p2 = scmp.lt.u32.totalorder %s3181_s17, %s3671_s1 }
  0x25   : > { %p3184_p8 = pnand %p3182_p6, %p3375_p7 }
  0x27   : > { %p3185_p9 = pneg %p3184_p8 }
  0x29   : > { %p3190_p3 = pnand %p3188_p2, %p3185_p9 }
  0x2b   : > { %3193 = shalt.err (!%p3190_p3)
}
  0x2c   : > { %s3194_s20 = scalar_lea.vmem %s3357_s24, 288  ;;  %p3202_p13 = scmp.lt.s32.totalorder %s3357_s24, %s3357_s24 }
  0x2d   : > { %p3195_p10 = scmp.ne.s32.totalorder %s3357_s24, %s3194_s20  ;;  %p3203_p0 = scmp.lt.s32.totalorder %s3194_s20, %s3194_s20 }
  0x2f   : > { %p3197_p11 = pnand %p3195_p10, %p3375_p7  ;;  %p3204_p1 = por %p3203_p0, %p3202_p13 }
  0x31   : > { %p3198_p12 = pneg %p3197_p11 }
  0x33   : > { %p3205_p4 = pnand %p3204_p1, %p3198_p12 }
  0x35   : > { %3208 = shalt.err (!%p3205_p4)
}
  0x36   : > { %s3304_s29 = smov 32   ;;  %s3305_s30 = smov 2  }
  0x37   : > { %3070 = dma.hbm_to_vmem [thread:$0]  (!%p3361_p5), %s3671_s1, 288, %s3357_s24, [#allocation5], %s3304_s29, %s3304_s29, %s3305_s30  }
  0x38   : > { %s3209_s11 = scalar_lea.hbm %s3673_s3, 2304 }
  0x39   : > { %p3210_p6 = scmp.ne.s32.totalorder %s3673_s3, %s3209_s11  ;;  %p3216_p2 = scmp.lt.u32.totalorder %s3209_s11, %s3673_s3 }
  0x3b   : > { %p3212_p8 = pnand %p3210_p6, %p3375_p7 }
  0x3d   : > { %p3213_p9 = pneg %p3212_p8 }
  0x3f   : > { %p3218_p3 = pnand %p3216_p2, %p3213_p9 }
  0x41   : > { %3221 = shalt.err (!%p3218_p3)
}
  0x42   : > { %s3222_s24 = scalar_lea.vmem %s3365_s27, 2304  ;;  %p3230_p13 = scmp.lt.s32.totalorder %s3365_s27, %s3365_s27 }
  0x43   : > { %p3223_p10 = scmp.ne.s32.totalorder %s3365_s27, %s3222_s24  ;;  %p3231_p0 = scmp.lt.s32.totalorder %s3222_s24, %s3222_s24 }
  0x45   : > { %p3225_p11 = pnand %p3223_p10, %p3375_p7  ;;  %p3232_p1 = por %p3231_p0, %p3230_p13 }
  0x47   : > { %p3226_p12 = pneg %p3225_p11 }
  0x49   : > { %p3233_p4 = pnand %p3232_p1, %p3226_p12 }
  0x4b   : > { %3236 = shalt.err (!%p3233_p4)
}
  0x4c   : > { %s3306_s16 = smov 64   ;;  %s3307_s17 = smov 4  }
  0x4d   : > { %3076 = dma.hbm_to_vmem [thread:$0]  (!%p3361_p5), %s3673_s3, 2304, %s3365_s27, [#allocation7], %s3306_s16, %s3306_s16, %s3307_s17  }
  0x4e   : > { %s3308_s26 = smov [#allocation9]   ;;  %s3237_s30 = scalar_lea.hbm %s3674_s4, 16 }
  0x4f   : > { %s209_s28 = sshll.u32 %s3308_s26, 4  ;;  %p3238_p6 = scmp.ne.s32.totalorder %s3674_s4, %s3237_s30  ;;  %s210_s28 = int_to_ptr.vmem [resolvable:$true] %s209_s28 }
  0x50   : > { %p3244_p2 = scmp.lt.u32.totalorder %s3237_s30, %s3674_s4 }
  0x51   : > { %p3240_p8 = pnand %p3238_p6, %p3375_p7 }
  0x53   : > { %p3241_p9 = pneg %p3240_p8 }
  0x55   : > { %p3246_p3 = pnand %p3244_p2, %p3241_p9 }
  0x57   : > { %3249 = shalt.err (!%p3246_p3)
}
  0x58   : > { %s3250_s27 = scalar_lea.vmem %s210_s28, 16  ;;  %s3257_s11 = scalar_lea.vmem %s210_s28, 32 }
  0x59   : > { %p3251_p10 = scmp.ne.s32.totalorder %s210_s28, %s3250_s27  ;;  %p3258_p13 = scmp.lt.s32.totalorder %s210_s28, %s210_s28 }
  0x5a   : > { %p3259_p0 = scmp.lt.s32.totalorder %s3257_s11, %s3250_s27 }
  0x5b   : > { %p3253_p11 = pnand %p3251_p10, %p3375_p7 }
  0x5c   : > { %p3260_p1 = por %p3259_p0, %p3258_p13 }
  0x5d   : > { %p3254_p12 = pneg %p3253_p11 }
  0x5f   : > { %p3261_p4 = pnand %p3260_p1, %p3254_p12 }
  0x61   : > { %3264 = shalt.err (!%p3261_p4)
}
  0x62   : > { %3079 = dma.hbm_to_vmem [thread:$0]  (!%p3361_p5), %s3674_s4, 16, %s210_s28, [#allocation10]  }
  0x63   : > { %p3681_p6 = scmp.ne.s32.totalorder %s3678_s22, 0 }
  0x64   : > { %p3682_p8 = scmp.eq.s32.totalorder (!%p3681_p6), %s3346_s21, 0 }
  0x65   : > { %230 = sbr.rel (%p3681_p6) target bundleno = 756 (0x2f4), region = 40 }
  0x6c   : > { %3278 = dma.done.wait (%p3682_p8), [#allocation5], 288   ;;  %p3683_p7 = pmov %p3682_p8 }
  0x6e   : > { %3280 = vsyncadd (%p3683_p7), [#allocation5], 4294967008  ;;  %p3684_p9 = pmov %p3683_p7 }
  0x6f   : > { %p3685_p2 = pmov %p3683_p7 }
  0x70   : > { %3282 = dma.done.wait (%p3684_p9), [#allocation7], 2320  }
  0x71   : > { %3284 = vsyncadd (%p3685_p2), [#allocation7], 4294964976  ;;  %p3686_p3 = pmov %p3685_p2 }
  0x72   : > { %p3687_p5 = pmov %p3685_p2 }
  0x73   : > { %3286 = dma.done.wait (%p3686_p3), [#allocation10], 16  }
  0x74   : > { %3288 = vsyncadd (%p3687_p5), [#allocation10], 4294967280  ;;  %p270_p10 = scmp.lt.s32.totalorder %s3346_s21, 1  ;;  %v3481_v0 = vld [vmem:[#allocation6] ss:$0 sm:$0xff]  ;;  %s3485_s19 = smov 0  }
  0x75   : > { %v3483_v1 = vld [vmem:[#allocation9] ss:$0 sm:$0xff] }
  0x76   : > { %s3689_s21 = smov (!%p270_p10, %s3346_s21), 1 }
  0x77   : > { %s2642_s22 = sshll.u32 %s3689_s21, 9  ;;  %s3050_s25 = smul.u32 112, %s3689_s21 }
  0x78   : > { %s3474_s15 = scalar_lea.vmem %s3670_s0, %s2642_s22 }
  0x79   : > { %s3479_s17 = scalar_lea.vmem %s3675_s5, %s3050_s25 }
  0x7a LB: >> { %vm332_vm0 = vcmask 1040384   ;;  %vm333_vm1 = vcmask 1041408   ;;  %v595_v2 = vld [vmem:[#allocation4 + $0x8] sm:$0x3]  ;;  %v3309_v3 = vmov 65535   ;;  %s2643_s21 = sshll.u32 %s3295_s19, 4  ;;  %s3295_s19 = sphi %s3485_s19, %s288_s19  }
  0x7b   : >> { %v334_v4 = vsel %vm332_vm0, 4294967295, %v3309_v3  ;;  %v298_v5 = vld [vmem:[#allocation4 + $0x2] sm:$0x3]  ;;  %v672_v7 = vld [vmem:[#allocation4 + $0xa] sm:$0x3]  ;;  %s3498_s23 = scalar_lea.vmem %s3474_s15, %s2643_s21  ;;  %vm325_vm3 = vcmask 23552  }
  0x7c   : >> { %v3490_v6 = vsel %vm333_vm1, %v334_v4, 0  ;;  %v296_v8 = vld [vmem:[#allocation4] sm:$0x3]  ;;  %v3504_v14 = vld [vmem:[%s3498_s23 + $0x8] sm:$0xff]   ;;  %vm309_vm2 = vsmask.f32 7424 }
  0x7d   : >> { %v616_v9 = vand.u32 %v595_v2, %v3490_v6  ;;  %v337_v10 = vand.u32 %v3490_v6, %v298_v5  ;;  %v683_v11 = vand.u32 %v672_v7, %v3490_v6  ;;  %v393_v12 = vand.u32 %v3490_v6, %v296_v8  ;;  %v3121_v13 = vld [vmem:[%s3498_s23] sm:$0xff]   ;;  %v3123_v19 = vld [vmem:[%s3498_s23 + $0x10] sm:$0xff]   ;;  %v3510_v20 = vld [vmem:[%s3498_s23 + $0x18] sm:$0xff]   ;;  %s995_s26 = scalar_lea.vmem [#allocation2], %s2643_s21  ;;  %s288_s19 = sadd.s32 1, %s3295_s19  }
  0x7e   : >> { %v311_v15 = vshrl.u32 %v3121_v13, 16  ;;  %v313_v16 = vshll.u32 %v3121_v13, 16  ;;  %v318_v17 = vshll.u32 %v3504_v14, 16  ;;  %v322_v18 = vshrl.u32 %v3504_v14, 16  ;;  %v445_v23 = vld [vmem:[#allocation4 + $0x4] sm:$0x3] }
  0x7f   : >> { %2780 = vmatprep.subr.bf16.mxu0 %v616_v9  ;;  %2756 = vmatprep.subr.bf16.mxu1 %v337_v10  ;;  %v596_v24 = vshrl.u32 %v3123_v19, 16  ;;  %v598_v25 = vshll.u32 %v3123_v19, 16  ;;  %v602_v26 = vshll.u32 %v3510_v20, 16  ;;  %v606_v27 = vshrl.u32 %v3510_v20, 16  ;;  %v747_v35 = vld [vmem:[#allocation4 + $0xc] sm:$0x3] }
  0x80   : >> { %2781 = vmatpush3.bf16.msra.mxu0 %v616_v9  ;;  %2757 = vmatpush3.bf16.msra.mxu1 %v337_v10  ;;  %v315_v21 = vrot.slane %v313_v16, 1  ;;  %v320_v22 = vrot.slane %v318_v17, 1  ;;  %v673_v32 = vrot.slane %v3123_v19, 1  ;;  %v674_v33 = vrot.slane %v3510_v20, 1  ;;  %v521_v44 = vld [vmem:[#allocation4 + $0x6] sm:$0x3] }
  0x81   : >> { %2786 = vmatprep.subr.bf16.mxu0 %v683_v11  ;;  %2762 = vmatprep.subr.bf16.mxu1 %v393_v12  ;;  %v600_v30 = vrot.slane %v598_v25, 1  ;;  %v604_v31 = vrot.slane %v602_v26, 1  ;;  %vm446_vm4 = vcmask 1046528   ;;  %v457_v36 = vand.u32 %v445_v23, %v3490_v6  ;;  %v821_v46 = vld [vmem:[#allocation4 + $0xe] sm:$0x3]  ;;  %v3125_v48 = vld [vmem:[%s3498_s23 + $0x20] sm:$0xff]  }
  0x82   : >> { %v316_v28 = vor.u32 %v315_v21, %v311_v15  ;;  %v324_v29 = vor.u32 %v322_v18, %v320_v22  ;;  %v675_v40 = vsel %vm446_vm4, %v673_v32, %v674_v33  ;;  %v765_v41 = vand.u32 %v747_v35, %v3490_v6  ;;  %v3126_v51 = vld [vmem:[%s3498_s23 + $0x28] sm:$0xff]   ;;  %v898_v57 = vld [vmem:[#allocation4 + $0x10] sm:$0x3]  ;;  %p285_p11 = scmp.ge.s32.totalorder %s288_s19, 30  }
  0x83   : >> { %v601_v37 = vor.u32 %v600_v30, %v596_v24  ;;  %v608_v38 = vor.u32 %v606_v27, %v604_v31  ;;  %v447_v42 = vrot.slane %v3121_v13, 1  ;;  %v448_v43 = vrot.slane %v3504_v14, 1  ;;  %s3558_s28 = smov (%p285_p11), 0  }
  0x84   : >> { %v321_v34 = vsel %vm309_vm2, %v316_v28, %v320_v22  ;;  %v539_v47 = vand.u32 %v521_v44, %v3490_v6  ;;  %v842_v49 = vand.u32 %v821_v46, %v3490_v6  ;;  %v824_v50 = vshll.u32 %v3125_v48, 16 }
  0x85   : >> { %2758 = vmatprep.mubr.msk.bf16.mxu1 %vm325_vm3, %v321_v34  ;;  %v605_v39 = vsel %vm309_vm2, %v601_v37, %v604_v31  ;;  %v449_v45 = vsel %vm446_vm4, %v447_v42, %v448_v43  ;;  %v822_v52 = vshrl.u32 %v3125_v48, 16  ;;  %v828_v54 = vshll.u32 %v3126_v51, 16 }
  0x86   : >> { %2759 = vmatmul.mubr.msk.bf16.vlgmr.msra.gmra.mrb[0].mxu1 %vm325_vm3, %v324_v29  ;;  %2782 = vmatprep.mubr.msk.bf16.mxu0 %vm325_vm3, %v605_v39  ;;  %v826_v53 = vrot.slane %v824_v50, 1  ;;  %v909_v59 = vand.u32 %v898_v57, %v3490_v6  ;;  %v832_v60 = vshrl.u32 %v3126_v51, 16  ;;  %v899_v61 = vrot.slane %v3125_v48, 1 }
  0x87   : >> { %2763 = vmatpush3.bf16.msra.mxu1 %v393_v12  ;;  %2764 = vmatprep.mubr.msk.bf16.mxu1 %vm325_vm3, %v3121_v13  ;;  %v830_v56 = vrot.slane %v828_v54, 1  ;;  %v900_v62 = vrot.slane %v3126_v51, 1  ;;  %vm996_vm5 = vcmask 257024   ;;  %vm1000_vm6 = vcmask 256000  }
  0x88   : >> { %2768 = vmatprep.subr.bf16.mxu1 %v457_v36  ;;  %2783 = vmatmul.mubr.msk.bf16.vlgmr.msra.gmra.mrb[0].mxu0 %vm325_vm3, %v608_v38  ;;  %v827_v55 = vor.u32 %v826_v53, %v822_v52 }
  0x89   : >> { %2787 = vmatpush3.bf16.msra.mxu0 %v683_v11  ;;  %2788 = vmatprep.mubr.msk.bf16.mxu0 %vm325_vm3, %v675_v40  ;;  %v834_v63 = vor.u32 %v832_v60, %v830_v56  ;;  %v901_v2 = vsel %vm446_vm4, %v899_v61, %v900_v62 }
  0x8a   : >> { %2792 = vmatprep.subr.bf16.mxu0 %v765_v41  ;;  %v831_v58 = vsel %vm309_vm2, %v827_v55, %v830_v56 }
  0x92   : >> { %2765 = vmatmul.mubr.msk.bf16.vlgmr.msra.gmra.mrb[0].mxu1 %vm325_vm3, %v3504_v14 }
  0x93   : >> { %2769 = vmatpush3.bf16.msra.mxu1 %v457_v36  ;;  %2770 = vmatprep.mubr.msk.bf16.mxu1 %vm325_vm3, %v449_v45 }
  0x94   : >> { %2774 = vmatprep.subr.bf16.mxu1 %v539_v47  ;;  %2789 = vmatmul.mubr.msk.bf16.vlgmr.msra.gmra.mrb[0].mxu0 %vm325_vm3, %v674_v33 }
  0x95   : >> { %2793 = vmatpush3.bf16.msra.mxu0 %v765_v41  ;;  %2794 = vmatprep.mubr.msk.bf16.mxu0 %vm325_vm3, %v3125_v48 }
  0x96   : >> { %2798 = vmatprep.subr.bf16.mxu0 %v842_v49 }
  0x9e   : >> { %2771 = vmatmul.mubr.msk.bf16.vlgmr.msra.gmra.mrb[0].mxu1 %vm325_vm3, %v448_v43 }
  0x9f   : >> { %2775 = vmatpush3.bf16.msra.mxu1 %v539_v47  ;;  %2776 = vmatprep.mubr.msk.bf16.mxu1 %vm325_vm3, %v3123_v19 }
  0xa0   : >> { %2795 = vmatmul.mubr.msk.bf16.vlgmr.msra.gmra.mrb[0].mxu0 %vm325_vm3, %v3126_v51 }
  0xa1   : >> { %2799 = vmatpush3.bf16.msra.mxu0 %v842_v49  ;;  %2800 = vmatprep.mubr.msk.bf16.mxu0 %vm325_vm3, %v831_v58 }
  0xa2   : >> { %2804 = vmatprep.subr.bf16.mxu0 %v909_v59 }
  0xaa   : >> { %2777 = vmatmul.mubr.msk.bf16.vlgmr.msra.gmra.mrb[0].mxu1 %vm325_vm3, %v3510_v20 }
  0xac   : >> { %2801 = vmatmul.mubr.msk.bf16.vlgmr.msra.gmra.mrb[0].mxu0 %vm325_vm3, %v834_v63 }
  0xad   : >> { %2805 = vmatpush3.bf16.msra.mxu0 %v909_v59  ;;  %2806 = vmatprep.mubr.msk.bf16.mxu0 %vm325_vm3, %v901_v2 }
  0xb8   : >> { %2807 = vmatmul.mubr.msk.bf16.vlgmr.msra.gmra.mrb[0].mxu0 %vm325_vm3, %v900_v62 }
 0x17d   : >> { %v2778_v3 = vpop.f32.mrb[0].mxu1 }
 0x17e   : >> { %v575_v4 = vpop.f32.mrb[1].mxu1 }
 0x17f   : >> { %v2779_v5 = vpop.f32.mrb[2].mxu1 }
 0x180   : >> { %v578_v6 = vpop.f32.mrb[3].mxu1 }
 0x18b   : >> { %v2808_v7 = vpop.f32.mrb[0].mxu0 }
 0x18c   : >> { %v2954_v8 = vadd.f32 %v2808_v7, %v2778_v3  ;;  %v945_v9 = vpop.f32.mrb[1].mxu0 }
 0x18d   : >> { %v2955_v10 = vadd.f32 %v945_v9, %v575_v4  ;;  %v2809_v11 = vpop.f32.mrb[2].mxu0 }
 0x18e   : >> { %v972_v12 = vadd.f32 %v2954_v8, %v3481_v0  ;;  %v2956_v13 = vadd.f32 %v2809_v11, %v2779_v5  ;;  %v948_v14 = vpop.f32.mrb[3].mxu0 }
 0x18f   : >> { %v970_v15 = vadd.f32 %v2955_v10, %v3481_v0  ;;  %v2957_v16 = vadd.f32 %v948_v14, %v578_v6 }
 0x190   : >> { %v976_v17 = vmax.f32 %v972_v12, 0.0  ;;  %v973_v18 = vadd.f32 %v2956_v13, %v3481_v0 }
 0x191   : >> { %v974_v19 = vmax.f32 %v970_v15, 0.0  ;;  %v971_v20 = vadd.f32 %v2957_v16, %v3481_v0  ;;  %287 = sbr.rel (!%p285_p11) target bundleno = 122 (0x7a), region = 129 }
 0x192   : >> { %v2646_v21 = vpack.c.bf16 %v976_v17, %v976_v17  ;;  %v977_v22 = vmax.f32 %v973_v18, 0.0 }
 0x193   : >> { %v2644_v23 = vpack.c.bf16 %v974_v19, %v974_v19  ;;  %v975_v24 = vmax.f32 %v971_v20, 0.0 }
 0x194   : >> { %999 = vst.msk [vmem:[%s995_s26 + $0x8] sm:$0xf] %vm996_vm5, %v2646_v21  ;;  %v2647_v25 = vpack.c.bf16 %v977_v22, %v977_v22 }
 0x195   : >> { %997 = vst.msk [vmem:[%s995_s26] sm:$0xf] %vm996_vm5, %v2644_v23  ;;  %v2645_v26 = vpack.c.bf16 %v975_v24, %v975_v24 }
 0x196   : >> { %1001 = vst.msk [vmem:[%s995_s26 + $0xc] sm:$0x7] %vm1000_vm6, %v2647_v25 }
 0x197   : >> { %998 = vst.msk [vmem:[%s995_s26 + $0x4] sm:$0xf] %vm996_vm5, %v2645_v26 }
 0x198 LB: >> { %v3127_v27 = vld [vmem:[#allocation8 + $0x10] sm:$0xff]   ;;  %v3128_v28 = vld [vmem:[#allocation8 + $0x18] sm:$0xff]   ;;  %s2650_s20 = sshll.u32 %s3299_s28, 5  ;;  %v3131_v29 = vld [vmem:[#allocation8] sm:$0xff]   ;;  %vm1063_vm7 = vcmask 261120   ;;  %vm2335_vm8 = vcmask 523264   ;;  %s3299_s28 = sphi %s3558_s28, %s1007_s28  }
 0x199   : >> { %2810 = vmatprep.subr.bf16.mxu0 %v3127_v27  ;;  %2882 = vmatprep.subr.bf16.mxu1 %v3127_v27  ;;  %s3564_s29 = scalar_lea.vmem [#allocation2], %s2650_s20  ;;  %v3134_v48 = vld [vmem:[#allocation8 + $0x8] sm:$0xff]   ;;  %v3135_v52 = vld [vmem:[#allocation8 + $0x20] sm:$0xff]   ;;  %v3137_v60 = vld [vmem:[#allocation8 + $0x30] sm:$0xff]   ;;  %vm2339_vm9 = vcmask 519168   ;;  %s2656_s30 = sshll.u32 %s3299_s28, 3 }
 0x19a   : >> { %2811 = vmatpush3.bf16.msra.mxu0 %v3127_v27  ;;  %2883 = vmatpush3.bf16.msra.mxu1 %v3127_v27  ;;  %v3136_v57 = vld [vmem:[#allocation8 + $0x28] sm:$0xff]   ;;  %v3138_v61 = vld [vmem:[#allocation8 + $0x38] sm:$0xff]   ;;  %v3139_v2 = vld [vmem:[#allocation8 + $0x40] sm:$0xff]   ;;  %s2359_s6 = scalar_lea.vmem %s3479_s17, %s2656_s30  ;;  %vm2361_vm10 = vcmask 518144   ;;  %s1007_s28 = sadd.s32 1, %s3299_s28  }
 0x19b   : >> { %2812 = vmatprep.subr.bf16.mxu0 %v3128_v28  ;;  %2884 = vmatprep.subr.bf16.mxu1 %v3128_v28  ;;  %v3142_v9 = vld [vmem:[#allocation8 + $0x48] sm:$0xff]   ;;  %v3143_v11 = vld [vmem:[#allocation8 + $0x50] sm:$0xff]   ;;  %v3144_v15 = vld [vmem:[#allocation8 + $0x58] sm:$0xff]   ;;  %p1004_p12 = scmp.ge.s32.totalorder %s1007_s28, 14  }
 0x19c   : >> { %v3145_v18 = vld [vmem:[#allocation8 + $0x60] sm:$0xff]   ;;  %v3146_v19 = vld [vmem:[#allocation8 + $0x68] sm:$0xff]   ;;  %v3147_v22 = vld [vmem:[#allocation8 + $0x70] sm:$0xff]  }
 0x19e   : >> { %v3129_v0 = vld [vmem:[%s3564_s29] sm:$0xff]   ;;  %v3568_v30 = vld [vmem:[%s3564_s29 + $0x8] sm:$0x7f]   ;;  %2813 = vmatpush3.bf16.msra.mxu0 %v3128_v28  ;;  %2885 = vmatpush3.bf16.msra.mxu1 %v3128_v28  ;;  %v3132_v35 = vld [vmem:[%s3564_s29 + $0x10] sm:$0xff]  }
 0x19f   : >> { %v1037_v31 = vshrl.u32 %v3129_v0, 16  ;;  %v1039_v32 = vshll.u32 %v3129_v0, 16  ;;  %v1044_v33 = vshll.u32 %v3568_v30, 16  ;;  %v1048_v34 = vshrl.u32 %v3568_v30, 16  ;;  %2818 = vmatprep.subr.bf16.mxu0 %v3131_v29  ;;  %v3574_v36 = vld [vmem:[%s3564_s29 + $0x18] sm:$0x7f]   ;;  %2890 = vmatprep.subr.bf16.mxu1 %v3131_v29 }
 0x1a0   : >> { %v1363_v39 = vshrl.u32 %v3132_v35, 16  ;;  %v1365_v40 = vshll.u32 %v3132_v35, 16  ;;  %v1369_v41 = vshll.u32 %v3574_v36, 16  ;;  %v1373_v42 = vshrl.u32 %v3574_v36, 16  ;;  %v3140_v62 = vld [vmem:[%s3564_s29 + $0x20] sm:$0xff]   ;;  %v3148_v20 = vld [vmem:[%s3564_s29 + $0x30] sm:$0xff]  }
 0x1a1   : >> { %v1041_v37 = vrot.slane %v1039_v32, 1  ;;  %v1046_v38 = vrot.slane %v1044_v33, 1  ;;  %v1190_v53 = vrot.slane %v3129_v0, 1  ;;  %v1191_v54 = vrot.slane %v3568_v30, 1  ;;  %v3608_v3 = vld [vmem:[%s3564_s29 + $0x28] sm:$0x7f]  }
 0x1a2   : >> { %v1367_v45 = vrot.slane %v1365_v40, 1  ;;  %v1371_v46 = vrot.slane %v1369_v41, 1  ;;  %v1452_v55 = vrot.slane %v3132_v35, 1  ;;  %v3591_v56 = vrot.slane %v3574_v36, 1  ;;  %v3149_v23 = vld [vmem:[%s3564_s29 + $0x38] sm:$0x7f]  }
 0x1a3   : >> { %v1042_v43 = vor.u32 %v1041_v37, %v1037_v31  ;;  %v1050_v44 = vor.u32 %v1048_v34, %v1046_v38  ;;  %v1192_v58 = vsel %vm446_vm4, %v1190_v53, %v1191_v54  ;;  %v1627_v63 = vshll.u32 %v3140_v62, 16  ;;  %v3152_v34 = vld [vmem:[#allocation8 + $0x88] sm:$0xff]  }
 0x1a4   : >> { %v1368_v49 = vor.u32 %v1367_v45, %v1363_v39  ;;  %v3580_v50 = vor.u32 %v1373_v42, %v1371_v46  ;;  %v1454_v59 = vsel %vm446_vm4, %v1452_v55, %v3591_v56  ;;  %v1625_v4 = vshrl.u32 %v3140_v62, 16 }
 0x1a5   : >> { %v1047_v47 = vsel %vm309_vm2, %v1042_v43, %v1046_v38  ;;  %v1629_v5 = vrot.slane %v1627_v63, 1  ;;  %v1631_v6 = vshll.u32 %v3608_v3, 16  ;;  %v1635_v12 = vshrl.u32 %v3608_v3, 16 }
 0x1a6   : >> { %2814 = vmatprep.mubr.msk.bf16.mxu0 %vm1063_vm7, %v1047_v47  ;;  %v1372_v51 = vsel %vm309_vm2, %v1368_v49, %v1371_v46  ;;  %v1714_v13 = vrot.slane %v3140_v62, 1  ;;  %v3621_v14 = vrot.slane %v3608_v3, 1  ;;  %v2191_v21 = vshll.u32 %v3148_v20, 16 }
 0x1a7   : >> { %2815 = vmatmul.mubr.msk.bf16.vlgmr.msra.gmra.mrb[0].mxu0 %vm1063_vm7, %v1050_v44  ;;  %2886 = vmatprep.mubr.msk.bf16.mxu1 %vm1063_vm7, %v1372_v51  ;;  %v1630_v7 = vor.u32 %v1629_v5, %v1625_v4  ;;  %v1633_v8 = vrot.slane %v1631_v6, 1  ;;  %v2189_v24 = vshrl.u32 %v3148_v20, 16  ;;  %v2195_v26 = vshll.u32 %v3149_v23, 16 }
 0x1a8   : >> { %2819 = vmatpush3.bf16.msra.mxu0 %v3131_v29  ;;  %2822 = vmatprep.mubr.msk.bf16.mxu0 %vm1063_vm7, %v3129_v0  ;;  %v1716_v17 = vsel %vm446_vm4, %v1714_v13, %v3621_v14  ;;  %v2193_v25 = vrot.slane %v2191_v21, 1  ;;  %v2199_v31 = vshrl.u32 %v3149_v23, 16  ;;  %v2261_v32 = vrot.slane %v3148_v20, 1 }
 0x1a9   : >> { %2820 = vmatprep.subr.bf16.mxu0 %v3134_v48  ;;  %2887 = vmatmul.mubr.msk.bf16.vlgmr.msra.gmra.mrb[0].mxu1 %vm1063_vm7, %v3580_v50  ;;  %v1634_v10 = vsel %vm309_vm2, %v1630_v7, %v1633_v8  ;;  %v1637_v16 = vor.u32 %v1635_v12, %v1633_v8  ;;  %v2197_v28 = vrot.slane %v2195_v26, 1  ;;  %v2262_v33 = vrot.slane %v3149_v23, 1 }
 0x1aa   : >> { %2891 = vmatpush3.bf16.msra.mxu1 %v3131_v29  ;;  %2894 = vmatprep.mubr.msk.bf16.mxu1 %vm1063_vm7, %v3132_v35  ;;  %v2194_v27 = vor.u32 %v2193_v25, %v2189_v24  ;;  %v3150_v29 = vld [vmem:[#allocation8 + $0x78] sm:$0xff]  }
 0x1ab   : >> { %2892 = vmatprep.subr.bf16.mxu1 %v3134_v48 }
 0x1ac   : >> { %2821 = vmatpush3.bf16.msra.mxu0 %v3134_v48  ;;  %v2198_v0 = vsel %vm309_vm2, %v2194_v27, %v2197_v28 }
 0x1ad   : >> { %2826 = vmatprep.subr.bf16.mxu0 %v3135_v52 }
 0x1ae   : >> { %2893 = vmatpush3.bf16.msra.mxu1 %v3134_v48 }
 0x1af   : >> { %2898 = vmatprep.subr.bf16.mxu1 %v3135_v52 }
 0x1b3   : >> { %2823 = vmatmul.mubr.msk.bf16.vlgmr.msra.gmra.mrb[0].mxu0 %vm1063_vm7, %v3568_v30  ;;  %v3151_v30 = vld [vmem:[#allocation8 + $0x80] sm:$0xff]  }
 0x1b4   : >> { %2827 = vmatpush3.bf16.msra.mxu0 %v3135_v52  ;;  %2830 = vmatprep.mubr.msk.bf16.mxu0 %vm1063_vm7, %v1192_v58 }
 0x1b5   : >> { %2828 = vmatprep.subr.bf16.mxu0 %v3136_v57  ;;  %2895 = vmatmul.mubr.msk.bf16.vlgmr.msra.gmra.mrb[0].mxu1 %vm1063_vm7, %v3574_v36 }
 0x1b6   : >> { %2899 = vmatpush3.bf16.msra.mxu1 %v3135_v52  ;;  %2902 = vmatprep.mubr.msk.bf16.mxu1 %vm1063_vm7, %v1454_v59 }
 0x1b7   : >> { %2900 = vmatprep.subr.bf16.mxu1 %v3136_v57 }
 0x1b8   : >> { %2829 = vmatpush3.bf16.msra.mxu0 %v3136_v57 }
 0x1b9   : >> { %2834 = vmatprep.subr.bf16.mxu0 %v3137_v60 }
 0x1ba   : >> { %2901 = vmatpush3.bf16.msra.mxu1 %v3136_v57 }
 0x1bb   : >> { %2906 = vmatprep.subr.bf16.mxu1 %v3137_v60 }
 0x1bf   : >> { %2831 = vmatmul.mubr.msk.bf16.vlgmr.msra.gmra.mrb[0].mxu0 %vm1063_vm7, %v1191_v54 }
 0x1c0   : >> { %2835 = vmatpush3.bf16.msra.mxu0 %v3137_v60  ;;  %2838 = vmatprep.mubr.msk.bf16.mxu0 %vm1063_vm7, %v3132_v35  ;;  %v2201_v35 = vor.u32 %v2199_v31, %v2197_v28 }
 0x1c1   : >> { %2836 = vmatprep.subr.bf16.mxu0 %v3138_v61  ;;  %2903 = vmatmul.mubr.msk.bf16.vlgmr.msra.gmra.mrb[0].mxu1 %vm1063_vm7, %v3591_v56 }
 0x1c2   : >> { %2907 = vmatpush3.bf16.msra.mxu1 %v3137_v60  ;;  %2910 = vmatprep.mubr.msk.bf16.mxu1 %vm1063_vm7, %v3140_v62 }
 0x1c3   : >> { %2908 = vmatprep.subr.bf16.mxu1 %v3138_v61 }
 0x1c4   : >> { %2837 = vmatpush3.bf16.msra.mxu0 %v3138_v61 }
 0x1c5   : >> { %2842 = vmatprep.subr.bf16.mxu0 %v3139_v2 }
 0x1c6   : >> { %2909 = vmatpush3.bf16.msra.mxu1 %v3138_v61 }
 0x1c7   : >> { %2914 = vmatprep.subr.bf16.mxu1 %v3139_v2 }
 0x1cb   : >> { %2839 = vmatmul.mubr.msk.bf16.vlgmr.msra.gmra.mrb[0].mxu0 %vm1063_vm7, %v3574_v36  ;;  %v2263_v36 = vsel %vm446_vm4, %v2261_v32, %v2262_v33 }
 0x1cc   : >> { %2843 = vmatpush3.bf16.msra.mxu0 %v3139_v2  ;;  %2846 = vmatprep.mubr.msk.bf16.mxu0 %vm1063_vm7, %v1372_v51 }
 0x1cd   : >> { %2844 = vmatprep.subr.bf16.mxu0 %v3142_v9  ;;  %2911 = vmatmul.mubr.msk.bf16.vlgmr.msra.gmra.mrb[0].mxu1 %vm1063_vm7, %v3608_v3 }
 0x1ce   : >> { %2915 = vmatpush3.bf16.msra.mxu1 %v3139_v2  ;;  %2918 = vmatprep.mubr.msk.bf16.mxu1 %vm1063_vm7, %v1634_v10 }
 0x1cf   : >> { %2916 = vmatprep.subr.bf16.mxu1 %v3142_v9 }
 0x1d0   : >> { %2845 = vmatpush3.bf16.msra.mxu0 %v3142_v9 }
 0x1d1   : >> { %2850 = vmatprep.subr.bf16.mxu0 %v3143_v11 }
 0x1d2   : >> { %2917 = vmatpush3.bf16.msra.mxu1 %v3142_v9 }
 0x1d3   : >> { %2922 = vmatprep.subr.bf16.mxu1 %v3143_v11 }
 0x1d7   : >> { %2847 = vmatmul.mubr.msk.bf16.vlgmr.msra.gmra.mrb[0].mxu0 %vm1063_vm7, %v3580_v50 }
 0x1d8   : >> { %2851 = vmatpush3.bf16.msra.mxu0 %v3143_v11  ;;  %2854 = vmatprep.mubr.msk.bf16.mxu0 %vm1063_vm7, %v1454_v59 }
 0x1d9   : >> { %2852 = vmatprep.subr.bf16.mxu0 %v3144_v15  ;;  %2919 = vmatmul.mubr.msk.bf16.vlgmr.msra.gmra.mrb[0].mxu1 %vm1063_vm7, %v1637_v16 }
 0x1da   : >> { %2923 = vmatpush3.bf16.msra.mxu1 %v3143_v11  ;;  %2926 = vmatprep.mubr.msk.bf16.mxu1 %vm1063_vm7, %v1716_v17 }
 0x1db   : >> { %2924 = vmatprep.subr.bf16.mxu1 %v3144_v15 }
 0x1dc   : >> { %2853 = vmatpush3.bf16.msra.mxu0 %v3144_v15 }
 0x1dd   : >> { %2858 = vmatprep.subr.bf16.mxu0 %v3145_v18 }
 0x1de   : >> { %2925 = vmatpush3.bf16.msra.mxu1 %v3144_v15 }
 0x1df   : >> { %2930 = vmatprep.subr.bf16.mxu1 %v3145_v18 }
 0x1e3   : >> { %2855 = vmatmul.mubr.msk.bf16.vlgmr.msra.gmra.mrb[0].mxu0 %vm1063_vm7, %v3591_v56 }
 0x1e4   : >> { %2859 = vmatpush3.bf16.msra.mxu0 %v3145_v18  ;;  %2862 = vmatprep.mubr.msk.bf16.mxu0 %vm1063_vm7, %v3140_v62 }
 0x1e5   : >> { %2860 = vmatprep.subr.bf16.mxu0 %v3146_v19  ;;  %2927 = vmatmul.mubr.msk.bf16.vlgmr.msra.gmra.mrb[0].mxu1 %vm1063_vm7, %v3621_v14 }
 0x1e6   : >> { %2931 = vmatpush3.bf16.msra.mxu1 %v3145_v18  ;;  %2934 = vmatprep.mubr.msk.bf16.mxu1 %vm1063_vm7, %v3148_v20 }
 0x1e7   : >> { %2932 = vmatprep.subr.bf16.mxu1 %v3146_v19 }
 0x1e8   : >> { %2861 = vmatpush3.bf16.msra.mxu0 %v3146_v19 }
 0x1e9   : >> { %2866 = vmatprep.subr.bf16.mxu0 %v3147_v22 }
 0x1ea   : >> { %2933 = vmatpush3.bf16.msra.mxu1 %v3146_v19 }
 0x1eb   : >> { %2938 = vmatprep.subr.bf16.mxu1 %v3147_v22 }
 0x1ef   : >> { %2863 = vmatmul.mubr.msk.bf16.vlgmr.msra.gmra.mrb[0].mxu0 %vm1063_vm7, %v3608_v3 }
 0x1f0   : >> { %2867 = vmatpush3.bf16.msra.mxu0 %v3147_v22  ;;  %2870 = vmatprep.mubr.msk.bf16.mxu0 %vm1063_vm7, %v1634_v10 }
 0x1f1   : >> { %2868 = vmatprep.subr.bf16.mxu0 %v3150_v29  ;;  %2935 = vmatmul.mubr.msk.bf16.vlgmr.msra.gmra.mrb[0].mxu1 %vm1063_vm7, %v3149_v23 }
 0x1f2   : >> { %2939 = vmatpush3.bf16.msra.mxu1 %v3147_v22  ;;  %2942 = vmatprep.mubr.msk.bf16.mxu1 %vm1063_vm7, %v2198_v0 }
 0x1f3   : >> { %2940 = vmatprep.subr.bf16.mxu1 %v3150_v29 }
 0x1f4   : >> { %2869 = vmatpush3.bf16.msra.mxu0 %v3150_v29 }
 0x1f5   : >> { %2874 = vmatprep.subr.bf16.mxu0 %v3151_v30 }
 0x1f6   : >> { %2941 = vmatpush3.bf16.msra.mxu1 %v3150_v29 }
 0x1f7   : >> { %2946 = vmatprep.subr.bf16.mxu1 %v3151_v30 }
 0x1fb   : >> { %2871 = vmatmul.mubr.msk.bf16.vlgmr.msra.gmra.mrb[0].mxu0 %vm1063_vm7, %v1637_v16 }
 0x1fc   : >> { %2875 = vmatpush3.bf16.msra.mxu0 %v3151_v30  ;;  %2878 = vmatprep.mubr.msk.bf16.mxu0 %vm1063_vm7, %v1716_v17 }
 0x1fd   : >> { %2876 = vmatprep.subr.bf16.mxu0 %v3152_v34  ;;  %2943 = vmatmul.mubr.msk.bf16.vlgmr.msra.gmra.mrb[0].mxu1 %vm1063_vm7, %v2201_v35 }
 0x1fe   : >> { %2947 = vmatpush3.bf16.msra.mxu1 %v3151_v30  ;;  %2950 = vmatprep.mubr.msk.bf16.mxu1 %vm1063_vm7, %v2263_v36 }
 0x1ff   : >> { %2948 = vmatprep.subr.bf16.mxu1 %v3152_v34 }
 0x200   : >> { %2877 = vmatpush3.bf16.msra.mxu0 %v3152_v34 }
 0x202   : >> { %2949 = vmatpush3.bf16.msra.mxu1 %v3152_v34 }
 0x207   : >> { %2879 = vmatmul.mubr.msk.bf16.vlgmr.msra.gmra.mrb[0].mxu0 %vm1063_vm7, %v3621_v14 }
 0x209   : >> { %2951 = vmatmul.mubr.msk.bf16.vlgmr.msra.gmra.mrb[0].mxu1 %vm1063_vm7, %v2262_v33 }
 0x2da   : >> { %v2880_v37 = vpop.f32.mrb[0].mxu0 }
 0x2db   : >> { %v1796_v38 = vadd.f32 %v2880_v37, %v3483_v1  ;;  %v1769_v39 = vpop.f32.mrb[1].mxu0 }
 0x2dc   : >> { %v1794_v40 = vadd.f32 %v3483_v1, %v1769_v39  ;;  %v2881_v41 = vpop.f32.mrb[2].mxu0  ;;  %v2952_v42 = vpop.f32.mrb[0].mxu1 }
 0x2dd   : >> { %v1797_v43 = vadd.f32 %v2881_v41, %v3483_v1  ;;  %v1772_v44 = vpop.f32.mrb[3].mxu0  ;;  %v1800_v45 = vmax.f32 %v1796_v38, 0.0  ;;  %v2325_v46 = vadd.f32 %v2952_v42, %v3483_v1  ;;  %v2304_v47 = vpop.f32.mrb[1].mxu1 }
 0x2de   : >> { %v1795_v48 = vadd.f32 %v3483_v1, %v1772_v44  ;;  %v1798_v49 = vmax.f32 %v1794_v40, 0.0  ;;  %v2323_v50 = vadd.f32 %v3483_v1, %v2304_v47  ;;  %v2953_v51 = vpop.f32.mrb[2].mxu1 }
 0x2df   : >> { %v2329_v52 = vmax.f32 %v2325_v46, 0.0  ;;  %v1801_v53 = vmax.f32 %v1797_v43, 0.0  ;;  %v2326_v54 = vadd.f32 %v2953_v51, %v3483_v1  ;;  %v2307_v55 = vpop.f32.mrb[3].mxu1 }
 0x2e0   : >> { %v2327_v56 = vmax.f32 %v2323_v50, 0.0  ;;  %v1799_v57 = vmax.f32 %v1795_v48, 0.0  ;;  %v2324_v58 = vadd.f32 %v3483_v1, %v2307_v55 }
 0x2e1   : >> { %v2333_v59 = vmax.f32 %v1800_v45, %v2329_v52  ;;  %v2330_v60 = vmax.f32 %v2326_v54, 0.0 }
 0x2e2   : >> { %v2331_v61 = vmax.f32 %v1798_v49, %v2327_v56  ;;  %v2328_v62 = vmax.f32 %v2324_v58, 0.0 }
 0x2e3   : >> { %2338 = vst.msk [vmem:[#allocation3 + $0x10] sm:$0xff] %vm2335_vm8, %v2333_v59  ;;  %v2334_v63 = vmax.f32 %v1801_v53, %v2330_v60 }
 0x2e4   : >> { %2336 = vst.msk [vmem:[#allocation3] sm:$0xff] %vm2335_vm8, %v2331_v61  ;;  %v2332_v2 = vmax.f32 %v1799_v57, %v2328_v62 }
 0x2e5   : >> { %2340 = vst.msk [vmem:[#allocation3 + $0x18] sm:$0xf] %vm2339_vm9, %v2334_v63 }
 0x2e6   : >> { %2337 = vst.msk [vmem:[#allocation3 + $0x8] sm:$0xff] %vm2335_vm8, %v2332_v2 }
 0x2ec   : >> { %v2343_v3 = vld [vmem:[#allocation3 + $0x10] ss:$2 sm:$0x3f]  ;;  %v2347_v4 = vld [vmem:[#allocation3 + $0x11] ss:$2 sm:$0x3f] }
 0x2ed   : >> { %v2349_v5 = vmax.f32 %v2343_v3, %v2347_v4  ;;  %v2341_v6 = vld [vmem:[#allocation3] ss:$2 sm:$0xff]  ;;  %v2345_v7 = vld [vmem:[#allocation3 + $0x1] ss:$2 sm:$0xff]  ;;  %1006 = sbr.rel (!%p1004_p12) target bundleno = 408 (0x198), region = 140 }
 0x2ee   : >> { %v2348_v8 = vmax.f32 %v2341_v6, %v2345_v7 }
 0x2ef   : >> { %v2655_v9 = vpack.c.bf16 %v2349_v5, %v2349_v5 }
 0x2f0   : >> { %v2654_v10 = vpack.c.bf16 %v2348_v8, %v2348_v8 }
 0x2f1   : >> { %2362 = vst.msk [vmem:[%s2359_s6 + $0x4] sm:$0x7] %vm2361_vm10, %v2655_v9 }
 0x2f2   : >> { %2360 = vst.msk [vmem:[%s2359_s6] sm:$0xf] %vm2339_vm9, %v2654_v10 }
 0x2f4 PF: > { %s18_s18 = sadd.s32 1, %s3291_s18  }
 0x2f5   : > { %p15_p13 = scmp.ge.s32.totalorder %s18_s18, 4  }
 0x2f7   :  { %17 = sbr.rel (!%p15_p13) target bundleno = 3 (0x3), region = 151 }
 0x2fe   :  { %2384 = vsyncpa [#allocation5], 1 }
 0x2ff   :  { %2386 = vsyncpa [#allocation5 + $0x1], 1 }
 0x300   :  { %2387 = vsyncpa [#allocation7], 1 }
 0x301   :  { %2388 = vsyncpa [#allocation10], 1 }

// kernel: svhn_net_forward.3
= control target key start
LH: loop header
LB: loop body
LE: loop exit
PB: predicated region body
PF: predicated region fallthrough
CT: control target
= control target key end

     0   :  { %10 = vsyncpa [#allocation3], 0  ;;  %s12332_s0 = inlined_call_operand.vmem [shape: bf16[2,12544], index: 0, kind: input, shape index: {}]   ;;  %s12333_s1 = inlined_call_operand.hbm [shape: bf16[12544,128], index: 1, kind: input, shape index: {}]   ;;  %s12334_s2 = inlined_call_operand.hbm [shape: f32[1,128], index: 2, kind: input, shape index: {}]   ;;  %s12335_s3 = inlined_call_operand.vmem [shape: bf16[128,10], index: 3, kind: input, shape index: {}]   ;;  %s12336_s4 = inlined_call_operand.hbm [shape: f32[1,10], index: 4, kind: input, shape index: {}]   ;;  %s12337_s5 = inlined_call_operand.hbm [shape: f32[2,10], index: 5, kind: output, shape index: {}]  }
   0x1   :  { %11 = vsyncpa [#allocation6], 0 }
   0x2   :  { %12 = vsyncpa [#allocation4], 0  ;;  %s11988_s18 = smov [#allocation5]   ;;  %s11989_s20 = smov [#allocation2]  }
   0x3   :  { %s33_s19 = sshll.u32 %s11988_s18, 4  ;;  %s20_s21 = sshll.u32 %s11989_s20, 4  ;;  %s34_s19 = int_to_ptr.vmem [resolvable:$true] %s33_s19  ;;  %s12027_s21 = int_to_ptr.vmem [resolvable:$true] %s20_s21 }
   0x4   :  { %s11894_s24 = scalar_lea.hbm %s12334_s2, 16 }
   0x5   :  { %p11895_p0 = scmp.ne.s32.totalorder %s12334_s2, %s11894_s24  ;;  %p11898_p1 = scmp.lt.u32.totalorder %s11894_s24, %s12334_s2 }
   0x7   :  { %p11900_p2 = pnand %p11898_p1, %p11895_p0 }
   0x9   :  { %11903 = shalt.err (!%p11900_p2)
}
   0xa   :  { %s11904_s29 = scalar_lea.vmem %s34_s19, 16  ;;  %s11908_s30 = scalar_lea.vmem %s34_s19, 32 }
   0xb   :  { %p11905_p3 = scmp.ne.s32.totalorder %s34_s19, %s11904_s29  ;;  %p11909_p4 = scmp.lt.s32.totalorder %s34_s19, %s34_s19 }
   0xc   :  { %p11910_p5 = scmp.lt.s32.totalorder %s11908_s30, %s11904_s29 }
   0xe   :  { %p11911_p6 = por %p11910_p5, %p11909_p4 }
  0x10   :  { %p11912_p7 = pnand %p11911_p6, %p11905_p3 }
  0x12   :  { %11915 = shalt.err (!%p11912_p7)
}
  0x13   :  { %36 = dma.hbm_to_vmem [thread:$0]  %s12334_s2, 16, %s34_s19, [#allocation6]  }
  0x14   :  { %s11916_s10 = scalar_lea.hbm %s12333_s1, 100352 }
  0x15   :  { %p11917_p8 = scmp.ne.s32.totalorder %s12333_s1, %s11916_s10  ;;  %p11920_p9 = scmp.lt.u32.totalorder %s11916_s10, %s12333_s1 }
  0x17   :  { %p11922_p10 = pnand %p11920_p9, %p11917_p8 }
  0x19   :  { %11925 = shalt.err (!%p11922_p10)
}
  0x1a   :  { %s11926_s15 = scalar_lea.vmem %s12027_s21, 100352  ;;  %p11931_p12 = scmp.lt.s32.totalorder %s12027_s21, %s12027_s21 }
  0x1b   :  { %p11927_p11 = scmp.ne.s32.totalorder %s12027_s21, %s11926_s15  ;;  %p11932_p13 = scmp.lt.s32.totalorder %s11926_s15, %s11926_s15 }
  0x1d   :  { %p11933_p0 = por %p11932_p13, %p11931_p12 }
  0x1f   :  { %p11934_p1 = pnand %p11933_p0, %p11927_p11 }
  0x21   :  { %11937 = shalt.err (!%p11934_p1)
}
  0x22   :  { %s11990_s2 = smov 64   ;;  %s11991_s16 = smov 4  }
  0x23   :  { %26 = dma.hbm_to_vmem [thread:$0]  %s12333_s1, 100352, %s12027_s21, [#allocation3], %s11990_s2, %s11990_s2, %s11991_s16  }
  0x24   :  { %s11992_s19 = smov [#allocation7]   ;;  %s11938_s24 = scalar_lea.hbm %s12336_s4, 16 }
  0x25   :  { %s45_s20 = sshll.u32 %s11992_s19, 4  ;;  %p11939_p2 = scmp.ne.s32.totalorder %s12336_s4, %s11938_s24  ;;  %s46_s20 = int_to_ptr.vmem [resolvable:$true] %s45_s20 }
  0x26   :  { %p11942_p3 = scmp.lt.u32.totalorder %s11938_s24, %s12336_s4 }
  0x28   :  { %p11944_p4 = pnand %p11942_p3, %p11939_p2 }
  0x2a   :  { %11947 = shalt.err (!%p11944_p4)
}
  0x2b   :  { %s11948_s29 = scalar_lea.vmem %s46_s20, 16  ;;  %s11952_s1 = scalar_lea.vmem %s46_s20, 32 }
  0x2c   :  { %p11949_p5 = scmp.ne.s32.totalorder %s46_s20, %s11948_s29  ;;  %p11953_p6 = scmp.lt.s32.totalorder %s46_s20, %s46_s20 }
  0x2d   :  { %p11954_p7 = scmp.lt.s32.totalorder %s11952_s1, %s11948_s29 }
  0x2f   :  { %p11955_p8 = por %p11954_p7, %p11953_p6 }
  0x31   :  { %p11956_p9 = pnand %p11955_p8, %p11949_p5 }
  0x33   :  { %11959 = shalt.err (!%p11956_p9)
}
  0x34   :  { %48 = dma.hbm_to_vmem [thread:$0]  %s12336_s4, 16, %s46_s20, [#allocation6]  }
  0x35   :  { %11982 = dma.done.wait [#allocation3], 100352  }
  0x36   :  { %11983 = vsyncadd [#allocation3], 4294866944 }
  0x37   :  { %11984 = dma.done.wait [#allocation6], 32  }
  0x38   :  { %11985 = vsyncadd [#allocation6], 4294967264  ;;  %v11086_v0 = vld [vmem:[#allocation2 + $0x40] sm:$0xff]   ;;  %v11090_v4 = vld [vmem:[#allocation2 + $0x48] sm:$0xff]   ;;  %v11993_v21 = vmov 1966171168   ;;  %v1664_v23 = vlaneseq }
  0x39   :  { %v11087_v1 = vld [vmem:[#allocation2] sm:$0xff]   ;;  %9970 = vmatprep.subr.bf16.mxu0 %v11086_v0  ;;  %v11091_v5 = vld [vmem:[#allocation2 + $0x8] sm:$0xff]   ;;  %v11094_v8 = vld [vmem:[#allocation2 + $0x50] sm:$0xff]   ;;  %v1662_v22 = vunpack.c.l.s4 %v11993_v21  ;;  %vm11995_vm0 = vmmov 0   ;;  %vm9145_vm1 = vcmask 74752  }
  0x3a   :  { %v11088_v2 = vld [vmem:[#allocation2 + $0xc0] sm:$0xff]   ;;  %9971 = vmatpush3.bf16.msra.mxu0 %v11087_v1  ;;  %v11092_v6 = vld [vmem:[#allocation2 + $0xc8] sm:$0xff]   ;;  %v11095_v9 = vld [vmem:[#allocation2 + $0x10] sm:$0xff]   ;;  %v1665_v29 = vshrl.u32 %v1664_v23, 7 }
  0x3b   :  { %v11089_v3 = vld [vmem:[#allocation2 + $0x80] sm:$0xff]   ;;  %9992 = vmatprep.subr.bf16.mxu1 %v11088_v2  ;;  %9972 = vmatprep.subr.bf16.mxu0 %v11090_v4  ;;  %v11093_v7 = vld [vmem:[#allocation2 + $0x88] sm:$0xff]   ;;  %v11096_v10 = vld [vmem:[#allocation2 + $0xd0] sm:$0xff]   ;;  %v1663_v28 = vunpack.c.0.s8 %v1662_v22 }
  0x3c   :  { %9993 = vmatpush3.bf16.msra.mxu1 %v11089_v3  ;;  %v11097_v11 = vld [vmem:[#allocation2 + $0x90] sm:$0xff]   ;;  %v11098_v12 = vld [vmem:[#allocation2 + $0x58] sm:$0xff]   ;;  %v11102_v16 = vld [vmem:[#allocation2 + $0x60] sm:$0xff]  }
  0x3d   :  { %9994 = vmatprep.subr.bf16.mxu1 %v11092_v6  ;;  %v11099_v13 = vld [vmem:[#allocation2 + $0x18] sm:$0xff]   ;;  %v11103_v17 = vld [vmem:[#allocation2 + $0x20] sm:$0xff]   ;;  %v11106_v20 = vld [vmem:[#allocation2 + $0x68] sm:$0xff]   ;;  %v12070_v34 = vsub.s32 %v1663_v28, %v1665_v29 }
  0x3e   :  { %9973 = vmatpush3.bf16.msra.mxu0 %v11091_v5  ;;  %v11100_v14 = vld [vmem:[#allocation2 + $0xd8] sm:$0xff]   ;;  %v11104_v18 = vld [vmem:[#allocation2 + $0xe0] sm:$0xff]   ;;  %v11107_v24 = vld [vmem:[#allocation2 + $0x28] sm:$0xff]  }
  0x3f   :  { %9974 = vmatprep.subr.bf16.mxu0 %v11094_v8  ;;  %v11101_v15 = vld [vmem:[#allocation2 + $0x98] sm:$0xff]   ;;  %v11105_v19 = vld [vmem:[#allocation2 + $0xa0] sm:$0xff]   ;;  %v11108_v25 = vld [vmem:[#allocation2 + $0xe8] sm:$0xff]  }
  0x40   :  { %9995 = vmatpush3.bf16.msra.mxu1 %v11093_v7  ;;  %v11109_v26 = vld [vmem:[#allocation2 + $0xa8] sm:$0xff]   ;;  %v11110_v27 = vld [vmem:[#allocation2 + $0x70] sm:$0xff]   ;;  %v11114_v33 = vld [vmem:[#allocation2 + $0x78] sm:$0xff]  }
  0x41   :  { %9996 = vmatprep.subr.bf16.mxu1 %v11096_v10  ;;  %v11111_v30 = vld [vmem:[#allocation2 + $0x30] sm:$0xff]   ;;  %v11115_v35 = vld [vmem:[#allocation2 + $0x38] sm:$0xff]   ;;  %v59_v37 = vld [vmem:[%s12332_s0] sm:$0xff] }
  0x42   :  { %9975 = vmatpush3.bf16.msra.mxu0 %v11095_v9  ;;  %v11112_v31 = vld [vmem:[#allocation2 + $0xf0] sm:$0xff]   ;;  %v11116_v36 = vld [vmem:[#allocation2 + $0xf8] sm:$0xff]   ;;  %v1660_v38 = vcombine.high %v59_v37, %v59_v37  ;;  %v1667_v39 = vrot.slane %v59_v37, %v12070_v34  ;;  %v11119_v41 = vld [vmem:[#allocation2 + $0x140] sm:$0xff]  }
  0x43   :  { %9976 = vmatprep.subr.bf16.mxu0 %v11098_v12  ;;  %v11113_v32 = vld [vmem:[#allocation2 + $0xb0] sm:$0xff]   ;;  %v11118_v40 = vld [vmem:[#allocation2 + $0xb8] sm:$0xff]   ;;  %v11120_v44 = vld [vmem:[#allocation2 + $0x100] sm:$0xff]  }
  0x44   :  { %9997 = vmatpush3.bf16.msra.mxu1 %v11097_v11  ;;  %v1675_v42 = vcombine.high %v1667_v39, %v1667_v39  ;;  %v1683_v43 = vrot.slane %v1667_v39, %v12070_v34  ;;  %v12078_v45 = vrot.slane %v1660_v38, %v12070_v34  ;;  %v11121_v46 = vld [vmem:[#allocation2 + $0x1c0] sm:$0xff]   ;;  %v11123_v51 = vld [vmem:[#allocation2 + $0x148] sm:$0xff]   ;;  %v11127_v58 = vld [vmem:[#allocation2 + $0x150] sm:$0xff]  }
  0x45   :  { %9998 = vmatprep.subr.bf16.mxu1 %v11100_v14  ;;  %v11122_v48 = vld [vmem:[#allocation2 + $0x180] sm:$0xff]   ;;  %v11124_v53 = vld [vmem:[#allocation2 + $0x108] sm:$0xff]   ;;  %v11128_v59 = vld [vmem:[#allocation2 + $0x110] sm:$0xff]  }
  0x46   :  { %9977 = vmatpush3.bf16.msra.mxu0 %v11099_v13  ;;  %v1697_v47 = vrot.slane %v1675_v42, %v12070_v34  ;;  %v1676_v49 = vcombine.high %v12078_v45, %v12078_v45  ;;  %v1705_v50 = vcombine.high %v1683_v43, %v1683_v43  ;;  %v11125_v55 = vld [vmem:[#allocation2 + $0x1c8] sm:$0xff]   ;;  %v11129_v60 = vld [vmem:[#allocation2 + $0x1d0] sm:$0xff]   ;;  %v11131_v62 = vld [vmem:[#allocation2 + $0x158] sm:$0xff]  }
  0x47   :  { %9978 = vmatprep.subr.bf16.mxu0 %v11102_v16  ;;  %v11126_v56 = vld [vmem:[#allocation2 + $0x188] sm:$0xff]   ;;  %v11130_v61 = vld [vmem:[#allocation2 + $0x190] sm:$0xff]   ;;  %v11132_v63 = vld [vmem:[#allocation2 + $0x118] sm:$0xff]  }
  0x48   :  { %9999 = vmatpush3.bf16.msra.mxu1 %v11101_v15  ;;  %7104 = vmatprep.mubr.bf16.mxu0 %v1697_v47  ;;  %v1707_v52 = vcombine.high %v1697_v47, %v1697_v47  ;;  %v1704_v54 = vrot.slane %v1676_v49, %v12070_v34  ;;  %v11133_v0 = vld [vmem:[#allocation2 + $0x1d8] sm:$0xff]   ;;  %v11135_v2 = vld [vmem:[#allocation2 + $0x160] sm:$0xff]   ;;  %v11139_v6 = vld [vmem:[#allocation2 + $0x168] sm:$0xff]  }
  0x49   :  { %10000 = vmatprep.subr.bf16.mxu1 %v11104_v18  ;;  %v11134_v1 = vld [vmem:[#allocation2 + $0x198] sm:$0xff]   ;;  %v11136_v3 = vld [vmem:[#allocation2 + $0x120] sm:$0xff]   ;;  %v11140_v7 = vld [vmem:[#allocation2 + $0x128] sm:$0xff]   ;;  %v1690_v18 = vrot.slane %v12078_v45, %v12070_v34 }
  0x4a   :  { %9979 = vmatpush3.bf16.msra.mxu0 %v11103_v17  ;;  %7144 = vmatprep.mubr.bf16.mxu1 %v1707_v52  ;;  %v1708_v57 = vcombine.high %v1704_v54, %v1704_v54  ;;  %v11137_v4 = vld [vmem:[#allocation2 + $0x1e0] sm:$0xff]   ;;  %v11141_v8 = vld [vmem:[#allocation2 + $0x1e8] sm:$0xff]   ;;  %v11143_v10 = vld [vmem:[#allocation2 + $0x170] sm:$0xff]  }
  0x4b   :  { %9980 = vmatprep.subr.bf16.mxu0 %v11106_v20  ;;  %v11138_v5 = vld [vmem:[#allocation2 + $0x1a0] sm:$0xff]   ;;  %v11142_v9 = vld [vmem:[#allocation2 + $0x1a8] sm:$0xff]   ;;  %v11144_v11 = vld [vmem:[#allocation2 + $0x130] sm:$0xff]   ;;  %v1706_v23 = vcombine.high %v1690_v18, %v1690_v18 }
  0x4c   :  { %10001 = vmatpush3.bf16.msra.mxu1 %v11105_v19  ;;  %v11145_v12 = vld [vmem:[#allocation2 + $0x1f0] sm:$0xff]   ;;  %v11147_v14 = vld [vmem:[#allocation2 + $0x178] sm:$0xff]   ;;  %v11151_v19 = vld [vmem:[#allocation2 + $0x240] sm:$0xff]  }
  0x4d   :  { %10002 = vmatprep.subr.bf16.mxu1 %v11108_v25  ;;  %v11146_v13 = vld [vmem:[#allocation2 + $0x1b0] sm:$0xff]   ;;  %v11148_v15 = vld [vmem:[#allocation2 + $0x138] sm:$0xff]   ;;  %v11152_v20 = vld [vmem:[#allocation2 + $0x200] sm:$0xff]  }
  0x4e   :  { %9981 = vmatpush3.bf16.msra.mxu0 %v11107_v24  ;;  %v11149_v16 = vld [vmem:[#allocation2 + $0x1f8] sm:$0xff]   ;;  %v11153_v21 = vld [vmem:[#allocation2 + $0x2c0] sm:$0xff]   ;;  %v11155_v24 = vld [vmem:[#allocation2 + $0x248] sm:$0xff]  }
  0x4f   :  { %9982 = vmatprep.subr.bf16.mxu0 %v11110_v27  ;;  %v11150_v17 = vld [vmem:[#allocation2 + $0x1b8] sm:$0xff]   ;;  %v11154_v22 = vld [vmem:[#allocation2 + $0x280] sm:$0xff]   ;;  %v11156_v25 = vld [vmem:[#allocation2 + $0x208] sm:$0xff]  }
  0x50   :  { %10003 = vmatpush3.bf16.msra.mxu1 %v11109_v26  ;;  %v11157_v26 = vld [vmem:[#allocation2 + $0x2c8] sm:$0xff]   ;;  %v11159_v28 = vld [vmem:[#allocation2 + $0x250] sm:$0xff]   ;;  %v11167_v37 = vld [vmem:[#allocation2 + $0x260] sm:$0xff]  }
  0x51   :  { %10004 = vmatprep.subr.bf16.mxu1 %v11112_v31  ;;  %v11158_v27 = vld [vmem:[#allocation2 + $0x288] sm:$0xff]   ;;  %v11160_v29 = vld [vmem:[#allocation2 + $0x210] sm:$0xff]   ;;  %v11168_v38 = vld [vmem:[#allocation2 + $0x220] sm:$0xff]  }
  0x52   :  { %9983 = vmatpush3.bf16.msra.mxu0 %v11111_v30  ;;  %v11161_v30 = vld [vmem:[#allocation2 + $0x2d0] sm:$0xff]   ;;  %v11169_v39 = vld [vmem:[#allocation2 + $0x2e0] sm:$0xff]   ;;  %v11172_v42 = vld [vmem:[#allocation2 + $0x228] sm:$0xff]  }
  0x53   :  { %9984 = vmatprep.subr.bf16.mxu0 %v11114_v33  ;;  %v11162_v31 = vld [vmem:[#allocation2 + $0x290] sm:$0xff]   ;;  %v11164_v33 = vld [vmem:[#allocation2 + $0x218] sm:$0xff]   ;;  %v60_v52 = vld [vmem:[%s12332_s0 + $0x8] sm:$0xff] }
  0x54   :  { %10005 = vmatpush3.bf16.msra.mxu1 %v11113_v32  ;;  %v11163_v32 = vld [vmem:[#allocation2 + $0x258] sm:$0xff]   ;;  %v11175_v45 = vld [vmem:[#allocation2 + $0x270] sm:$0xff]  }
  0x55   :  { %10006 = vmatprep.subr.bf16.mxu1 %v11116_v36  ;;  %v11166_v36 = vld [vmem:[#allocation2 + $0x298] sm:$0xff]   ;;  %v11177_v47 = vld [vmem:[#allocation2 + $0x2f0] sm:$0xff]  }
  0x56   :  { %9985 = vmatpush3.bf16.msra.mxu0 %v11115_v35  ;;  %v11165_v35 = vld [vmem:[#allocation2 + $0x2d8] sm:$0xff]  }
  0x57   :  { %10014 = vmatprep.subr.bf16.mxu0 %v11119_v41  ;;  %v11171_v41 = vld [vmem:[#allocation2 + $0x268] sm:$0xff]   ;;  %v11179_v49 = vld [vmem:[#allocation2 + $0x278] sm:$0xff]  }
  0x58   :  { %10007 = vmatpush3.bf16.msra.mxu1 %v11118_v40  ;;  %v11170_v40 = vld [vmem:[#allocation2 + $0x2a0] sm:$0xff]  }
  0x59   :  { %10036 = vmatprep.subr.bf16.mxu1 %v11121_v46  ;;  %7105 = vmatmul.mubr.bf16.vlgmr.msra.gmra.mrb[0].mxu0 %v1683_v43  ;;  %v11173_v43 = vld [vmem:[#allocation2 + $0x2e8] sm:$0xff]   ;;  %v11176_v46 = vld [vmem:[#allocation2 + $0x230] sm:$0xff]  }
  0x5a   :  { %10015 = vmatpush3.bf16.msra.mxu0 %v11120_v44  ;;  %7184 = vmatprep.mubr.bf16.mxu0 %v1704_v54  ;;  %v11174_v44 = vld [vmem:[#allocation2 + $0x2a8] sm:$0xff]   ;;  %v11182_v54 = vld [vmem:[#allocation2 + $0x2b8] sm:$0xff]  }
  0x5b   :  { %7145 = vmatmul.mubr.bf16.vlgmr.msra.gmra.mrb[0].mxu1 %v1705_v50  ;;  %10016 = vmatprep.subr.bf16.mxu0 %v11123_v51  ;;  %v11180_v50 = vld [vmem:[#allocation2 + $0x238] sm:$0xff]  }
  0x5c   :  { %10037 = vmatpush3.bf16.msra.mxu1 %v11122_v48  ;;  %7224 = vmatprep.mubr.bf16.mxu1 %v1708_v57  ;;  %v11178_v48 = vld [vmem:[#allocation2 + $0x2b0] sm:$0xff]   ;;  %v11181_v51 = vld [vmem:[#allocation2 + $0x2f8] sm:$0xff]  }
  0x5d   :  { %10038 = vmatprep.subr.bf16.mxu1 %v11125_v55  ;;  %v1709_v55 = vcombine.high %v60_v52, %v60_v52 }
  0x5e   :  { %10017 = vmatpush3.bf16.msra.mxu0 %v11124_v53  ;;  %v1716_v53 = vrot.slane %v60_v52, %v12070_v34  ;;  %v11232_v52 = vld [vmem:[#allocation2 + $0x460] sm:$0xff]  }
  0x5f   :  { %10018 = vmatprep.subr.bf16.mxu0 %v11127_v58 }
  0x60   :  { %10039 = vmatpush3.bf16.msra.mxu1 %v11126_v56  ;;  %v11183_v56 = vld [vmem:[#allocation2 + $0x340] sm:$0xff]   ;;  %v1724_v57 = vcombine.high %v1716_v53, %v1716_v53  ;;  %v1732_v58 = vrot.slane %v1716_v53, %v12070_v34 }
  0x61   :  { %10040 = vmatprep.subr.bf16.mxu1 %v11129_v60  ;;  %v12092_v60 = vrot.slane %v1709_v55, %v12070_v34  ;;  %v11233_v53 = vld [vmem:[#allocation2 + $0x420] sm:$0xff]  }
  0x62   :  { %10019 = vmatpush3.bf16.msra.mxu0 %v11128_v59  ;;  %v11184_v59 = vld [vmem:[#allocation2 + $0x300] sm:$0xff]  }
  0x63   :  { %10020 = vmatprep.subr.bf16.mxu0 %v11131_v62  ;;  %v1746_v62 = vrot.slane %v1724_v57, %v12070_v34  ;;  %v11235_v55 = vld [vmem:[#allocation2 + $0x4a0] sm:$0xff]   ;;  %v11237_v57 = vld [vmem:[#allocation2 + $0x428] sm:$0xff]  }
  0x64   :  { %10041 = vmatpush3.bf16.msra.mxu1 %v11130_v61  ;;  %v11185_v61 = vld [vmem:[#allocation2 + $0x3c0] sm:$0xff]  }
  0x65   :  { %10042 = vmatprep.subr.bf16.mxu1 %v11133_v0  ;;  %v1725_v0 = vcombine.high %v12092_v60, %v12092_v60 }
  0x66   :  { %10021 = vmatpush3.bf16.msra.mxu0 %v11132_v63  ;;  %v11186_v63 = vld [vmem:[#allocation2 + $0x380] sm:$0xff]  }
  0x67   :  { %10022 = vmatprep.subr.bf16.mxu0 %v11135_v2  ;;  %v11187_v2 = vld [vmem:[#allocation2 + $0x348] sm:$0xff]  }
  0x68   :  { %10043 = vmatpush3.bf16.msra.mxu1 %v11134_v1  ;;  %v1754_v1 = vcombine.high %v1732_v58, %v1732_v58 }
  0x69   :  { %10044 = vmatprep.subr.bf16.mxu1 %v11137_v4  ;;  %v11188_v4 = vld [vmem:[#allocation2 + $0x308] sm:$0xff]  }
  0x6a   :  { %10023 = vmatpush3.bf16.msra.mxu0 %v11136_v3  ;;  %v1756_v3 = vcombine.high %v1746_v62, %v1746_v62 }
  0x6b   :  { %10024 = vmatprep.subr.bf16.mxu0 %v11139_v6  ;;  %v11189_v6 = vld [vmem:[#allocation2 + $0x3c8] sm:$0xff]  }
  0x6c   :  { %10045 = vmatpush3.bf16.msra.mxu1 %v11138_v5  ;;  %v1753_v5 = vrot.slane %v1725_v0, %v12070_v34  ;;  %v11244_v0 = vld [vmem:[#allocation2 + $0x478] sm:$0xff]  }
  0x6d   :  { %10046 = vmatprep.subr.bf16.mxu1 %v11141_v8 }
  0x6e   :  { %10025 = vmatpush3.bf16.msra.mxu0 %v11140_v7  ;;  %v11190_v7 = vld [vmem:[#allocation2 + $0x388] sm:$0xff]   ;;  %v1757_v8 = vcombine.high %v1753_v5, %v1753_v5 }
  0x6f   :  { %10026 = vmatprep.subr.bf16.mxu0 %v11143_v10  ;;  %v11192_v10 = vld [vmem:[#allocation2 + $0x310] sm:$0xff]  }
  0x70   :  { %10047 = vmatpush3.bf16.msra.mxu1 %v11142_v9  ;;  %v11191_v9 = vld [vmem:[#allocation2 + $0x350] sm:$0xff]  }
  0x71   :  { %10048 = vmatprep.subr.bf16.mxu1 %v11145_v12  ;;  %v11194_v12 = vld [vmem:[#allocation2 + $0x390] sm:$0xff]  }
  0x72   :  { %10027 = vmatpush3.bf16.msra.mxu0 %v11144_v11  ;;  %v11193_v11 = vld [vmem:[#allocation2 + $0x3d0] sm:$0xff]  }
  0x73   :  { %10028 = vmatprep.subr.bf16.mxu0 %v11147_v14  ;;  %v11196_v14 = vld [vmem:[#allocation2 + $0x318] sm:$0xff]  }
  0x74   :  { %10049 = vmatpush3.bf16.msra.mxu1 %v11146_v13  ;;  %v11195_v13 = vld [vmem:[#allocation2 + $0x358] sm:$0xff]  }
  0x75   :  { %10050 = vmatprep.subr.bf16.mxu1 %v11149_v16  ;;  %v11198_v16 = vld [vmem:[#allocation2 + $0x398] sm:$0xff]  }
  0x76   :  { %10029 = vmatpush3.bf16.msra.mxu0 %v11148_v15  ;;  %v11197_v15 = vld [vmem:[#allocation2 + $0x3d8] sm:$0xff]  }
  0x77   :  { %10058 = vmatprep.subr.bf16.mxu0 %v11151_v19  ;;  %v11201_v19 = vld [vmem:[#allocation2 + $0x3e0] sm:$0xff]  }
  0x78   :  { %10051 = vmatpush3.bf16.msra.mxu1 %v11150_v17  ;;  %v11199_v17 = vld [vmem:[#allocation2 + $0x360] sm:$0xff]  }
  0x79   :  { %7185 = vmatmul.mubr.bf16.vlgmr.msra.gmra.mrb[4].mxu0 %v1690_v18  ;;  %10080 = vmatprep.subr.bf16.mxu1 %v11153_v21  ;;  %v11200_v18 = vld [vmem:[#allocation2 + $0x320] sm:$0xff]   ;;  %v11203_v21 = vld [vmem:[#allocation2 + $0x368] sm:$0xff]  }
  0x7a   :  { %10059 = vmatpush3.bf16.msra.mxu0 %v11152_v20  ;;  %7264 = vmatprep.mubr.bf16.mxu0 %v1746_v62  ;;  %v11202_v20 = vld [vmem:[#allocation2 + $0x3a0] sm:$0xff]   ;;  %v11242_v62 = vld [vmem:[#allocation2 + $0x4f0] sm:$0xff]  }
  0x7b   :  { %7225 = vmatmul.mubr.bf16.vlgmr.msra.gmra.mrb[4].mxu1 %v1706_v23  ;;  %10060 = vmatprep.subr.bf16.mxu0 %v11155_v24  ;;  %v11205_v23 = vld [vmem:[#allocation2 + $0x3e8] sm:$0xff]  }
  0x7c   :  { %10081 = vmatpush3.bf16.msra.mxu1 %v11154_v22  ;;  %7304 = vmatprep.mubr.bf16.mxu1 %v1756_v3  ;;  %v11204_v22 = vld [vmem:[#allocation2 + $0x328] sm:$0xff]   ;;  %v61_v3 = vld [vmem:[%s12332_s0 + $0x10] sm:$0xff] }
  0x7d   :  { %10082 = vmatprep.subr.bf16.mxu1 %v11157_v26  ;;  %v11206_v24 = vld [vmem:[#allocation2 + $0x3a8] sm:$0xff]   ;;  %v11208_v26 = vld [vmem:[#allocation2 + $0x330] sm:$0xff]  }
  0x7e   :  { %10061 = vmatpush3.bf16.msra.mxu0 %v11156_v25  ;;  %v11207_v25 = vld [vmem:[#allocation2 + $0x370] sm:$0xff]  }
  0x7f   :  { %10062 = vmatprep.subr.bf16.mxu0 %v11159_v28  ;;  %v11210_v28 = vld [vmem:[#allocation2 + $0x3b0] sm:$0xff]  }
  0x80   :  { %10083 = vmatpush3.bf16.msra.mxu1 %v11158_v27  ;;  %v11209_v27 = vld [vmem:[#allocation2 + $0x3f0] sm:$0xff]  }
  0x81   :  { %10084 = vmatprep.subr.bf16.mxu1 %v11161_v30  ;;  %v11212_v30 = vld [vmem:[#allocation2 + $0x338] sm:$0xff]  }
  0x82   :  { %10063 = vmatpush3.bf16.msra.mxu0 %v11160_v29  ;;  %v11211_v29 = vld [vmem:[#allocation2 + $0x378] sm:$0xff]  }
  0x83   :  { %10064 = vmatprep.subr.bf16.mxu0 %v11163_v32  ;;  %v11215_v32 = vld [vmem:[#allocation2 + $0x3b8] sm:$0xff]  }
  0x84   :  { %10085 = vmatpush3.bf16.msra.mxu1 %v11162_v31  ;;  %v11213_v31 = vld [vmem:[#allocation2 + $0x3f8] sm:$0xff]  }
  0x85   :  { %10086 = vmatprep.subr.bf16.mxu1 %v11165_v35  ;;  %v11216_v35 = vld [vmem:[#allocation2 + $0x440] sm:$0xff]  }
  0x86   :  { %10065 = vmatpush3.bf16.msra.mxu0 %v11164_v33  ;;  %v1739_v33 = vrot.slane %v12092_v60, %v12070_v34  ;;  %v11240_v60 = vld [vmem:[#allocation2 + $0x470] sm:$0xff]  }
  0x87   :  { %10066 = vmatprep.subr.bf16.mxu0 %v11167_v37  ;;  %v11218_v37 = vld [vmem:[#allocation2 + $0x4c0] sm:$0xff]  }
  0x88   :  { %10087 = vmatpush3.bf16.msra.mxu1 %v11166_v36  ;;  %v11217_v36 = vld [vmem:[#allocation2 + $0x400] sm:$0xff]  }
  0x89   :  { %10088 = vmatprep.subr.bf16.mxu1 %v11169_v39  ;;  %v1755_v39 = vcombine.high %v1739_v33, %v1739_v33 }
  0x8a   :  { %10067 = vmatpush3.bf16.msra.mxu0 %v11168_v38  ;;  %v11219_v38 = vld [vmem:[#allocation2 + $0x480] sm:$0xff]  }
  0x8b   :  { %10068 = vmatprep.subr.bf16.mxu0 %v11171_v41  ;;  %v11221_v41 = vld [vmem:[#allocation2 + $0x408] sm:$0xff]  }
  0x8c   :  { %10089 = vmatpush3.bf16.msra.mxu1 %v11170_v40  ;;  %v11220_v40 = vld [vmem:[#allocation2 + $0x448] sm:$0xff]  }
  0x8d   :  { %10090 = vmatprep.subr.bf16.mxu1 %v11173_v43  ;;  %v11223_v43 = vld [vmem:[#allocation2 + $0x488] sm:$0xff]  }
  0x8e   :  { %10069 = vmatpush3.bf16.msra.mxu0 %v11172_v42  ;;  %v11222_v42 = vld [vmem:[#allocation2 + $0x4c8] sm:$0xff]  }
  0x8f   :  { %10070 = vmatprep.subr.bf16.mxu0 %v11175_v45  ;;  %v11225_v45 = vld [vmem:[#allocation2 + $0x410] sm:$0xff]  }
  0x90   :  { %10091 = vmatpush3.bf16.msra.mxu1 %v11174_v44  ;;  %v11224_v44 = vld [vmem:[#allocation2 + $0x450] sm:$0xff]  }
  0x91   :  { %10092 = vmatprep.subr.bf16.mxu1 %v11177_v47  ;;  %v11227_v47 = vld [vmem:[#allocation2 + $0x490] sm:$0xff]  }
  0x92   :  { %10071 = vmatpush3.bf16.msra.mxu0 %v11176_v46  ;;  %v11226_v46 = vld [vmem:[#allocation2 + $0x4d0] sm:$0xff]  }
  0x93   :  { %10072 = vmatprep.subr.bf16.mxu0 %v11179_v49  ;;  %v11229_v49 = vld [vmem:[#allocation2 + $0x418] sm:$0xff]  }
  0x94   :  { %10093 = vmatpush3.bf16.msra.mxu1 %v11178_v48  ;;  %v11228_v48 = vld [vmem:[#allocation2 + $0x458] sm:$0xff]  }
  0x95   :  { %10094 = vmatprep.subr.bf16.mxu1 %v11181_v51  ;;  %v11231_v51 = vld [vmem:[#allocation2 + $0x498] sm:$0xff]  }
  0x96   :  { %10073 = vmatpush3.bf16.msra.mxu0 %v11180_v50  ;;  %v11230_v50 = vld [vmem:[#allocation2 + $0x4d8] sm:$0xff]  }
  0x97   :  { %10102 = vmatprep.subr.bf16.mxu0 %v11183_v56  ;;  %v11236_v56 = vld [vmem:[#allocation2 + $0x468] sm:$0xff]  }
  0x98   :  { %10095 = vmatpush3.bf16.msra.mxu1 %v11182_v54  ;;  %v11234_v54 = vld [vmem:[#allocation2 + $0x4e0] sm:$0xff]  }
  0x99   :  { %7265 = vmatmul.mubr.bf16.vlgmr.msra.gmra.mrb[8].mxu0 %v1732_v58  ;;  %10124 = vmatprep.subr.bf16.mxu1 %v11185_v61  ;;  %v11238_v58 = vld [vmem:[#allocation2 + $0x4e8] sm:$0xff]   ;;  %v11241_v61 = vld [vmem:[#allocation2 + $0x430] sm:$0xff]  }
  0x9a   :  { %10103 = vmatpush3.bf16.msra.mxu0 %v11184_v59  ;;  %7344 = vmatprep.mubr.bf16.mxu0 %v1753_v5  ;;  %v11239_v59 = vld [vmem:[#allocation2 + $0x4a8] sm:$0xff]   ;;  %v11247_v5 = vld [vmem:[#allocation2 + $0x4b8] sm:$0xff]  }
  0x9b   :  { %7305 = vmatmul.mubr.bf16.vlgmr.msra.gmra.mrb[8].mxu1 %v1754_v1  ;;  %10104 = vmatprep.subr.bf16.mxu0 %v11187_v2  ;;  %v11245_v1 = vld [vmem:[#allocation2 + $0x438] sm:$0xff]  }
  0x9c   :  { %10125 = vmatpush3.bf16.msra.mxu1 %v11186_v63  ;;  %7384 = vmatprep.mubr.bf16.mxu1 %v1757_v8  ;;  %v11243_v63 = vld [vmem:[#allocation2 + $0x4b0] sm:$0xff]   ;;  %v11246_v2 = vld [vmem:[#allocation2 + $0x4f8] sm:$0xff]  }
  0x9d   :  { %10126 = vmatprep.subr.bf16.mxu1 %v11189_v6  ;;  %v1758_v6 = vcombine.high %v61_v3, %v61_v3 }
  0x9e   :  { %10105 = vmatpush3.bf16.msra.mxu0 %v11188_v4  ;;  %v1765_v4 = vrot.slane %v61_v3, %v12070_v34  ;;  %v11297_v3 = vld [vmem:[#allocation2 + $0x660] sm:$0xff]  }
  0x9f   :  { %10106 = vmatprep.subr.bf16.mxu0 %v11191_v9 }
  0xa0   :  { %10127 = vmatpush3.bf16.msra.mxu1 %v11190_v7  ;;  %v11248_v7 = vld [vmem:[#allocation2 + $0x540] sm:$0xff]   ;;  %v1773_v8 = vcombine.high %v1765_v4, %v1765_v4  ;;  %v1781_v9 = vrot.slane %v1765_v4, %v12070_v34 }
  0xa1   :  { %10128 = vmatprep.subr.bf16.mxu1 %v11193_v11  ;;  %v12106_v11 = vrot.slane %v1758_v6, %v12070_v34  ;;  %v11298_v4 = vld [vmem:[#allocation2 + $0x620] sm:$0xff]  }
  0xa2   :  { %10107 = vmatpush3.bf16.msra.mxu0 %v11192_v10  ;;  %v11249_v10 = vld [vmem:[#allocation2 + $0x500] sm:$0xff]  }
  0xa3   :  { %10108 = vmatprep.subr.bf16.mxu0 %v11195_v13  ;;  %v1795_v13 = vrot.slane %v1773_v8, %v12070_v34  ;;  %v11300_v6 = vld [vmem:[#allocation2 + $0x6a0] sm:$0xff]   ;;  %v11302_v8 = vld [vmem:[#allocation2 + $0x628] sm:$0xff]  }
  0xa4   :  { %10129 = vmatpush3.bf16.msra.mxu1 %v11194_v12  ;;  %v11250_v12 = vld [vmem:[#allocation2 + $0x5c0] sm:$0xff]  }
  0xa5   :  { %10130 = vmatprep.subr.bf16.mxu1 %v11197_v15  ;;  %v1774_v15 = vcombine.high %v12106_v11, %v12106_v11 }
  0xa6   :  { %10109 = vmatpush3.bf16.msra.mxu0 %v11196_v14  ;;  %v11251_v14 = vld [vmem:[#allocation2 + $0x580] sm:$0xff]  }
  0xa7   :  { %10110 = vmatprep.subr.bf16.mxu0 %v11199_v17  ;;  %v11252_v17 = vld [vmem:[#allocation2 + $0x548] sm:$0xff]  }
  0xa8   :  { %10131 = vmatpush3.bf16.msra.mxu1 %v11198_v16  ;;  %v1803_v16 = vcombine.high %v1781_v9, %v1781_v9 }
  0xa9   :  { %10132 = vmatprep.subr.bf16.mxu1 %v11201_v19  ;;  %v11253_v19 = vld [vmem:[#allocation2 + $0x508] sm:$0xff]  }
  0xaa   :  { %10111 = vmatpush3.bf16.msra.mxu0 %v11200_v18  ;;  %v1805_v18 = vcombine.high %v1795_v13, %v1795_v13 }
  0xab   :  { %10112 = vmatprep.subr.bf16.mxu0 %v11203_v21  ;;  %v11254_v21 = vld [vmem:[#allocation2 + $0x5c8] sm:$0xff]  }
  0xac   :  { %10133 = vmatpush3.bf16.msra.mxu1 %v11202_v20  ;;  %v1802_v20 = vrot.slane %v1774_v15, %v12070_v34  ;;  %v11309_v15 = vld [vmem:[#allocation2 + $0x678] sm:$0xff]  }
  0xad   :  { %10134 = vmatprep.subr.bf16.mxu1 %v11205_v23 }
  0xae   :  { %10113 = vmatpush3.bf16.msra.mxu0 %v11204_v22  ;;  %v11255_v22 = vld [vmem:[#allocation2 + $0x588] sm:$0xff]   ;;  %v1806_v23 = vcombine.high %v1802_v20, %v1802_v20 }
  0xaf   :  { %10114 = vmatprep.subr.bf16.mxu0 %v11207_v25  ;;  %v11257_v25 = vld [vmem:[#allocation2 + $0x510] sm:$0xff]  }
  0xb0   :  { %10135 = vmatpush3.bf16.msra.mxu1 %v11206_v24  ;;  %v11256_v24 = vld [vmem:[#allocation2 + $0x550] sm:$0xff]  }
  0xb1   :  { %10136 = vmatprep.subr.bf16.mxu1 %v11209_v27  ;;  %v11259_v27 = vld [vmem:[#allocation2 + $0x590] sm:$0xff]  }
  0xb2   :  { %10115 = vmatpush3.bf16.msra.mxu0 %v11208_v26  ;;  %v11258_v26 = vld [vmem:[#allocation2 + $0x5d0] sm:$0xff]  }
  0xb3   :  { %10116 = vmatprep.subr.bf16.mxu0 %v11211_v29  ;;  %v11261_v29 = vld [vmem:[#allocation2 + $0x518] sm:$0xff]  }
  0xb4   :  { %10137 = vmatpush3.bf16.msra.mxu1 %v11210_v28  ;;  %v11260_v28 = vld [vmem:[#allocation2 + $0x558] sm:$0xff]  }
  0xb5   :  { %10138 = vmatprep.subr.bf16.mxu1 %v11213_v31  ;;  %v11263_v31 = vld [vmem:[#allocation2 + $0x598] sm:$0xff]  }
  0xb6   :  { %10117 = vmatpush3.bf16.msra.mxu0 %v11212_v30  ;;  %v11262_v30 = vld [vmem:[#allocation2 + $0x5d8] sm:$0xff]  }
  0xb7   :  { %10146 = vmatprep.subr.bf16.mxu0 %v11216_v35  ;;  %v11266_v35 = vld [vmem:[#allocation2 + $0x5e0] sm:$0xff]  }
  0xb8   :  { %10139 = vmatpush3.bf16.msra.mxu1 %v11215_v32  ;;  %v11264_v32 = vld [vmem:[#allocation2 + $0x560] sm:$0xff]  }
  0xb9   :  { %7345 = vmatmul.mubr.bf16.vlgmr.msra.gmra.mrb[12].mxu0 %v1739_v33  ;;  %10168 = vmatprep.subr.bf16.mxu1 %v11218_v37  ;;  %v11265_v33 = vld [vmem:[#allocation2 + $0x520] sm:$0xff]   ;;  %v11268_v37 = vld [vmem:[#allocation2 + $0x568] sm:$0xff]  }
  0xba   :  { %10147 = vmatpush3.bf16.msra.mxu0 %v11217_v36  ;;  %7424 = vmatprep.mubr.bf16.mxu0 %v1795_v13  ;;  %v11267_v36 = vld [vmem:[#allocation2 + $0x5a0] sm:$0xff]   ;;  %v11307_v13 = vld [vmem:[#allocation2 + $0x6f0] sm:$0xff]  }
  0xbb   :  { %7385 = vmatmul.mubr.bf16.vlgmr.msra.gmra.mrb[12].mxu1 %v1755_v39  ;;  %10148 = vmatprep.subr.bf16.mxu0 %v11220_v40  ;;  %v11270_v39 = vld [vmem:[#allocation2 + $0x5e8] sm:$0xff]  }
  0xbc   :  { %10169 = vmatpush3.bf16.msra.mxu1 %v11219_v38  ;;  %7464 = vmatprep.mubr.bf16.mxu1 %v1805_v18  ;;  %v11269_v38 = vld [vmem:[#allocation2 + $0x528] sm:$0xff]   ;;  %v62_v18 = vld [vmem:[%s12332_s0 + $0x18] sm:$0xff] }
  0xbd   :  { %10170 = vmatprep.subr.bf16.mxu1 %v11222_v42  ;;  %v11271_v40 = vld [vmem:[#allocation2 + $0x5a8] sm:$0xff]   ;;  %v11273_v42 = vld [vmem:[#allocation2 + $0x530] sm:$0xff]  }
  0xbe   :  { %10149 = vmatpush3.bf16.msra.mxu0 %v11221_v41  ;;  %v11272_v41 = vld [vmem:[#allocation2 + $0x570] sm:$0xff]  }
  0xbf   :  { %10150 = vmatprep.subr.bf16.mxu0 %v11224_v44  ;;  %v11275_v44 = vld [vmem:[#allocation2 + $0x5b0] sm:$0xff]  }
  0xc0   :  { %10171 = vmatpush3.bf16.msra.mxu1 %v11223_v43  ;;  %v11274_v43 = vld [vmem:[#allocation2 + $0x5f0] sm:$0xff]  }
  0xc1   :  { %10172 = vmatprep.subr.bf16.mxu1 %v11226_v46  ;;  %v11277_v46 = vld [vmem:[#allocation2 + $0x538] sm:$0xff]  }
  0xc2   :  { %10151 = vmatpush3.bf16.msra.mxu0 %v11225_v45  ;;  %v11276_v45 = vld [vmem:[#allocation2 + $0x578] sm:$0xff]  }
  0xc3   :  { %10152 = vmatprep.subr.bf16.mxu0 %v11228_v48  ;;  %v11280_v48 = vld [vmem:[#allocation2 + $0x5b8] sm:$0xff]  }
  0xc4   :  { %10173 = vmatpush3.bf16.msra.mxu1 %v11227_v47  ;;  %v11278_v47 = vld [vmem:[#allocation2 + $0x5f8] sm:$0xff]  }
  0xc5   :  { %10174 = vmatprep.subr.bf16.mxu1 %v11230_v50  ;;  %v11281_v50 = vld [vmem:[#allocation2 + $0x640] sm:$0xff]  }
  0xc6   :  { %10153 = vmatpush3.bf16.msra.mxu0 %v11229_v49  ;;  %v1788_v49 = vrot.slane %v12106_v11, %v12070_v34  ;;  %v11305_v11 = vld [vmem:[#allocation2 + $0x670] sm:$0xff]  }
  0xc7   :  { %10154 = vmatprep.subr.bf16.mxu0 %v11232_v52  ;;  %v11283_v52 = vld [vmem:[#allocation2 + $0x6c0] sm:$0xff]  }
  0xc8   :  { %10175 = vmatpush3.bf16.msra.mxu1 %v11231_v51  ;;  %v11282_v51 = vld [vmem:[#allocation2 + $0x600] sm:$0xff]  }
  0xc9   :  { %10176 = vmatprep.subr.bf16.mxu1 %v11234_v54  ;;  %v1804_v54 = vcombine.high %v1788_v49, %v1788_v49 }
  0xca   :  { %10155 = vmatpush3.bf16.msra.mxu0 %v11233_v53  ;;  %v11284_v53 = vld [vmem:[#allocation2 + $0x680] sm:$0xff]  }
  0xcb   :  { %10156 = vmatprep.subr.bf16.mxu0 %v11236_v56  ;;  %v11286_v56 = vld [vmem:[#allocation2 + $0x608] sm:$0xff]  }
  0xcc   :  { %10177 = vmatpush3.bf16.msra.mxu1 %v11235_v55  ;;  %v11285_v55 = vld [vmem:[#allocation2 + $0x648] sm:$0xff]  }
  0xcd   :  { %10178 = vmatprep.subr.bf16.mxu1 %v11238_v58  ;;  %v11288_v58 = vld [vmem:[#allocation2 + $0x688] sm:$0xff]  }
  0xce   :  { %10157 = vmatpush3.bf16.msra.mxu0 %v11237_v57  ;;  %v11287_v57 = vld [vmem:[#allocation2 + $0x6c8] sm:$0xff]  }
  0xcf   :  { %10158 = vmatprep.subr.bf16.mxu0 %v11240_v60  ;;  %v11290_v60 = vld [vmem:[#allocation2 + $0x610] sm:$0xff]  }
  0xd0   :  { %10179 = vmatpush3.bf16.msra.mxu1 %v11239_v59  ;;  %v11289_v59 = vld [vmem:[#allocation2 + $0x650] sm:$0xff]  }
  0xd1   :  { %10180 = vmatprep.subr.bf16.mxu1 %v11242_v62  ;;  %v11292_v62 = vld [vmem:[#allocation2 + $0x690] sm:$0xff]  }
  0xd2   :  { %10159 = vmatpush3.bf16.msra.mxu0 %v11241_v61  ;;  %v11291_v61 = vld [vmem:[#allocation2 + $0x6d0] sm:$0xff]  }
  0xd3   :  { %10160 = vmatprep.subr.bf16.mxu0 %v11244_v0  ;;  %v11294_v0 = vld [vmem:[#allocation2 + $0x618] sm:$0xff]  }
  0xd4   :  { %10181 = vmatpush3.bf16.msra.mxu1 %v11243_v63  ;;  %v11293_v63 = vld [vmem:[#allocation2 + $0x658] sm:$0xff]  }
  0xd5   :  { %10182 = vmatprep.subr.bf16.mxu1 %v11246_v2  ;;  %v11296_v2 = vld [vmem:[#allocation2 + $0x698] sm:$0xff]  }
  0xd6   :  { %10161 = vmatpush3.bf16.msra.mxu0 %v11245_v1  ;;  %v11295_v1 = vld [vmem:[#allocation2 + $0x6d8] sm:$0xff]  }
  0xd7   :  { %10190 = vmatprep.subr.bf16.mxu0 %v11248_v7  ;;  %v11301_v7 = vld [vmem:[#allocation2 + $0x668] sm:$0xff]  }
  0xd8   :  { %10183 = vmatpush3.bf16.msra.mxu1 %v11247_v5  ;;  %v11299_v5 = vld [vmem:[#allocation2 + $0x6e0] sm:$0xff]  }
  0xd9   :  { %7425 = vmatmul.mubr.bf16.vlgmr.msra.gmra.mrb[16].mxu0 %v1781_v9  ;;  %10212 = vmatprep.subr.bf16.mxu1 %v11250_v12  ;;  %v11303_v9 = vld [vmem:[#allocation2 + $0x6e8] sm:$0xff]   ;;  %v11306_v12 = vld [vmem:[#allocation2 + $0x630] sm:$0xff]  }
  0xda   :  { %10191 = vmatpush3.bf16.msra.mxu0 %v11249_v10  ;;  %7504 = vmatprep.mubr.bf16.mxu0 %v1802_v20  ;;  %v11304_v10 = vld [vmem:[#allocation2 + $0x6a8] sm:$0xff]   ;;  %v11312_v20 = vld [vmem:[#allocation2 + $0x6b8] sm:$0xff]  }
  0xdb   :  { %7465 = vmatmul.mubr.bf16.vlgmr.msra.gmra.mrb[16].mxu1 %v1803_v16  ;;  %10192 = vmatprep.subr.bf16.mxu0 %v11252_v17  ;;  %v11310_v16 = vld [vmem:[#allocation2 + $0x638] sm:$0xff]  }
  0xdc   :  { %10213 = vmatpush3.bf16.msra.mxu1 %v11251_v14  ;;  %7544 = vmatprep.mubr.bf16.mxu1 %v1806_v23  ;;  %v11308_v14 = vld [vmem:[#allocation2 + $0x6b0] sm:$0xff]   ;;  %v11311_v17 = vld [vmem:[#allocation2 + $0x6f8] sm:$0xff]  }
  0xdd   :  { %10214 = vmatprep.subr.bf16.mxu1 %v11254_v21  ;;  %v1807_v21 = vcombine.high %v62_v18, %v62_v18 }
  0xde   :  { %10193 = vmatpush3.bf16.msra.mxu0 %v11253_v19  ;;  %v1814_v19 = vrot.slane %v62_v18, %v12070_v34 }
  0xdf   :  { %10194 = vmatprep.subr.bf16.mxu0 %v11256_v24 }
  0xe0   :  { %10215 = vmatpush3.bf16.msra.mxu1 %v11255_v22  ;;  %v11313_v22 = vld [vmem:[#allocation2 + $0x740] sm:$0xff]   ;;  %v1822_v23 = vcombine.high %v1814_v19, %v1814_v19  ;;  %v1830_v24 = vrot.slane %v1814_v19, %v12070_v34  ;;  %v11350_v19 = vld [vmem:[#allocation2 + $0x848] sm:$0xff]  }
  0xe1   :  { %10216 = vmatprep.subr.bf16.mxu1 %v11258_v26  ;;  %v11315_v26 = vld [vmem:[#allocation2 + $0x7c0] sm:$0xff]  }
  0xe2   :  { %10195 = vmatpush3.bf16.msra.mxu0 %v11257_v25  ;;  %v12120_v25 = vrot.slane %v1807_v21, %v12070_v34  ;;  %v11352_v21 = vld [vmem:[#allocation2 + $0x8c8] sm:$0xff]  }
  0xe3   :  { %10196 = vmatprep.subr.bf16.mxu0 %v11260_v28  ;;  %v11314_v28 = vld [vmem:[#allocation2 + $0x700] sm:$0xff]  }
  0xe4   :  { %10217 = vmatpush3.bf16.msra.mxu1 %v11259_v27  ;;  %v1844_v27 = vrot.slane %v1822_v23, %v12070_v34  ;;  %v11354_v23 = vld [vmem:[#allocation2 + $0x850] sm:$0xff]  }
  0xe5   :  { %10218 = vmatprep.subr.bf16.mxu1 %v11262_v30  ;;  %v1852_v30 = vcombine.high %v1830_v24, %v1830_v24 }
  0xe6   :  { %10197 = vmatpush3.bf16.msra.mxu0 %v11261_v29  ;;  %v1823_v29 = vcombine.high %v12120_v25, %v12120_v25 }
  0xe7   :  { %10198 = vmatprep.subr.bf16.mxu0 %v11264_v32  ;;  %v1854_v32 = vcombine.high %v1844_v27, %v1844_v27 }
  0xe8   :  { %10219 = vmatpush3.bf16.msra.mxu1 %v11263_v31  ;;  %v11317_v31 = vld [vmem:[#allocation2 + $0x748] sm:$0xff]  }
  0xe9   :  { %10220 = vmatprep.subr.bf16.mxu1 %v11266_v35  ;;  %v1851_v35 = vrot.slane %v1823_v29, %v12070_v34  ;;  %v11360_v29 = vld [vmem:[#allocation2 + $0x8d8] sm:$0xff]  }
  0xea   :  { %10199 = vmatpush3.bf16.msra.mxu0 %v11265_v33  ;;  %v11316_v33 = vld [vmem:[#allocation2 + $0x780] sm:$0xff]  }
  0xeb   :  { %10200 = vmatprep.subr.bf16.mxu0 %v11268_v37  ;;  %v11318_v37 = vld [vmem:[#allocation2 + $0x708] sm:$0xff]  }
  0xec   :  { %10221 = vmatpush3.bf16.msra.mxu1 %v11267_v36  ;;  %v11319_v36 = vld [vmem:[#allocation2 + $0x7c8] sm:$0xff]  }
  0xed   :  { %10222 = vmatprep.subr.bf16.mxu1 %v11270_v39  ;;  %v11321_v39 = vld [vmem:[#allocation2 + $0x750] sm:$0xff]  }
  0xee   :  { %10201 = vmatpush3.bf16.msra.mxu0 %v11269_v38  ;;  %v1855_v38 = vcombine.high %v1851_v35, %v1851_v35 }
  0xef   :  { %10202 = vmatprep.subr.bf16.mxu0 %v11272_v41  ;;  %v11323_v41 = vld [vmem:[#allocation2 + $0x7d0] sm:$0xff]  }
  0xf0   :  { %10223 = vmatpush3.bf16.msra.mxu1 %v11271_v40  ;;  %v11320_v40 = vld [vmem:[#allocation2 + $0x788] sm:$0xff]  }
  0xf1   :  { %10224 = vmatprep.subr.bf16.mxu1 %v11274_v43  ;;  %v11325_v43 = vld [vmem:[#allocation2 + $0x758] sm:$0xff]  }
  0xf2   :  { %10203 = vmatpush3.bf16.msra.mxu0 %v11273_v42  ;;  %v11322_v42 = vld [vmem:[#allocation2 + $0x710] sm:$0xff]  }
  0xf3   :  { %10204 = vmatprep.subr.bf16.mxu0 %v11276_v45  ;;  %v11327_v45 = vld [vmem:[#allocation2 + $0x7d8] sm:$0xff]  }
  0xf4   :  { %10225 = vmatpush3.bf16.msra.mxu1 %v11275_v44  ;;  %v11324_v44 = vld [vmem:[#allocation2 + $0x790] sm:$0xff]  }
  0xf5   :  { %10226 = vmatprep.subr.bf16.mxu1 %v11278_v47  ;;  %v11329_v47 = vld [vmem:[#allocation2 + $0x760] sm:$0xff]  }
  0xf6   :  { %10205 = vmatpush3.bf16.msra.mxu0 %v11277_v46  ;;  %v11326_v46 = vld [vmem:[#allocation2 + $0x718] sm:$0xff]  }
  0xf7   :  { %10234 = vmatprep.subr.bf16.mxu0 %v11281_v50  ;;  %v11330_v50 = vld [vmem:[#allocation2 + $0x720] sm:$0xff]  }
  0xf8   :  { %10227 = vmatpush3.bf16.msra.mxu1 %v11280_v48  ;;  %v11328_v48 = vld [vmem:[#allocation2 + $0x798] sm:$0xff]  }
  0xf9   :  { %7505 = vmatmul.mubr.bf16.vlgmr.msra.gmra.mrb[20].mxu0 %v1788_v49  ;;  %10256 = vmatprep.subr.bf16.mxu1 %v11283_v52  ;;  %v11331_v49 = vld [vmem:[#allocation2 + $0x7e0] sm:$0xff]  }
  0xfa   :  { %10235 = vmatpush3.bf16.msra.mxu0 %v11282_v51  ;;  %7584 = vmatprep.mubr.bf16.mxu0 %v1844_v27  ;;  %v11333_v51 = vld [vmem:[#allocation2 + $0x768] sm:$0xff]   ;;  %v11332_v52 = vld [vmem:[#allocation2 + $0x7a0] sm:$0xff]   ;;  %v11358_v27 = vld [vmem:[#allocation2 + $0x858] sm:$0xff]  }
  0xfb   :  { %7545 = vmatmul.mubr.bf16.vlgmr.msra.gmra.mrb[20].mxu1 %v1804_v54  ;;  %10236 = vmatprep.subr.bf16.mxu0 %v11285_v55  ;;  %v9175_v54 = vld [vmem:[#allocation5] ss:$0 sm:$0xff]  ;;  %v11334_v55 = vld [vmem:[#allocation2 + $0x728] sm:$0xff]  }
  0xfc   :  { %10257 = vmatpush3.bf16.msra.mxu1 %v11284_v53  ;;  %7624 = vmatprep.mubr.bf16.mxu1 %v1854_v32  ;;  %v11335_v53 = vld [vmem:[#allocation2 + $0x7e8] sm:$0xff]   ;;  %v11363_v32 = vld [vmem:[#allocation2 + $0x820] sm:$0xff]  }
  0xfd   :  { %10258 = vmatprep.subr.bf16.mxu1 %v11287_v57  ;;  %v11337_v57 = vld [vmem:[#allocation2 + $0x770] sm:$0xff]  }
  0xfe   :  { %10237 = vmatpush3.bf16.msra.mxu0 %v11286_v56 }
  0xff   :  { %10238 = vmatprep.subr.bf16.mxu0 %v11289_v59  ;;  %v11336_v59 = vld [vmem:[#allocation2 + $0x7a8] sm:$0xff]  }
 0x100   :  { %10259 = vmatpush3.bf16.msra.mxu1 %v11288_v58 }
 0x101   :  { %10260 = vmatprep.subr.bf16.mxu1 %v11291_v61 }
 0x102   :  { %10239 = vmatpush3.bf16.msra.mxu0 %v11290_v60 }
 0x103   :  { %10240 = vmatprep.subr.bf16.mxu0 %v11293_v63  ;;  %v11338_v63 = vld [vmem:[#allocation2 + $0x730] sm:$0xff]  }
 0x104   :  { %10261 = vmatpush3.bf16.msra.mxu1 %v11292_v62 }
 0x105   :  { %10262 = vmatprep.subr.bf16.mxu1 %v11295_v1 }
 0x106   :  { %10241 = vmatpush3.bf16.msra.mxu0 %v11294_v0  ;;  %v11339_v0 = vld [vmem:[#allocation2 + $0x7f0] sm:$0xff]  }
 0x107   :  { %10242 = vmatprep.subr.bf16.mxu0 %v11297_v3  ;;  %v11340_v3 = vld [vmem:[#allocation2 + $0x7b0] sm:$0xff]  }
 0x108   :  { %10263 = vmatpush3.bf16.msra.mxu1 %v11296_v2 }
 0x109   :  { %10264 = vmatprep.subr.bf16.mxu1 %v11299_v5 }
 0x10a   :  { %10243 = vmatpush3.bf16.msra.mxu0 %v11298_v4 }
 0x10b   :  { %10244 = vmatprep.subr.bf16.mxu0 %v11301_v7 }
 0x10c   :  { %10265 = vmatpush3.bf16.msra.mxu1 %v11300_v6  ;;  %v11341_v6 = vld [vmem:[#allocation2 + $0x778] sm:$0xff]  }
 0x10d   :  { %10266 = vmatprep.subr.bf16.mxu1 %v11303_v9 }
 0x10e   :  { %10245 = vmatpush3.bf16.msra.mxu0 %v11302_v8  ;;  %v11342_v8 = vld [vmem:[#allocation2 + $0x738] sm:$0xff]  }
 0x10f   :  { %10246 = vmatprep.subr.bf16.mxu0 %v11305_v11  ;;  %v11343_v11 = vld [vmem:[#allocation2 + $0x7f8] sm:$0xff]  }
 0x110   :  { %10267 = vmatpush3.bf16.msra.mxu1 %v11304_v10 }
 0x111   :  { %10268 = vmatprep.subr.bf16.mxu1 %v11307_v13  ;;  %v1837_v13 = vrot.slane %v12120_v25, %v12070_v34  ;;  %v11356_v25 = vld [vmem:[#allocation2 + $0x8d0] sm:$0xff]  }
 0x112   :  { %10247 = vmatpush3.bf16.msra.mxu0 %v11306_v12  ;;  %v11345_v12 = vld [vmem:[#allocation2 + $0x7b8] sm:$0xff]  }
 0x113   :  { %10248 = vmatprep.subr.bf16.mxu0 %v11309_v15  ;;  %v11347_v15 = vld [vmem:[#allocation2 + $0x800] sm:$0xff]   ;;  %v1853_v18 = vcombine.high %v1837_v13, %v1837_v13 }
 0x114   :  { %10269 = vmatpush3.bf16.msra.mxu1 %v11308_v14  ;;  %v11346_v14 = vld [vmem:[#allocation2 + $0x840] sm:$0xff]  }
 0x115   :  { %10270 = vmatprep.subr.bf16.mxu1 %v11311_v17  ;;  %v11349_v17 = vld [vmem:[#allocation2 + $0x880] sm:$0xff]  }
 0x116   :  { %10249 = vmatpush3.bf16.msra.mxu0 %v11310_v16  ;;  %v11348_v16 = vld [vmem:[#allocation2 + $0x8c0] sm:$0xff]  }
 0x117   :  { %10278 = vmatprep.subr.bf16.mxu0 %v11313_v22  ;;  %v11353_v22 = vld [vmem:[#allocation2 + $0x888] sm:$0xff]  }
 0x118   :  { %10271 = vmatpush3.bf16.msra.mxu1 %v11312_v20  ;;  %v11351_v20 = vld [vmem:[#allocation2 + $0x808] sm:$0xff]  }
 0x119   :  { %10300 = vmatprep.subr.bf16.mxu1 %v11315_v26  ;;  %7585 = vmatmul.mubr.bf16.vlgmr.msra.gmra.mrb[24].mxu0 %v1830_v24  ;;  %v11355_v24 = vld [vmem:[#allocation2 + $0x810] sm:$0xff]  }
 0x11a   :  { %10279 = vmatpush3.bf16.msra.mxu0 %v11314_v28  ;;  %7664 = vmatprep.mubr.bf16.mxu0 %v1851_v35  ;;  %v11357_v26 = vld [vmem:[#allocation2 + $0x890] sm:$0xff]   ;;  %v11359_v28 = vld [vmem:[#allocation2 + $0x818] sm:$0xff]   ;;  %v11365_v35 = vld [vmem:[#allocation2 + $0x8a0] sm:$0xff]  }
 0x11b   :  { %7625 = vmatmul.mubr.bf16.vlgmr.msra.gmra.mrb[24].mxu1 %v1852_v30  ;;  %10280 = vmatprep.subr.bf16.mxu0 %v11317_v31  ;;  %v11361_v30 = vld [vmem:[#allocation2 + $0x898] sm:$0xff]   ;;  %v11362_v31 = vld [vmem:[#allocation2 + $0x860] sm:$0xff]  }
 0x11c   :  { %10301 = vmatpush3.bf16.msra.mxu1 %v11316_v33  ;;  %7704 = vmatprep.mubr.bf16.mxu1 %v1855_v38  ;;  %v11364_v33 = vld [vmem:[#allocation2 + $0x8e0] sm:$0xff]   ;;  %v11368_v38 = vld [vmem:[#allocation2 + $0x8e8] sm:$0xff]  }
 0x11d   :  { %10302 = vmatprep.subr.bf16.mxu1 %v11319_v36  ;;  %v11366_v36 = vld [vmem:[#allocation2 + $0x868] sm:$0xff]  }
 0x11e   :  { %10281 = vmatpush3.bf16.msra.mxu0 %v11318_v37  ;;  %v11367_v37 = vld [vmem:[#allocation2 + $0x828] sm:$0xff]  }
 0x11f   :  { %10282 = vmatprep.subr.bf16.mxu0 %v11321_v39  ;;  %v11369_v39 = vld [vmem:[#allocation2 + $0x8a8] sm:$0xff]  }
 0x120   :  { %10303 = vmatpush3.bf16.msra.mxu1 %v11320_v40 }
 0x121   :  { %10304 = vmatprep.subr.bf16.mxu1 %v11323_v41  ;;  %v11370_v41 = vld [vmem:[#allocation2 + $0x870] sm:$0xff]  }
 0x122   :  { %10283 = vmatpush3.bf16.msra.mxu0 %v11322_v42 }
 0x123   :  { %10284 = vmatprep.subr.bf16.mxu0 %v11325_v43  ;;  %v11371_v43 = vld [vmem:[#allocation2 + $0x830] sm:$0xff]  }
 0x124   :  { %10305 = vmatpush3.bf16.msra.mxu1 %v11324_v44 }
 0x125   :  { %10306 = vmatprep.subr.bf16.mxu1 %v11327_v45 }
 0x126   :  { %10285 = vmatpush3.bf16.msra.mxu0 %v11326_v46 }
 0x127   :  { %10286 = vmatprep.subr.bf16.mxu0 %v11329_v47 }
 0x128   :  { %10307 = vmatpush3.bf16.msra.mxu1 %v11328_v48 }
 0x129   :  { %10308 = vmatprep.subr.bf16.mxu1 %v11331_v49  ;;  %v11372_v49 = vld [vmem:[#allocation2 + $0x8f0] sm:$0xff]  }
 0x12a   :  { %10287 = vmatpush3.bf16.msra.mxu0 %v11330_v50  ;;  %v11373_v50 = vld [vmem:[#allocation2 + $0x8b0] sm:$0xff]  }
 0x12b   :  { %10288 = vmatprep.subr.bf16.mxu0 %v11333_v51 }
 0x12c   :  { %v9986_v56 = vpop.f32.mrb[0].mxu0  ;;  %10309 = vmatpush3.bf16.msra.mxu1 %v11332_v52 }
 0x12d   :  { %v9987_v58 = vpop.f32.mrb[1].mxu0  ;;  %10310 = vmatprep.subr.bf16.mxu1 %v11335_v53  ;;  %v11374_v53 = vld [vmem:[#allocation2 + $0x878] sm:$0xff]  }
 0x12e   :  { %v9988_v60 = vadd.f32 %v9987_v58, %v9986_v56  ;;  %v9989_v61 = vpop.f32.mrb[2].mxu0  ;;  %v10008_v62 = vpop.f32.mrb[0].mxu1  ;;  %10289 = vmatpush3.bf16.msra.mxu0 %v11334_v55  ;;  %v11375_v56 = vld [vmem:[#allocation2 + $0x838] sm:$0xff]  }
 0x12f   :  { %v9990_v1 = vpop.f32.mrb[3].mxu0  ;;  %v10009_v2 = vpop.f32.mrb[1].mxu1  ;;  %10290 = vmatprep.subr.bf16.mxu0 %v11337_v57  ;;  %v11376_v58 = vld [vmem:[#allocation2 + $0x8f8] sm:$0xff]  }
 0x130   :  { %v7107_v4 = vadd.f32 %v9988_v60, %v9175_v54  ;;  %v10010_v5 = vadd.f32 %v10009_v2, %v10008_v62  ;;  %v10011_v7 = vpop.f32.mrb[2].mxu1  ;;  %10311 = vmatpush3.bf16.msra.mxu1 %v11336_v59  ;;  %v63_v59 = vld [vmem:[%s12332_s0 + $0x20] sm:$0xff]  ;;  %v11377_v61 = vld [vmem:[#allocation2 + $0x8b8] sm:$0xff]  }
 0x131   :  { %v10012_v9 = vpop.f32.mrb[3].mxu1  ;;  %10312 = vmatprep.subr.bf16.mxu1 %v11339_v0  ;;  %v1863_v60 = vrot.slane %v63_v59, %v12070_v34  ;;  %v1856_v62 = vcombine.high %v63_v59, %v63_v59  ;;  %v11379_v2 = vld [vmem:[#allocation2 + $0x900] sm:$0xff]   ;;  %v11415_v59 = vld [vmem:[#allocation2 + $0xa48] sm:$0xff]  }
 0x132   :  { %v12126_v10 = vadd.f32 %v10010_v5, %v7107_v4  ;;  %10291 = vmatpush3.bf16.msra.mxu0 %v11338_v63  ;;  %v11378_v63 = vld [vmem:[#allocation2 + $0x940] sm:$0xff]   ;;  %v11382_v9 = vld [vmem:[#allocation2 + $0x948] sm:$0xff]  }
 0x133   :  { %10292 = vmatprep.subr.bf16.mxu0 %v11341_v6  ;;  %v1871_v0 = vcombine.high %v1863_v60, %v1863_v60  ;;  %v1879_v1 = vrot.slane %v1863_v60, %v12070_v34  ;;  %v11380_v4 = vld [vmem:[#allocation2 + $0x9c0] sm:$0xff]   ;;  %v11416_v60 = vld [vmem:[#allocation2 + $0xa08] sm:$0xff]  }
 0x134   :  { %10313 = vmatpush3.bf16.msra.mxu1 %v11340_v3  ;;  %v12139_v3 = vrot.slane %v1856_v62, %v12070_v34  ;;  %v11381_v6 = vld [vmem:[#allocation2 + $0x980] sm:$0xff]   ;;  %v11418_v62 = vld [vmem:[#allocation2 + $0xa88] sm:$0xff]  }
 0x135   :  { %10314 = vmatprep.subr.bf16.mxu1 %v11343_v11  ;;  %v1893_v5 = vrot.slane %v1871_v0, %v12070_v34  ;;  %v11383_v11 = vld [vmem:[#allocation2 + $0x908] sm:$0xff]   ;;  %v11420_v0 = vld [vmem:[#allocation2 + $0xa10] sm:$0xff]  }
 0x136   :  { %10293 = vmatpush3.bf16.msra.mxu0 %v11342_v8  ;;  %v1872_v7 = vcombine.high %v12139_v3, %v12139_v3  ;;  %v1901_v8 = vcombine.high %v1879_v1, %v1879_v1 }
 0x137   :  { %10322 = vmatprep.subr.bf16.mxu0 %v11346_v14  ;;  %v11385_v14 = vld [vmem:[#allocation2 + $0x988] sm:$0xff]  }
 0x138   :  { %10315 = vmatpush3.bf16.msra.mxu1 %v11345_v12  ;;  %v1900_v12 = vrot.slane %v1872_v7, %v12070_v34  ;;  %v11427_v7 = vld [vmem:[#allocation2 + $0xa60] sm:$0xff]  }
 0x139   :  { %7665 = vmatmul.mubr.bf16.vlgmr.msra.gmra.mrb[28].mxu0 %v1837_v13  ;;  %10344 = vmatprep.subr.bf16.mxu1 %v11348_v16  ;;  %v11384_v13 = vld [vmem:[#allocation2 + $0x9c8] sm:$0xff]   ;;  %v11386_v16 = vld [vmem:[#allocation2 + $0x950] sm:$0xff]  }
 0x13a   :  { %10323 = vmatpush3.bf16.msra.mxu0 %v11347_v15  ;;  %7744 = vmatprep.mubr.bf16.mxu0 %v1893_v5  ;;  %v1904_v15 = vcombine.high %v1900_v12, %v1900_v12 }
 0x13b   :  { %7705 = vmatmul.mubr.bf16.vlgmr.msra.gmra.mrb[28].mxu1 %v1853_v18  ;;  %10324 = vmatprep.subr.bf16.mxu0 %v11350_v19  ;;  %v11388_v18 = vld [vmem:[#allocation2 + $0x9d0] sm:$0xff]  }
 0x13c   :  { %10345 = vmatpush3.bf16.msra.mxu1 %v11349_v17  ;;  %v11387_v17 = vld [vmem:[#allocation2 + $0x910] sm:$0xff]  }
 0x13d   :  { %10346 = vmatprep.subr.bf16.mxu1 %v11352_v21  ;;  %v11389_v19 = vld [vmem:[#allocation2 + $0x990] sm:$0xff]   ;;  %v11391_v21 = vld [vmem:[#allocation2 + $0x918] sm:$0xff]  }
 0x13e   :  { %10325 = vmatpush3.bf16.msra.mxu0 %v11351_v20  ;;  %v11390_v20 = vld [vmem:[#allocation2 + $0x958] sm:$0xff]  }
 0x13f   :  { %10326 = vmatprep.subr.bf16.mxu0 %v11354_v23  ;;  %v11393_v23 = vld [vmem:[#allocation2 + $0x998] sm:$0xff]  }
 0x140   :  { %10347 = vmatpush3.bf16.msra.mxu1 %v11353_v22  ;;  %v11392_v22 = vld [vmem:[#allocation2 + $0x9d8] sm:$0xff]  }
 0x141   :  { %10348 = vmatprep.subr.bf16.mxu1 %v11356_v25  ;;  %v11395_v25 = vld [vmem:[#allocation2 + $0x920] sm:$0xff]  }
 0x142   :  { %10327 = vmatpush3.bf16.msra.mxu0 %v11355_v24  ;;  %v11394_v24 = vld [vmem:[#allocation2 + $0x960] sm:$0xff]  }
 0x143   :  { %10328 = vmatprep.subr.bf16.mxu0 %v11358_v27  ;;  %v11397_v27 = vld [vmem:[#allocation2 + $0x9a0] sm:$0xff]  }
 0x144   :  { %10349 = vmatpush3.bf16.msra.mxu1 %v11357_v26  ;;  %v11396_v26 = vld [vmem:[#allocation2 + $0x9e0] sm:$0xff]  }
 0x145   :  { %10350 = vmatprep.subr.bf16.mxu1 %v11360_v29  ;;  %v11399_v29 = vld [vmem:[#allocation2 + $0x928] sm:$0xff]  }
 0x146   :  { %10329 = vmatpush3.bf16.msra.mxu0 %v11359_v28  ;;  %v11398_v28 = vld [vmem:[#allocation2 + $0x968] sm:$0xff]  }
 0x147   :  { %10330 = vmatprep.subr.bf16.mxu0 %v11362_v31 }
 0x148   :  { %10351 = vmatpush3.bf16.msra.mxu1 %v11361_v30  ;;  %v11400_v30 = vld [vmem:[#allocation2 + $0x9e8] sm:$0xff]  }
 0x149   :  { %10352 = vmatprep.subr.bf16.mxu1 %v11364_v33 }
 0x14a   :  { %10331 = vmatpush3.bf16.msra.mxu0 %v11363_v32  ;;  %v11401_v32 = vld [vmem:[#allocation2 + $0x9a8] sm:$0xff]  }
 0x14b   :  { %10332 = vmatprep.subr.bf16.mxu0 %v11366_v36 }
 0x14c   :  { %v10030_v40 = vpop.f32.mrb[4].mxu0  ;;  %10353 = vmatpush3.bf16.msra.mxu1 %v11365_v35  ;;  %v11402_v35 = vld [vmem:[#allocation2 + $0x970] sm:$0xff]  }
 0x14d   :  { %v10031_v42 = vpop.f32.mrb[5].mxu0  ;;  %10354 = vmatprep.subr.bf16.mxu1 %v11368_v38 }
 0x14e   :  { %v10032_v44 = vadd.f32 %v10031_v42, %v10030_v40  ;;  %v10033_v45 = vpop.f32.mrb[6].mxu0  ;;  %v10052_v46 = vpop.f32.mrb[4].mxu1  ;;  %10333 = vmatpush3.bf16.msra.mxu0 %v11367_v37  ;;  %v11404_v40 = vld [vmem:[#allocation2 + $0x9f0] sm:$0xff]  }
 0x14f   :  { %v10034_v47 = vpop.f32.mrb[7].mxu0  ;;  %v10053_v48 = vpop.f32.mrb[5].mxu1  ;;  %10334 = vmatprep.subr.bf16.mxu0 %v11370_v41  ;;  %v11405_v45 = vld [vmem:[#allocation2 + $0x9b0] sm:$0xff]  }
 0x150   :  { %v7187_v51 = vadd.f32 %v10032_v44, %v12126_v10  ;;  %v10054_v52 = vadd.f32 %v10053_v48, %v10052_v46  ;;  %10355 = vmatpush3.bf16.msra.mxu1 %v11369_v39  ;;  %v10055_v54 = vpop.f32.mrb[6].mxu1  ;;  %v1903_v10 = vcombine.high %v1893_v5, %v1893_v5  ;;  %v11403_v39 = vld [vmem:[#allocation2 + $0x930] sm:$0xff]   ;;  %v11406_v47 = vld [vmem:[#allocation2 + $0x978] sm:$0xff]  }
 0x151   :  { %10356 = vmatprep.subr.bf16.mxu1 %v11372_v49  ;;  %v10056_v57 = vpop.f32.mrb[7].mxu1  ;;  %v11411_v54 = vld [vmem:[#allocation2 + $0xa40] sm:$0xff]   ;;  %v11425_v5 = vld [vmem:[#allocation2 + $0xad8] sm:$0xff]  }
 0x152   :  { %v12131_v55 = vadd.f32 %v10054_v52, %v7187_v51  ;;  %10335 = vmatpush3.bf16.msra.mxu0 %v11371_v43  ;;  %7784 = vmatprep.mubr.bf16.mxu1 %v1903_v10  ;;  %v11408_v51 = vld [vmem:[#allocation2 + $0x9f8] sm:$0xff]   ;;  %v11414_v57 = vld [vmem:[#allocation2 + $0xa80] sm:$0xff]  }
 0x153   :  { %10336 = vmatprep.subr.bf16.mxu0 %v11374_v53  ;;  %v11410_v52 = vld [vmem:[#allocation2 + $0x9b8] sm:$0xff]   ;;  %v1886_v53 = vrot.slane %v12139_v3, %v12070_v34  ;;  %v11430_v10 = vld [vmem:[#allocation2 + $0xaa0] sm:$0xff]  }
 0x154   :  { %10357 = vmatpush3.bf16.msra.mxu1 %v11373_v50  ;;  %v11407_v50 = vld [vmem:[#allocation2 + $0x938] sm:$0xff]  }
 0x155   :  { %10358 = vmatprep.subr.bf16.mxu1 %v11376_v58  ;;  %v1902_v58 = vcombine.high %v1886_v53, %v1886_v53  ;;  %v11423_v3 = vld [vmem:[#allocation2 + $0xa58] sm:$0xff]  }
 0x156   :  { %10337 = vmatpush3.bf16.msra.mxu0 %v11375_v56  ;;  %v11413_v56 = vld [vmem:[#allocation2 + $0xac0] sm:$0xff]  }
 0x157   :  { %10366 = vmatprep.subr.bf16.mxu0 %v11378_v63  ;;  %v11419_v63 = vld [vmem:[#allocation2 + $0xa50] sm:$0xff]  }
 0x158   :  { %10359 = vmatpush3.bf16.msra.mxu1 %v11377_v61  ;;  %v11417_v61 = vld [vmem:[#allocation2 + $0xac8] sm:$0xff]  }
 0x159   :  { %10388 = vmatprep.subr.bf16.mxu1 %v11380_v4  ;;  %7745 = vmatmul.mubr.bf16.vlgmr.msra.gmra.mrb[32].mxu0 %v1879_v1  ;;  %v11421_v1 = vld [vmem:[#allocation2 + $0xad0] sm:$0xff]   ;;  %v11424_v4 = vld [vmem:[#allocation2 + $0xa18] sm:$0xff]  }
 0x15a   :  { %10367 = vmatpush3.bf16.msra.mxu0 %v11379_v2  ;;  %7824 = vmatprep.mubr.bf16.mxu0 %v1900_v12  ;;  %v11422_v2 = vld [vmem:[#allocation2 + $0xa90] sm:$0xff]   ;;  %v11432_v12 = vld [vmem:[#allocation2 + $0xa28] sm:$0xff]  }
 0x15b   :  { %7785 = vmatmul.mubr.bf16.vlgmr.msra.gmra.mrb[32].mxu1 %v1901_v8  ;;  %10368 = vmatprep.subr.bf16.mxu0 %v11382_v9  ;;  %v11428_v8 = vld [vmem:[#allocation2 + $0xa20] sm:$0xff]  }
 0x15c   :  { %10389 = vmatpush3.bf16.msra.mxu1 %v11381_v6  ;;  %7864 = vmatprep.mubr.bf16.mxu1 %v1904_v15  ;;  %v11426_v6 = vld [vmem:[#allocation2 + $0xa98] sm:$0xff]   ;;  %v11429_v9 = vld [vmem:[#allocation2 + $0xae0] sm:$0xff]   ;;  %v11434_v15 = vld [vmem:[#allocation2 + $0xaa8] sm:$0xff]  }
 0x15d   :  { %10390 = vmatprep.subr.bf16.mxu1 %v11384_v13  ;;  %v11433_v13 = vld [vmem:[#allocation2 + $0xae8] sm:$0xff]  }
 0x15e   :  { %10369 = vmatpush3.bf16.msra.mxu0 %v11383_v11  ;;  %v11431_v11 = vld [vmem:[#allocation2 + $0xa68] sm:$0xff]  }
 0x15f   :  { %10370 = vmatprep.subr.bf16.mxu0 %v11386_v16 }
 0x160   :  { %10391 = vmatpush3.bf16.msra.mxu1 %v11385_v14 }
 0x161   :  { %10392 = vmatprep.subr.bf16.mxu1 %v11388_v18 }
 0x162   :  { %10371 = vmatpush3.bf16.msra.mxu0 %v11387_v17  ;;  %v11435_v17 = vld [vmem:[#allocation2 + $0xa70] sm:$0xff]  }
 0x163   :  { %10372 = vmatprep.subr.bf16.mxu0 %v11390_v20 }
 0x164   :  { %10393 = vmatpush3.bf16.msra.mxu1 %v11389_v19 }
 0x165   :  { %10394 = vmatprep.subr.bf16.mxu1 %v11392_v22 }
 0x166   :  { %10373 = vmatpush3.bf16.msra.mxu0 %v11391_v21 }
 0x167   :  { %10374 = vmatprep.subr.bf16.mxu0 %v11394_v24  ;;  %v11437_v24 = vld [vmem:[#allocation2 + $0xaf0] sm:$0xff]  }
 0x168   :  { %10395 = vmatpush3.bf16.msra.mxu1 %v11393_v23  ;;  %v11436_v23 = vld [vmem:[#allocation2 + $0xa30] sm:$0xff]  }
 0x169   :  { %10396 = vmatprep.subr.bf16.mxu1 %v11396_v26 }
 0x16a   :  { %10375 = vmatpush3.bf16.msra.mxu0 %v11395_v25 }
 0x16b   :  { %10376 = vmatprep.subr.bf16.mxu0 %v11398_v28 }
 0x16c   :  { %v10074_v31 = vpop.f32.mrb[8].mxu0  ;;  %10397 = vmatpush3.bf16.msra.mxu1 %v11397_v27  ;;  %v11438_v27 = vld [vmem:[#allocation2 + $0xab0] sm:$0xff]  }
 0x16d   :  { %v10075_v33 = vpop.f32.mrb[9].mxu0  ;;  %10398 = vmatprep.subr.bf16.mxu1 %v11400_v30  ;;  %v11439_v30 = vld [vmem:[#allocation2 + $0xa78] sm:$0xff]  }
 0x16e   :  { %v10076_v36 = vadd.f32 %v10075_v33, %v10074_v31  ;;  %v10077_v37 = vpop.f32.mrb[10].mxu0  ;;  %v10096_v38 = vpop.f32.mrb[8].mxu1  ;;  %10377 = vmatpush3.bf16.msra.mxu0 %v11399_v29  ;;  %v11441_v33 = vld [vmem:[#allocation2 + $0xaf8] sm:$0xff]  }
 0x16f   :  { %v10078_v41 = vpop.f32.mrb[11].mxu0  ;;  %v10097_v42 = vpop.f32.mrb[9].mxu1  ;;  %10378 = vmatprep.subr.bf16.mxu0 %v11402_v35  ;;  %v64_v35 = vld [vmem:[%s12332_s0 + $0x28] sm:$0xff]  ;;  %v11442_v37 = vld [vmem:[#allocation2 + $0xab8] sm:$0xff]  }
 0x170   :  { %v7267_v43 = vadd.f32 %v10076_v36, %v12131_v55  ;;  %v10098_v44 = vadd.f32 %v10097_v42, %v10096_v38  ;;  %v10099_v46 = vpop.f32.mrb[10].mxu1  ;;  %10399 = vmatpush3.bf16.msra.mxu1 %v11401_v32  ;;  %v11412_v55 = vld [vmem:[#allocation2 + $0xa00] sm:$0xff]   ;;  %v11440_v32 = vld [vmem:[#allocation2 + $0xa38] sm:$0xff]   ;;  %v1912_v36 = vrot.slane %v64_v35, %v12070_v34  ;;  %v1905_v38 = vcombine.high %v64_v35, %v64_v35  ;;  %v11480_v35 = vld [vmem:[#allocation2 + $0xc48] sm:$0xff]  }
 0x171   :  { %v10100_v48 = vpop.f32.mrb[11].mxu1  ;;  %10400 = vmatprep.subr.bf16.mxu1 %v11404_v40 }
 0x172   :  { %v12146_v49 = vadd.f32 %v10098_v44, %v7267_v43  ;;  %10379 = vmatpush3.bf16.msra.mxu0 %v11403_v39  ;;  %v11443_v39 = vld [vmem:[#allocation2 + $0xb40] sm:$0xff]   ;;  %v1920_v40 = vcombine.high %v1912_v36, %v1912_v36  ;;  %v1928_v41 = vrot.slane %v1912_v36, %v12070_v34  ;;  %v12159_v42 = vrot.slane %v1905_v38, %v12070_v34  ;;  %v11447_v48 = vld [vmem:[#allocation2 + $0xb48] sm:$0xff]  }
 0x173   :  { %10380 = vmatprep.subr.bf16.mxu0 %v11406_v47  ;;  %v11445_v43 = vld [vmem:[#allocation2 + $0xbc0] sm:$0xff]   ;;  %v11481_v36 = vld [vmem:[#allocation2 + $0xc08] sm:$0xff]  }
 0x174   :  { %10401 = vmatpush3.bf16.msra.mxu1 %v11405_v45  ;;  %v1942_v44 = vrot.slane %v1920_v40, %v12070_v34  ;;  %v11444_v45 = vld [vmem:[#allocation2 + $0xb00] sm:$0xff]   ;;  %v1921_v46 = vcombine.high %v12159_v42, %v12159_v42  ;;  %v1950_v47 = vcombine.high %v1928_v41, %v1928_v41  ;;  %v11483_v38 = vld [vmem:[#allocation2 + $0xc88] sm:$0xff]   ;;  %v11485_v40 = vld [vmem:[#allocation2 + $0xc10] sm:$0xff]  }
 0x175   :  { %10402 = vmatprep.subr.bf16.mxu1 %v11408_v51 }
 0x176   :  { %10381 = vmatpush3.bf16.msra.mxu0 %v11407_v50  ;;  %v11446_v50 = vld [vmem:[#allocation2 + $0xb80] sm:$0xff]   ;;  %v1949_v51 = vrot.slane %v1921_v46, %v12070_v34  ;;  %v11491_v46 = vld [vmem:[#allocation2 + $0xc98] sm:$0xff]  }
 0x177   :  { %10410 = vmatprep.subr.bf16.mxu0 %v11411_v54 }
 0x178   :  { %10403 = vmatpush3.bf16.msra.mxu1 %v11410_v52  ;;  %v11449_v52 = vld [vmem:[#allocation2 + $0xbc8] sm:$0xff]   ;;  %v1953_v54 = vcombine.high %v1949_v51, %v1949_v51 }
 0x179   :  { %7825 = vmatmul.mubr.bf16.vlgmr.msra.gmra.mrb[36].mxu0 %v1886_v53  ;;  %10432 = vmatprep.subr.bf16.mxu1 %v11413_v56  ;;  %v11448_v53 = vld [vmem:[#allocation2 + $0xb08] sm:$0xff]  }
 0x17a   :  { %10411 = vmatpush3.bf16.msra.mxu0 %v11412_v55  ;;  %7904 = vmatprep.mubr.bf16.mxu0 %v1942_v44  ;;  %v11451_v55 = vld [vmem:[#allocation2 + $0xb50] sm:$0xff]   ;;  %v11450_v56 = vld [vmem:[#allocation2 + $0xb88] sm:$0xff]  }
 0x17b   :  { %7865 = vmatmul.mubr.bf16.vlgmr.msra.gmra.mrb[36].mxu1 %v1902_v58  ;;  %10412 = vmatprep.subr.bf16.mxu0 %v11415_v59  ;;  %v11452_v58 = vld [vmem:[#allocation2 + $0xb10] sm:$0xff]   ;;  %v11455_v59 = vld [vmem:[#allocation2 + $0xb58] sm:$0xff]  }
 0x17c   :  { %10433 = vmatpush3.bf16.msra.mxu1 %v11414_v57  ;;  %v11453_v57 = vld [vmem:[#allocation2 + $0xbd0] sm:$0xff]  }
 0x17d   :  { %10434 = vmatprep.subr.bf16.mxu1 %v11417_v61  ;;  %v11457_v61 = vld [vmem:[#allocation2 + $0xbd8] sm:$0xff]  }
 0x17e   :  { %10413 = vmatpush3.bf16.msra.mxu0 %v11416_v60  ;;  %v11454_v60 = vld [vmem:[#allocation2 + $0xb90] sm:$0xff]  }
 0x17f   :  { %10414 = vmatprep.subr.bf16.mxu0 %v11419_v63  ;;  %v11459_v63 = vld [vmem:[#allocation2 + $0xb60] sm:$0xff]  }
 0x180   :  { %10435 = vmatpush3.bf16.msra.mxu1 %v11418_v62  ;;  %v11456_v62 = vld [vmem:[#allocation2 + $0xb18] sm:$0xff]  }
 0x181   :  { %10436 = vmatprep.subr.bf16.mxu1 %v11421_v1  ;;  %v11461_v1 = vld [vmem:[#allocation2 + $0xbe0] sm:$0xff]  }
 0x182   :  { %10415 = vmatpush3.bf16.msra.mxu0 %v11420_v0  ;;  %v11458_v0 = vld [vmem:[#allocation2 + $0xb98] sm:$0xff]  }
 0x183   :  { %10416 = vmatprep.subr.bf16.mxu0 %v11423_v3  ;;  %v11463_v3 = vld [vmem:[#allocation2 + $0xb68] sm:$0xff]  }
 0x184   :  { %10437 = vmatpush3.bf16.msra.mxu1 %v11422_v2  ;;  %v11460_v2 = vld [vmem:[#allocation2 + $0xb20] sm:$0xff]  }
 0x185   :  { %10438 = vmatprep.subr.bf16.mxu1 %v11425_v5 }
 0x186   :  { %10417 = vmatpush3.bf16.msra.mxu0 %v11424_v4  ;;  %v11462_v4 = vld [vmem:[#allocation2 + $0xba0] sm:$0xff]  }
 0x187   :  { %10418 = vmatprep.subr.bf16.mxu0 %v11427_v7 }
 0x188   :  { %10439 = vmatpush3.bf16.msra.mxu1 %v11426_v6  ;;  %v11465_v6 = vld [vmem:[#allocation2 + $0xbe8] sm:$0xff]  }
 0x189   :  { %10440 = vmatprep.subr.bf16.mxu1 %v11429_v9 }
 0x18a   :  { %10419 = vmatpush3.bf16.msra.mxu0 %v11428_v8  ;;  %v11464_v8 = vld [vmem:[#allocation2 + $0xb28] sm:$0xff]  }
 0x18b   :  { %10420 = vmatprep.subr.bf16.mxu0 %v11431_v11 }
 0x18c   :  { %v10118_v14 = vpop.f32.mrb[12].mxu0  ;;  %10441 = vmatpush3.bf16.msra.mxu1 %v11430_v10 }
 0x18d   :  { %v10119_v16 = vpop.f32.mrb[13].mxu0  ;;  %10442 = vmatprep.subr.bf16.mxu1 %v11433_v13  ;;  %v11467_v13 = vld [vmem:[#allocation2 + $0xb70] sm:$0xff]  }
 0x18e   :  { %v10120_v18 = vadd.f32 %v10119_v16, %v10118_v14  ;;  %v10121_v19 = vpop.f32.mrb[14].mxu0  ;;  %v10140_v20 = vpop.f32.mrb[12].mxu1  ;;  %10421 = vmatpush3.bf16.msra.mxu0 %v11432_v12  ;;  %v11466_v12 = vld [vmem:[#allocation2 + $0xba8] sm:$0xff]   ;;  %v11468_v16 = vld [vmem:[#allocation2 + $0xb30] sm:$0xff]  }
 0x18f   :  { %v10122_v21 = vpop.f32.mrb[15].mxu0  ;;  %v10141_v22 = vpop.f32.mrb[13].mxu1  ;;  %10422 = vmatprep.subr.bf16.mxu0 %v11435_v17  ;;  %v11469_v19 = vld [vmem:[#allocation2 + $0xbf0] sm:$0xff]  }
 0x190   :  { %v7347_v25 = vadd.f32 %v10120_v18, %v12146_v49  ;;  %v10142_v26 = vadd.f32 %v10141_v22, %v10140_v20  ;;  %v10143_v28 = vpop.f32.mrb[14].mxu1  ;;  %10443 = vmatpush3.bf16.msra.mxu1 %v11434_v15  ;;  %v1952_v49 = vcombine.high %v1942_v44, %v1942_v44  ;;  %v11470_v21 = vld [vmem:[#allocation2 + $0xbb0] sm:$0xff]   ;;  %v11489_v44 = vld [vmem:[#allocation2 + $0xc18] sm:$0xff]  }
 0x191   :  { %v10144_v31 = vpop.f32.mrb[15].mxu1  ;;  %10444 = vmatprep.subr.bf16.mxu1 %v11437_v24  ;;  %v11471_v24 = vld [vmem:[#allocation2 + $0xb78] sm:$0xff]   ;;  %v1935_v28 = vrot.slane %v12159_v42, %v12070_v34  ;;  %v11487_v42 = vld [vmem:[#allocation2 + $0xc90] sm:$0xff]  }
 0x192   :  { %v12151_v29 = vadd.f32 %v10142_v26, %v7347_v25  ;;  %10423 = vmatpush3.bf16.msra.mxu0 %v11436_v23  ;;  %7944 = vmatprep.mubr.bf16.mxu1 %v1952_v49  ;;  %v11472_v25 = vld [vmem:[#allocation2 + $0xb38] sm:$0xff]   ;;  %v11478_v31 = vld [vmem:[#allocation2 + $0xcc0] sm:$0xff]  }
 0x193   :  { %10424 = vmatprep.subr.bf16.mxu0 %v11439_v30  ;;  %v11473_v26 = vld [vmem:[#allocation2 + $0xbf8] sm:$0xff]   ;;  %v11477_v30 = vld [vmem:[#allocation2 + $0xc00] sm:$0xff]  }
 0x194   :  { %10445 = vmatpush3.bf16.msra.mxu1 %v11438_v27  ;;  %v11475_v27 = vld [vmem:[#allocation2 + $0xbb8] sm:$0xff]   ;;  %v11494_v49 = vld [vmem:[#allocation2 + $0xce0] sm:$0xff]  }
 0x195   :  { %10446 = vmatprep.subr.bf16.mxu1 %v11441_v33  ;;  %v1951_v33 = vcombine.high %v1935_v28, %v1935_v28 }
 0x196   :  { %10425 = vmatpush3.bf16.msra.mxu0 %v11440_v32  ;;  %v11479_v32 = vld [vmem:[#allocation2 + $0xc80] sm:$0xff]  }
 0x197   :  { %10454 = vmatprep.subr.bf16.mxu0 %v11443_v39  ;;  %v11484_v39 = vld [vmem:[#allocation2 + $0xc50] sm:$0xff]  }
 0x198   :  { %10447 = vmatpush3.bf16.msra.mxu1 %v11442_v37  ;;  %v11482_v37 = vld [vmem:[#allocation2 + $0xcc8] sm:$0xff]  }
 0x199   :  { %10476 = vmatprep.subr.bf16.mxu1 %v11445_v43  ;;  %7905 = vmatmul.mubr.bf16.vlgmr.msra.gmra.mrb[40].mxu0 %v1928_v41  ;;  %v11486_v41 = vld [vmem:[#allocation2 + $0xcd0] sm:$0xff]   ;;  %v11488_v43 = vld [vmem:[#allocation2 + $0xc58] sm:$0xff]  }
 0x19a   :  { %10455 = vmatpush3.bf16.msra.mxu0 %v11444_v45  ;;  %7984 = vmatprep.mubr.bf16.mxu0 %v1949_v51  ;;  %v11490_v45 = vld [vmem:[#allocation2 + $0xcd8] sm:$0xff]   ;;  %v11496_v51 = vld [vmem:[#allocation2 + $0xc68] sm:$0xff]  }
 0x19b   :  { %7945 = vmatmul.mubr.bf16.vlgmr.msra.gmra.mrb[40].mxu1 %v1950_v47  ;;  %10456 = vmatprep.subr.bf16.mxu0 %v11447_v48  ;;  %v11492_v47 = vld [vmem:[#allocation2 + $0xc60] sm:$0xff]  }
 0x19c   :  { %10477 = vmatpush3.bf16.msra.mxu1 %v11446_v50  ;;  %8024 = vmatprep.mubr.bf16.mxu1 %v1953_v54  ;;  %v11493_v48 = vld [vmem:[#allocation2 + $0xc20] sm:$0xff]   ;;  %v11498_v54 = vld [vmem:[#allocation2 + $0xce8] sm:$0xff]  }
 0x19d   :  { %10478 = vmatprep.subr.bf16.mxu1 %v11449_v52  ;;  %v11495_v50 = vld [vmem:[#allocation2 + $0xca0] sm:$0xff]   ;;  %v11497_v52 = vld [vmem:[#allocation2 + $0xc28] sm:$0xff]  }
 0x19e   :  { %10457 = vmatpush3.bf16.msra.mxu0 %v11448_v53 }
 0x19f   :  { %10458 = vmatprep.subr.bf16.mxu0 %v11451_v55 }
 0x1a0   :  { %10479 = vmatpush3.bf16.msra.mxu1 %v11450_v56  ;;  %v11499_v56 = vld [vmem:[#allocation2 + $0xca8] sm:$0xff]  }
 0x1a1   :  { %10480 = vmatprep.subr.bf16.mxu1 %v11453_v57 }
 0x1a2   :  { %10459 = vmatpush3.bf16.msra.mxu0 %v11452_v58 }
 0x1a3   :  { %10460 = vmatprep.subr.bf16.mxu0 %v11455_v59 }
 0x1a4   :  { %10481 = vmatpush3.bf16.msra.mxu1 %v11454_v60 }
 0x1a5   :  { %10482 = vmatprep.subr.bf16.mxu1 %v11457_v61 }
 0x1a6   :  { %10461 = vmatpush3.bf16.msra.mxu0 %v11456_v62  ;;  %v11500_v62 = vld [vmem:[#allocation2 + $0xc70] sm:$0xff]  }
 0x1a7   :  { %10462 = vmatprep.subr.bf16.mxu0 %v11459_v63  ;;  %v11501_v63 = vld [vmem:[#allocation2 + $0xc30] sm:$0xff]  }
 0x1a8   :  { %10483 = vmatpush3.bf16.msra.mxu1 %v11458_v0 }
 0x1a9   :  { %10484 = vmatprep.subr.bf16.mxu1 %v11461_v1 }
 0x1aa   :  { %10463 = vmatpush3.bf16.msra.mxu0 %v11460_v2  ;;  %v11502_v2 = vld [vmem:[#allocation2 + $0xcf0] sm:$0xff]  }
 0x1ab   :  { %10464 = vmatprep.subr.bf16.mxu0 %v11463_v3 }
 0x1ac   :  { %v10162_v5 = vpop.f32.mrb[16].mxu0  ;;  %10485 = vmatpush3.bf16.msra.mxu1 %v11462_v4 }
 0x1ad   :  { %v10163_v7 = vpop.f32.mrb[17].mxu0  ;;  %10486 = vmatprep.subr.bf16.mxu1 %v11465_v6 }
 0x1ae   :  { %v10164_v9 = vadd.f32 %v10163_v7, %v10162_v5  ;;  %v10165_v10 = vpop.f32.mrb[18].mxu0  ;;  %v10184_v11 = vpop.f32.mrb[16].mxu1  ;;  %10465 = vmatpush3.bf16.msra.mxu0 %v11464_v8  ;;  %v11503_v5 = vld [vmem:[#allocation2 + $0xcb0] sm:$0xff]   ;;  %v11504_v7 = vld [vmem:[#allocation2 + $0xc78] sm:$0xff]  }
 0x1af   :  { %v10166_v14 = vpop.f32.mrb[19].mxu0  ;;  %v10185_v15 = vpop.f32.mrb[17].mxu1  ;;  %10466 = vmatprep.subr.bf16.mxu0 %v11467_v13  ;;  %v11505_v8 = vld [vmem:[#allocation2 + $0xc38] sm:$0xff]   ;;  %v65_v10 = vld [vmem:[%s12332_s0 + $0x30] sm:$0xff] }
 0x1b0   :  { %v7427_v17 = vadd.f32 %v10164_v9, %v12151_v29  ;;  %v10186_v18 = vadd.f32 %v10185_v15, %v10184_v11  ;;  %v10187_v20 = vpop.f32.mrb[18].mxu1  ;;  %10487 = vmatpush3.bf16.msra.mxu1 %v11466_v12  ;;  %v11476_v29 = vld [vmem:[#allocation2 + $0xc40] sm:$0xff]   ;;  %v11506_v9 = vld [vmem:[#allocation2 + $0xcf8] sm:$0xff]   ;;  %v1961_v11 = vrot.slane %v65_v10, %v12070_v34  ;;  %v1954_v13 = vcombine.high %v65_v10, %v65_v10  ;;  %v11545_v10 = vld [vmem:[#allocation2 + $0xe48] sm:$0xff]  }
 0x1b1   :  { %v10188_v22 = vpop.f32.mrb[19].mxu1  ;;  %10488 = vmatprep.subr.bf16.mxu1 %v11469_v19  ;;  %v11507_v12 = vld [vmem:[#allocation2 + $0xcb8] sm:$0xff]   ;;  %v11508_v14 = vld [vmem:[#allocation2 + $0xd40] sm:$0xff]  }
 0x1b2   :  { %v12166_v23 = vadd.f32 %v10186_v18, %v7427_v17  ;;  %10467 = vmatpush3.bf16.msra.mxu0 %v11468_v16  ;;  %v1969_v15 = vcombine.high %v1961_v11, %v1961_v11  ;;  %v1977_v16 = vrot.slane %v1961_v11, %v12070_v34  ;;  %v12179_v17 = vrot.slane %v1954_v13, %v12070_v34  ;;  %v11510_v18 = vld [vmem:[#allocation2 + $0xdc0] sm:$0xff]   ;;  %v11546_v11 = vld [vmem:[#allocation2 + $0xe08] sm:$0xff]  }
 0x1b3   :  { %10468 = vmatprep.subr.bf16.mxu0 %v11471_v24  ;;  %v11509_v20 = vld [vmem:[#allocation2 + $0xd00] sm:$0xff]   ;;  %v11548_v13 = vld [vmem:[#allocation2 + $0xe88] sm:$0xff]  }
 0x1b4   :  { %10489 = vmatpush3.bf16.msra.mxu1 %v11470_v21  ;;  %v1991_v19 = vrot.slane %v1969_v15, %v12070_v34  ;;  %v1970_v21 = vcombine.high %v12179_v17, %v12179_v17  ;;  %v1999_v22 = vcombine.high %v1977_v16, %v1977_v16  ;;  %v11550_v15 = vld [vmem:[#allocation2 + $0xe10] sm:$0xff]  }
 0x1b5   :  { %10490 = vmatprep.subr.bf16.mxu1 %v11473_v26 }
 0x1b6   :  { %10469 = vmatpush3.bf16.msra.mxu0 %v11472_v25  ;;  %v2001_v24 = vcombine.high %v1991_v19, %v1991_v19  ;;  %v11511_v25 = vld [vmem:[#allocation2 + $0xd80] sm:$0xff]   ;;  %v1998_v26 = vrot.slane %v1970_v21, %v12070_v34  ;;  %v11556_v21 = vld [vmem:[#allocation2 + $0xe98] sm:$0xff]  }
 0x1b7   :  { %10498 = vmatprep.subr.bf16.mxu0 %v11476_v29 }
 0x1b8   :  { %10491 = vmatpush3.bf16.msra.mxu1 %v11475_v27  ;;  %v11514_v27 = vld [vmem:[#allocation2 + $0xdc8] sm:$0xff]   ;;  %v2002_v29 = vcombine.high %v1998_v26, %v1998_v26 }
 0x1b9   :  { %7985 = vmatmul.mubr.bf16.vlgmr.msra.gmra.mrb[44].mxu0 %v1935_v28  ;;  %10520 = vmatprep.subr.bf16.mxu1 %v11478_v31  ;;  %v11513_v28 = vld [vmem:[#allocation2 + $0xd08] sm:$0xff]  }
 0x1ba   :  { %10499 = vmatpush3.bf16.msra.mxu0 %v11477_v30  ;;  %8064 = vmatprep.mubr.bf16.mxu0 %v1991_v19  ;;  %v11516_v30 = vld [vmem:[#allocation2 + $0xd50] sm:$0xff]   ;;  %v11515_v31 = vld [vmem:[#allocation2 + $0xd88] sm:$0xff]   ;;  %v11554_v19 = vld [vmem:[#allocation2 + $0xe18] sm:$0xff]  }
 0x1bb   :  { %8025 = vmatmul.mubr.bf16.vlgmr.msra.gmra.mrb[44].mxu1 %v1951_v33  ;;  %10500 = vmatprep.subr.bf16.mxu0 %v11480_v35  ;;  %v11517_v33 = vld [vmem:[#allocation2 + $0xd10] sm:$0xff]   ;;  %v11520_v35 = vld [vmem:[#allocation2 + $0xd58] sm:$0xff]  }
 0x1bc   :  { %10521 = vmatpush3.bf16.msra.mxu1 %v11479_v32  ;;  %8104 = vmatprep.mubr.bf16.mxu1 %v2001_v24  ;;  %v11518_v32 = vld [vmem:[#allocation2 + $0xdd0] sm:$0xff]   ;;  %v11559_v24 = vld [vmem:[#allocation2 + $0xee0] sm:$0xff]  }
 0x1bd   :  { %10522 = vmatprep.subr.bf16.mxu1 %v11482_v37  ;;  %v11522_v37 = vld [vmem:[#allocation2 + $0xdd8] sm:$0xff]  }
 0x1be   :  { %10501 = vmatpush3.bf16.msra.mxu0 %v11481_v36  ;;  %v11519_v36 = vld [vmem:[#allocation2 + $0xd90] sm:$0xff]  }
 0x1bf   :  { %10502 = vmatprep.subr.bf16.mxu0 %v11484_v39  ;;  %v11524_v39 = vld [vmem:[#allocation2 + $0xd60] sm:$0xff]  }
 0x1c0   :  { %10523 = vmatpush3.bf16.msra.mxu1 %v11483_v38  ;;  %v11521_v38 = vld [vmem:[#allocation2 + $0xd18] sm:$0xff]  }
 0x1c1   :  { %10524 = vmatprep.subr.bf16.mxu1 %v11486_v41  ;;  %v11526_v41 = vld [vmem:[#allocation2 + $0xde0] sm:$0xff]  }
 0x1c2   :  { %10503 = vmatpush3.bf16.msra.mxu0 %v11485_v40  ;;  %v11523_v40 = vld [vmem:[#allocation2 + $0xd98] sm:$0xff]  }
 0x1c3   :  { %10504 = vmatprep.subr.bf16.mxu0 %v11488_v43  ;;  %v11528_v43 = vld [vmem:[#allocation2 + $0xd68] sm:$0xff]  }
 0x1c4   :  { %10525 = vmatpush3.bf16.msra.mxu1 %v11487_v42  ;;  %v11525_v42 = vld [vmem:[#allocation2 + $0xd20] sm:$0xff]  }
 0x1c5   :  { %10526 = vmatprep.subr.bf16.mxu1 %v11490_v45 }
 0x1c6   :  { %10505 = vmatpush3.bf16.msra.mxu0 %v11489_v44  ;;  %v11527_v44 = vld [vmem:[#allocation2 + $0xda0] sm:$0xff]  }
 0x1c7   :  { %10506 = vmatprep.subr.bf16.mxu0 %v11492_v47 }
 0x1c8   :  { %10527 = vmatpush3.bf16.msra.mxu1 %v11491_v46  ;;  %v11530_v46 = vld [vmem:[#allocation2 + $0xde8] sm:$0xff]  }
 0x1c9   :  { %10528 = vmatprep.subr.bf16.mxu1 %v11494_v49 }
 0x1ca   :  { %10507 = vmatpush3.bf16.msra.mxu0 %v11493_v48  ;;  %v11529_v48 = vld [vmem:[#allocation2 + $0xd28] sm:$0xff]  }
 0x1cb   :  { %10508 = vmatprep.subr.bf16.mxu0 %v11496_v51 }
 0x1cc   :  { %v10206_v53 = vpop.f32.mrb[20].mxu0  ;;  %10529 = vmatpush3.bf16.msra.mxu1 %v11495_v50 }
 0x1cd   :  { %v10207_v55 = vpop.f32.mrb[21].mxu0  ;;  %10530 = vmatprep.subr.bf16.mxu1 %v11498_v54 }
 0x1ce   :  { %v10208_v57 = vadd.f32 %v10207_v55, %v10206_v53  ;;  %v10209_v58 = vpop.f32.mrb[22].mxu0  ;;  %v10228_v59 = vpop.f32.mrb[20].mxu1  ;;  %10509 = vmatpush3.bf16.msra.mxu0 %v11497_v52  ;;  %v11531_v52 = vld [vmem:[#allocation2 + $0xda8] sm:$0xff]   ;;  %v11532_v53 = vld [vmem:[#allocation2 + $0xd70] sm:$0xff]  }
 0x1cf   :  { %v10210_v60 = vpop.f32.mrb[23].mxu0  ;;  %v10229_v61 = vpop.f32.mrb[21].mxu1  ;;  %10510 = vmatprep.subr.bf16.mxu0 %v11500_v62 }
 0x1d0   :  { %v7507_v0 = vadd.f32 %v10208_v57, %v12166_v23  ;;  %v10230_v1 = vadd.f32 %v10229_v61, %v10228_v59  ;;  %v10231_v3 = vpop.f32.mrb[22].mxu1  ;;  %10531 = vmatpush3.bf16.msra.mxu1 %v11499_v56  ;;  %v11512_v23 = vld [vmem:[#allocation2 + $0xd48] sm:$0xff]   ;;  %v11533_v56 = vld [vmem:[#allocation2 + $0xd30] sm:$0xff]  }
 0x1d1   :  { %v10232_v6 = vpop.f32.mrb[23].mxu1  ;;  %10532 = vmatprep.subr.bf16.mxu1 %v11502_v2  ;;  %v11534_v59 = vld [vmem:[#allocation2 + $0xdf0] sm:$0xff]   ;;  %v11538_v2 = vld [vmem:[#allocation2 + $0xdf8] sm:$0xff]  }
 0x1d2   :  { %v12171_v4 = vadd.f32 %v10230_v1, %v7507_v0  ;;  %10511 = vmatpush3.bf16.msra.mxu0 %v11501_v63  ;;  %v11535_v61 = vld [vmem:[#allocation2 + $0xdb0] sm:$0xff]   ;;  %v11536_v0 = vld [vmem:[#allocation2 + $0xd78] sm:$0xff]   ;;  %v11542_v6 = vld [vmem:[#allocation2 + $0xe00] sm:$0xff]  }
 0x1d3   :  { %10512 = vmatprep.subr.bf16.mxu0 %v11504_v7  ;;  %v11537_v1 = vld [vmem:[#allocation2 + $0xd38] sm:$0xff]   ;;  %v11543_v7 = vld [vmem:[#allocation2 + $0xec0] sm:$0xff]  }
 0x1d4   :  { %10533 = vmatpush3.bf16.msra.mxu1 %v11503_v5  ;;  %v11540_v3 = vld [vmem:[#allocation2 + $0xdb8] sm:$0xff]   ;;  %v11541_v5 = vld [vmem:[#allocation2 + $0xe40] sm:$0xff]  }
 0x1d5   :  { %10534 = vmatprep.subr.bf16.mxu1 %v11506_v9 }
 0x1d6   :  { %10513 = vmatpush3.bf16.msra.mxu0 %v11505_v8  ;;  %v11544_v8 = vld [vmem:[#allocation2 + $0xe80] sm:$0xff]  }
 0x1d7   :  { %10542 = vmatprep.subr.bf16.mxu0 %v11508_v14  ;;  %v11549_v14 = vld [vmem:[#allocation2 + $0xe50] sm:$0xff]  }
 0x1d8   :  { %10535 = vmatpush3.bf16.msra.mxu1 %v11507_v12  ;;  %v11547_v12 = vld [vmem:[#allocation2 + $0xec8] sm:$0xff]  }
 0x1d9   :  { %10564 = vmatprep.subr.bf16.mxu1 %v11510_v18  ;;  %8065 = vmatmul.mubr.bf16.vlgmr.msra.gmra.mrb[48].mxu0 %v1977_v16  ;;  %v11551_v16 = vld [vmem:[#allocation2 + $0xed0] sm:$0xff]   ;;  %v11553_v18 = vld [vmem:[#allocation2 + $0xe58] sm:$0xff]  }
 0x1da   :  { %10543 = vmatpush3.bf16.msra.mxu0 %v11509_v20  ;;  %8144 = vmatprep.mubr.bf16.mxu0 %v1998_v26  ;;  %v11555_v20 = vld [vmem:[#allocation2 + $0xed8] sm:$0xff]   ;;  %v11561_v26 = vld [vmem:[#allocation2 + $0xe68] sm:$0xff]  }
 0x1db   :  { %8105 = vmatmul.mubr.bf16.vlgmr.msra.gmra.mrb[48].mxu1 %v1999_v22  ;;  %10544 = vmatprep.subr.bf16.mxu0 %v11512_v23  ;;  %v11557_v22 = vld [vmem:[#allocation2 + $0xe60] sm:$0xff]  }
 0x1dc   :  { %10565 = vmatpush3.bf16.msra.mxu1 %v11511_v25  ;;  %8184 = vmatprep.mubr.bf16.mxu1 %v2002_v29  ;;  %v11558_v23 = vld [vmem:[#allocation2 + $0xe20] sm:$0xff]   ;;  %v11563_v29 = vld [vmem:[#allocation2 + $0xee8] sm:$0xff]  }
 0x1dd   :  { %10566 = vmatprep.subr.bf16.mxu1 %v11514_v27  ;;  %v11560_v25 = vld [vmem:[#allocation2 + $0xea0] sm:$0xff]   ;;  %v11562_v27 = vld [vmem:[#allocation2 + $0xe28] sm:$0xff]  }
 0x1de   :  { %10545 = vmatpush3.bf16.msra.mxu0 %v11513_v28 }
 0x1df   :  { %10546 = vmatprep.subr.bf16.mxu0 %v11516_v30 }
 0x1e0   :  { %10567 = vmatpush3.bf16.msra.mxu1 %v11515_v31  ;;  %v11564_v31 = vld [vmem:[#allocation2 + $0xea8] sm:$0xff]  }
 0x1e1   :  { %10568 = vmatprep.subr.bf16.mxu1 %v11518_v32 }
 0x1e2   :  { %10547 = vmatpush3.bf16.msra.mxu0 %v11517_v33 }
 0x1e3   :  { %10548 = vmatprep.subr.bf16.mxu0 %v11520_v35 }
 0x1e4   :  { %10569 = vmatpush3.bf16.msra.mxu1 %v11519_v36 }
 0x1e5   :  { %10570 = vmatprep.subr.bf16.mxu1 %v11522_v37 }
 0x1e6   :  { %10549 = vmatpush3.bf16.msra.mxu0 %v11521_v38  ;;  %v11565_v38 = vld [vmem:[#allocation2 + $0xe70] sm:$0xff]  }
 0x1e7   :  { %10550 = vmatprep.subr.bf16.mxu0 %v11524_v39  ;;  %v11566_v39 = vld [vmem:[#allocation2 + $0xe30] sm:$0xff]  }
 0x1e8   :  { %10571 = vmatpush3.bf16.msra.mxu1 %v11523_v40 }
 0x1e9   :  { %10572 = vmatprep.subr.bf16.mxu1 %v11526_v41 }
 0x1ea   :  { %10551 = vmatpush3.bf16.msra.mxu0 %v11525_v42  ;;  %v11567_v42 = vld [vmem:[#allocation2 + $0xef0] sm:$0xff]  }
 0x1eb   :  { %10552 = vmatprep.subr.bf16.mxu0 %v11528_v43 }
 0x1ec   :  { %v10250_v45 = vpop.f32.mrb[24].mxu0  ;;  %10573 = vmatpush3.bf16.msra.mxu1 %v11527_v44 }
 0x1ed   :  { %v10251_v47 = vpop.f32.mrb[25].mxu0  ;;  %10574 = vmatprep.subr.bf16.mxu1 %v11530_v46 }
 0x1ee   :  { %v10252_v49 = vadd.f32 %v10251_v47, %v10250_v45  ;;  %v10253_v50 = vpop.f32.mrb[26].mxu0  ;;  %v10272_v51 = vpop.f32.mrb[24].mxu1  ;;  %10553 = vmatpush3.bf16.msra.mxu0 %v11529_v48  ;;  %v11568_v45 = vld [vmem:[#allocation2 + $0xeb0] sm:$0xff]   ;;  %v11569_v47 = vld [vmem:[#allocation2 + $0xe78] sm:$0xff]  }
 0x1ef   :  { %v10254_v54 = vpop.f32.mrb[27].mxu0  ;;  %v10273_v55 = vpop.f32.mrb[25].mxu1  ;;  %10554 = vmatprep.subr.bf16.mxu0 %v11532_v53  ;;  %v11570_v48 = vld [vmem:[#allocation2 + $0xe38] sm:$0xff]  }
 0x1f0   :  { %v7587_v57 = vadd.f32 %v10252_v49, %v12171_v4  ;;  %v10274_v58 = vadd.f32 %v10273_v55, %v10272_v51  ;;  %v10275_v60 = vpop.f32.mrb[26].mxu1  ;;  %10575 = vmatpush3.bf16.msra.mxu1 %v11531_v52  ;;  %v1984_v4 = vrot.slane %v12179_v17, %v12070_v34  ;;  %v11552_v17 = vld [vmem:[#allocation2 + $0xe90] sm:$0xff]   ;;  %v11571_v49 = vld [vmem:[#allocation2 + $0xef8] sm:$0xff]   ;;  %v11573_v54 = vld [vmem:[#allocation2 + $0xf40] sm:$0xff]  }
 0x1f1   :  { %v10276_v62 = vpop.f32.mrb[27].mxu1  ;;  %10576 = vmatprep.subr.bf16.mxu1 %v11534_v59  ;;  %v66_v50 = vld [vmem:[%s12332_s0 + $0x38] sm:$0xff]  ;;  %v11574_v60 = vld [vmem:[#allocation2 + $0xf00] sm:$0xff]  }
 0x1f2   :  { %v12186_v63 = vadd.f32 %v10274_v58, %v7587_v57  ;;  %10555 = vmatpush3.bf16.msra.mxu0 %v11533_v56  ;;  %v2000_v9 = vcombine.high %v1984_v4, %v1984_v4  ;;  %v2010_v51 = vrot.slane %v66_v50, %v12070_v34  ;;  %v11572_v52 = vld [vmem:[#allocation2 + $0xeb8] sm:$0xff]   ;;  %v2003_v53 = vcombine.high %v66_v50, %v66_v50  ;;  %v11575_v58 = vld [vmem:[#allocation2 + $0xfc0] sm:$0xff]   ;;  %v11610_v50 = vld [vmem:[#allocation2 + $0x1048] sm:$0xff]  }
 0x1f3   :  { %10556 = vmatprep.subr.bf16.mxu0 %v11536_v0 }
 0x1f4   :  { %10577 = vmatpush3.bf16.msra.mxu1 %v11535_v61  ;;  %v2018_v55 = vcombine.high %v2010_v51, %v2010_v51  ;;  %v2026_v56 = vrot.slane %v2010_v51, %v12070_v34  ;;  %v12199_v57 = vrot.slane %v2003_v53, %v12070_v34  ;;  %v11611_v51 = vld [vmem:[#allocation2 + $0x1008] sm:$0xff]  }
 0x1f5   :  { %10578 = vmatprep.subr.bf16.mxu1 %v11538_v2  ;;  %v11613_v53 = vld [vmem:[#allocation2 + $0x1088] sm:$0xff]  }
 0x1f6   :  { %10557 = vmatpush3.bf16.msra.mxu0 %v11537_v1  ;;  %v2040_v59 = vrot.slane %v2018_v55, %v12070_v34  ;;  %v2019_v61 = vcombine.high %v12199_v57, %v12199_v57  ;;  %v2048_v62 = vcombine.high %v2026_v56, %v2026_v56  ;;  %v11576_v1 = vld [vmem:[#allocation2 + $0xf80] sm:$0xff]   ;;  %v11615_v55 = vld [vmem:[#allocation2 + $0x1010] sm:$0xff]  }
 0x1f7   :  { %10586 = vmatprep.subr.bf16.mxu0 %v11541_v5 }
 0x1f8   :  { %10579 = vmatpush3.bf16.msra.mxu1 %v11540_v3  ;;  %v2050_v0 = vcombine.high %v2040_v59, %v2040_v59  ;;  %v2047_v2 = vrot.slane %v2019_v61, %v12070_v34  ;;  %v11579_v3 = vld [vmem:[#allocation2 + $0xfc8] sm:$0xff]   ;;  %v11621_v61 = vld [vmem:[#allocation2 + $0x1098] sm:$0xff]  }
 0x1f9   :  { %8145 = vmatmul.mubr.bf16.vlgmr.msra.gmra.mrb[52].mxu0 %v1984_v4  ;;  %10608 = vmatprep.subr.bf16.mxu1 %v11543_v7  ;;  %v11578_v4 = vld [vmem:[#allocation2 + $0xf08] sm:$0xff]  }
 0x1fa   :  { %10587 = vmatpush3.bf16.msra.mxu0 %v11542_v6  ;;  %8224 = vmatprep.mubr.bf16.mxu0 %v2040_v59  ;;  %v2051_v5 = vcombine.high %v2047_v2, %v2047_v2  ;;  %v11581_v6 = vld [vmem:[#allocation2 + $0xf50] sm:$0xff]   ;;  %v11580_v7 = vld [vmem:[#allocation2 + $0xf88] sm:$0xff]   ;;  %v11619_v59 = vld [vmem:[#allocation2 + $0x1018] sm:$0xff]  }
 0x1fb   :  { %8185 = vmatmul.mubr.bf16.vlgmr.msra.gmra.mrb[52].mxu1 %v2000_v9  ;;  %10588 = vmatprep.subr.bf16.mxu0 %v11545_v10  ;;  %v11582_v9 = vld [vmem:[#allocation2 + $0xf10] sm:$0xff]   ;;  %v11585_v10 = vld [vmem:[#allocation2 + $0xf58] sm:$0xff]  }
 0x1fc   :  { %10609 = vmatpush3.bf16.msra.mxu1 %v11544_v8  ;;  %8264 = vmatprep.mubr.bf16.mxu1 %v2050_v0  ;;  %v11583_v8 = vld [vmem:[#allocation2 + $0xfd0] sm:$0xff]   ;;  %v11624_v0 = vld [vmem:[#allocation2 + $0x10e0] sm:$0xff]  }
 0x1fd   :  { %10610 = vmatprep.subr.bf16.mxu1 %v11547_v12  ;;  %v11587_v12 = vld [vmem:[#allocation2 + $0xfd8] sm:$0xff]  }
 0x1fe   :  { %10589 = vmatpush3.bf16.msra.mxu0 %v11546_v11  ;;  %v11584_v11 = vld [vmem:[#allocation2 + $0xf90] sm:$0xff]  }
 0x1ff   :  { %10590 = vmatprep.subr.bf16.mxu0 %v11549_v14  ;;  %v11589_v14 = vld [vmem:[#allocation2 + $0xf60] sm:$0xff]  }
 0x200   :  { %10611 = vmatpush3.bf16.msra.mxu1 %v11548_v13  ;;  %v11586_v13 = vld [vmem:[#allocation2 + $0xf18] sm:$0xff]  }
 0x201   :  { %10612 = vmatprep.subr.bf16.mxu1 %v11551_v16  ;;  %v11591_v16 = vld [vmem:[#allocation2 + $0xfe0] sm:$0xff]  }
 0x202   :  { %10591 = vmatpush3.bf16.msra.mxu0 %v11550_v15  ;;  %v11588_v15 = vld [vmem:[#allocation2 + $0xf98] sm:$0xff]  }
 0x203   :  { %10592 = vmatprep.subr.bf16.mxu0 %v11553_v18  ;;  %v11593_v18 = vld [vmem:[#allocation2 + $0xf68] sm:$0xff]  }
 0x204   :  { %10613 = vmatpush3.bf16.msra.mxu1 %v11552_v17  ;;  %v11590_v17 = vld [vmem:[#allocation2 + $0xf20] sm:$0xff]  }
 0x205   :  { %10614 = vmatprep.subr.bf16.mxu1 %v11555_v20 }
 0x206   :  { %10593 = vmatpush3.bf16.msra.mxu0 %v11554_v19  ;;  %v11592_v19 = vld [vmem:[#allocation2 + $0xfa0] sm:$0xff]  }
 0x207   :  { %10594 = vmatprep.subr.bf16.mxu0 %v11557_v22 }
 0x208   :  { %10615 = vmatpush3.bf16.msra.mxu1 %v11556_v21  ;;  %v11595_v21 = vld [vmem:[#allocation2 + $0xfe8] sm:$0xff]  }
 0x209   :  { %10616 = vmatprep.subr.bf16.mxu1 %v11559_v24 }
 0x20a   :  { %10595 = vmatpush3.bf16.msra.mxu0 %v11558_v23  ;;  %v11594_v23 = vld [vmem:[#allocation2 + $0xf28] sm:$0xff]  }
 0x20b   :  { %10596 = vmatprep.subr.bf16.mxu0 %v11561_v26 }
 0x20c   :  { %v10294_v28 = vpop.f32.mrb[28].mxu0  ;;  %10617 = vmatpush3.bf16.msra.mxu1 %v11560_v25 }
 0x20d   :  { %v10295_v30 = vpop.f32.mrb[29].mxu0  ;;  %10618 = vmatprep.subr.bf16.mxu1 %v11563_v29 }
 0x20e   :  { %v10296_v32 = vadd.f32 %v10295_v30, %v10294_v28  ;;  %v10297_v33 = vpop.f32.mrb[30].mxu0  ;;  %v10316_v35 = vpop.f32.mrb[28].mxu1  ;;  %10597 = vmatpush3.bf16.msra.mxu0 %v11562_v27  ;;  %v11596_v27 = vld [vmem:[#allocation2 + $0xfa8] sm:$0xff]   ;;  %v11597_v28 = vld [vmem:[#allocation2 + $0xf70] sm:$0xff]  }
 0x20f   :  { %v10298_v36 = vpop.f32.mrb[31].mxu0  ;;  %v10317_v37 = vpop.f32.mrb[29].mxu1  ;;  %10598 = vmatprep.subr.bf16.mxu0 %v11565_v38 }
 0x210   :  { %v7667_v40 = vadd.f32 %v10296_v32, %v12186_v63  ;;  %v10318_v41 = vadd.f32 %v10317_v37, %v10316_v35  ;;  %v10319_v43 = vpop.f32.mrb[30].mxu1  ;;  %10619 = vmatpush3.bf16.msra.mxu1 %v11564_v31  ;;  %v11577_v63 = vld [vmem:[#allocation2 + $0xf48] sm:$0xff]   ;;  %v11598_v31 = vld [vmem:[#allocation2 + $0xf30] sm:$0xff]  }
 0x211   :  { %v10320_v46 = vpop.f32.mrb[31].mxu1  ;;  %10620 = vmatprep.subr.bf16.mxu1 %v11567_v42  ;;  %v11599_v35 = vld [vmem:[#allocation2 + $0xff0] sm:$0xff]   ;;  %v11603_v42 = vld [vmem:[#allocation2 + $0xff8] sm:$0xff]  }
 0x212   :  { %v12191_v44 = vadd.f32 %v10318_v41, %v7667_v40  ;;  %10599 = vmatpush3.bf16.msra.mxu0 %v11566_v39  ;;  %v11600_v37 = vld [vmem:[#allocation2 + $0xfb0] sm:$0xff]   ;;  %v11601_v40 = vld [vmem:[#allocation2 + $0xf78] sm:$0xff]   ;;  %v11607_v46 = vld [vmem:[#allocation2 + $0x1000] sm:$0xff]  }
 0x213   :  { %10600 = vmatprep.subr.bf16.mxu0 %v11569_v47  ;;  %v11602_v41 = vld [vmem:[#allocation2 + $0xf38] sm:$0xff]   ;;  %v11608_v47 = vld [vmem:[#allocation2 + $0x10c0] sm:$0xff]  }
 0x214   :  { %10621 = vmatpush3.bf16.msra.mxu1 %v11568_v45  ;;  %v11605_v43 = vld [vmem:[#allocation2 + $0xfb8] sm:$0xff]   ;;  %v11606_v45 = vld [vmem:[#allocation2 + $0x1040] sm:$0xff]  }
 0x215   :  { %10622 = vmatprep.subr.bf16.mxu1 %v11571_v49 }
 0x216   :  { %10601 = vmatpush3.bf16.msra.mxu0 %v11570_v48  ;;  %v11609_v48 = vld [vmem:[#allocation2 + $0x1080] sm:$0xff]  }
 0x217   :  { %10630 = vmatprep.subr.bf16.mxu0 %v11573_v54  ;;  %v11614_v54 = vld [vmem:[#allocation2 + $0x1050] sm:$0xff]  }
 0x218   :  { %10623 = vmatpush3.bf16.msra.mxu1 %v11572_v52  ;;  %v11612_v52 = vld [vmem:[#allocation2 + $0x10c8] sm:$0xff]  }
 0x219   :  { %10652 = vmatprep.subr.bf16.mxu1 %v11575_v58  ;;  %8225 = vmatmul.mubr.bf16.vlgmr.msra.gmra.mrb[56].mxu0 %v2026_v56  ;;  %v11616_v56 = vld [vmem:[#allocation2 + $0x10d0] sm:$0xff]   ;;  %v11618_v58 = vld [vmem:[#allocation2 + $0x1058] sm:$0xff]  }
 0x21a   :  { %10631 = vmatpush3.bf16.msra.mxu0 %v11574_v60  ;;  %8304 = vmatprep.mubr.bf16.mxu0 %v2047_v2  ;;  %v11620_v60 = vld [vmem:[#allocation2 + $0x10d8] sm:$0xff]   ;;  %v11626_v2 = vld [vmem:[#allocation2 + $0x1068] sm:$0xff]  }
 0x21b   :  { %8265 = vmatmul.mubr.bf16.vlgmr.msra.gmra.mrb[56].mxu1 %v2048_v62  ;;  %10632 = vmatprep.subr.bf16.mxu0 %v11577_v63  ;;  %v11622_v62 = vld [vmem:[#allocation2 + $0x1060] sm:$0xff]  }
 0x21c   :  { %10653 = vmatpush3.bf16.msra.mxu1 %v11576_v1  ;;  %8344 = vmatprep.mubr.bf16.mxu1 %v2051_v5  ;;  %v11623_v63 = vld [vmem:[#allocation2 + $0x1020] sm:$0xff]   ;;  %v11628_v5 = vld [vmem:[#allocation2 + $0x10e8] sm:$0xff]  }
 0x21d   :  { %10654 = vmatprep.subr.bf16.mxu1 %v11579_v3  ;;  %v11625_v1 = vld [vmem:[#allocation2 + $0x10a0] sm:$0xff]   ;;  %v11627_v3 = vld [vmem:[#allocation2 + $0x1028] sm:$0xff]  }
 0x21e   :  { %10633 = vmatpush3.bf16.msra.mxu0 %v11578_v4 }
 0x21f   :  { %10634 = vmatprep.subr.bf16.mxu0 %v11581_v6 }
 0x220   :  { %10655 = vmatpush3.bf16.msra.mxu1 %v11580_v7  ;;  %v11629_v7 = vld [vmem:[#allocation2 + $0x10a8] sm:$0xff]  }
 0x221   :  { %10656 = vmatprep.subr.bf16.mxu1 %v11583_v8 }
 0x222   :  { %10635 = vmatpush3.bf16.msra.mxu0 %v11582_v9 }
 0x223   :  { %10636 = vmatprep.subr.bf16.mxu0 %v11585_v10 }
 0x224   :  { %10657 = vmatpush3.bf16.msra.mxu1 %v11584_v11 }
 0x225   :  { %10658 = vmatprep.subr.bf16.mxu1 %v11587_v12 }
 0x226   :  { %10637 = vmatpush3.bf16.msra.mxu0 %v11586_v13  ;;  %v11630_v13 = vld [vmem:[#allocation2 + $0x1070] sm:$0xff]  }
 0x227   :  { %10638 = vmatprep.subr.bf16.mxu0 %v11589_v14  ;;  %v11631_v14 = vld [vmem:[#allocation2 + $0x1030] sm:$0xff]  }
 0x228   :  { %10659 = vmatpush3.bf16.msra.mxu1 %v11588_v15 }
 0x229   :  { %10660 = vmatprep.subr.bf16.mxu1 %v11591_v16 }
 0x22a   :  { %10639 = vmatpush3.bf16.msra.mxu0 %v11590_v17  ;;  %v11632_v17 = vld [vmem:[#allocation2 + $0x10f0] sm:$0xff]  }
 0x22b   :  { %10640 = vmatprep.subr.bf16.mxu0 %v11593_v18 }
 0x22c   :  { %v10338_v20 = vpop.f32.mrb[32].mxu0  ;;  %10661 = vmatpush3.bf16.msra.mxu1 %v11592_v19 }
 0x22d   :  { %v10339_v22 = vpop.f32.mrb[33].mxu0  ;;  %10662 = vmatprep.subr.bf16.mxu1 %v11595_v21 }
 0x22e   :  { %v10340_v24 = vadd.f32 %v10339_v22, %v10338_v20  ;;  %v10341_v25 = vpop.f32.mrb[34].mxu0  ;;  %v10360_v26 = vpop.f32.mrb[32].mxu1  ;;  %10641 = vmatpush3.bf16.msra.mxu0 %v11594_v23  ;;  %v11633_v20 = vld [vmem:[#allocation2 + $0x10b0] sm:$0xff]   ;;  %v11634_v22 = vld [vmem:[#allocation2 + $0x1078] sm:$0xff]  }
 0x22f   :  { %v10342_v29 = vpop.f32.mrb[35].mxu0  ;;  %v10361_v30 = vpop.f32.mrb[33].mxu1  ;;  %10642 = vmatprep.subr.bf16.mxu0 %v11597_v28  ;;  %v11635_v23 = vld [vmem:[#allocation2 + $0x1038] sm:$0xff]   ;;  %v67_v25 = vld [vmem:[%s12332_s0 + $0x40] sm:$0xff] }
 0x230   :  { %v7747_v32 = vadd.f32 %v10340_v24, %v12191_v44  ;;  %v10362_v33 = vadd.f32 %v10361_v30, %v10360_v26  ;;  %v10363_v36 = vpop.f32.mrb[34].mxu1  ;;  %10663 = vmatpush3.bf16.msra.mxu1 %v11596_v27  ;;  %v2033_v44 = vrot.slane %v12199_v57, %v12070_v34  ;;  %v11617_v57 = vld [vmem:[#allocation2 + $0x1090] sm:$0xff]   ;;  %v11636_v24 = vld [vmem:[#allocation2 + $0x10f8] sm:$0xff]   ;;  %v2059_v26 = vrot.slane %v67_v25, %v12070_v34  ;;  %v11638_v29 = vld [vmem:[#allocation2 + $0x1140] sm:$0xff]  }
 0x231   :  { %v10364_v38 = vpop.f32.mrb[35].mxu1  ;;  %10664 = vmatprep.subr.bf16.mxu1 %v11599_v35  ;;  %v11637_v27 = vld [vmem:[#allocation2 + $0x10b8] sm:$0xff]   ;;  %v2052_v28 = vcombine.high %v67_v25, %v67_v25  ;;  %v11639_v36 = vld [vmem:[#allocation2 + $0x1100] sm:$0xff]   ;;  %v11675_v25 = vld [vmem:[#allocation2 + $0x1248] sm:$0xff]  }
 0x232   :  { %v12206_v39 = vadd.f32 %v10362_v33, %v7747_v32  ;;  %10643 = vmatpush3.bf16.msra.mxu0 %v11598_v31  ;;  %v2049_v49 = vcombine.high %v2033_v44, %v2033_v44  ;;  %v2067_v30 = vcombine.high %v2059_v26, %v2059_v26  ;;  %v2075_v31 = vrot.slane %v2059_v26, %v12070_v34  ;;  %v11640_v33 = vld [vmem:[#allocation2 + $0x11c0] sm:$0xff]   ;;  %v11676_v26 = vld [vmem:[#allocation2 + $0x1208] sm:$0xff]  }
 0x233   :  { %10644 = vmatprep.subr.bf16.mxu0 %v11601_v40  ;;  %v12219_v32 = vrot.slane %v2052_v28, %v12070_v34  ;;  %v11678_v28 = vld [vmem:[#allocation2 + $0x1288] sm:$0xff]  }
 0x234   :  { %10665 = vmatpush3.bf16.msra.mxu1 %v11600_v37  ;;  %v2089_v35 = vrot.slane %v2067_v30, %v12070_v34  ;;  %v2097_v38 = vcombine.high %v2075_v31, %v2075_v31  ;;  %v11680_v30 = vld [vmem:[#allocation2 + $0x1210] sm:$0xff]  }
 0x235   :  { %10666 = vmatprep.subr.bf16.mxu1 %v11603_v42  ;;  %v2068_v37 = vcombine.high %v12219_v32, %v12219_v32 }
 0x236   :  { %10645 = vmatpush3.bf16.msra.mxu0 %v11602_v41  ;;  %v2099_v40 = vcombine.high %v2089_v35, %v2089_v35  ;;  %v11641_v41 = vld [vmem:[#allocation2 + $0x1180] sm:$0xff]  }
 0x237   :  { %10674 = vmatprep.subr.bf16.mxu0 %v11606_v45  ;;  %v2096_v42 = vrot.slane %v2068_v37, %v12070_v34  ;;  %v11686_v37 = vld [vmem:[#allocation2 + $0x1298] sm:$0xff]  }
 0x238   :  { %10667 = vmatpush3.bf16.msra.mxu1 %v11605_v43  ;;  %v11644_v43 = vld [vmem:[#allocation2 + $0x11c8] sm:$0xff]  }
 0x239   :  { %8305 = vmatmul.mubr.bf16.vlgmr.msra.gmra.mrb[60].mxu0 %v2033_v44  ;;  %10696 = vmatprep.subr.bf16.mxu1 %v11608_v47  ;;  %v11643_v44 = vld [vmem:[#allocation2 + $0x1108] sm:$0xff]   ;;  %v2100_v45 = vcombine.high %v2096_v42, %v2096_v42 }
 0x23a   :  { %10675 = vmatpush3.bf16.msra.mxu0 %v11607_v46  ;;  %8384 = vmatprep.mubr.bf16.mxu0 %v2089_v35  ;;  %v11646_v46 = vld [vmem:[#allocation2 + $0x1150] sm:$0xff]   ;;  %v11645_v47 = vld [vmem:[#allocation2 + $0x1188] sm:$0xff]   ;;  %v11684_v35 = vld [vmem:[#allocation2 + $0x1218] sm:$0xff]  }
 0x23b   :  { %8345 = vmatmul.mubr.bf16.vlgmr.msra.gmra.mrb[60].mxu1 %v2049_v49  ;;  %10676 = vmatprep.subr.bf16.mxu0 %v11610_v50  ;;  %v11647_v49 = vld [vmem:[#allocation2 + $0x1110] sm:$0xff]   ;;  %v11650_v50 = vld [vmem:[#allocation2 + $0x1158] sm:$0xff]  }
 0x23c   :  { %10697 = vmatpush3.bf16.msra.mxu1 %v11609_v48  ;;  %8424 = vmatprep.mubr.bf16.mxu1 %v2099_v40  ;;  %v11648_v48 = vld [vmem:[#allocation2 + $0x11d0] sm:$0xff]   ;;  %v11689_v40 = vld [vmem:[#allocation2 + $0x12e0] sm:$0xff]  }
 0x23d   :  { %10698 = vmatprep.subr.bf16.mxu1 %v11612_v52  ;;  %v11652_v52 = vld [vmem:[#allocation2 + $0x11d8] sm:$0xff]  }
 0x23e   :  { %10677 = vmatpush3.bf16.msra.mxu0 %v11611_v51  ;;  %v11649_v51 = vld [vmem:[#allocation2 + $0x1190] sm:$0xff]  }
 0x23f   :  { %10678 = vmatprep.subr.bf16.mxu0 %v11614_v54  ;;  %v11654_v54 = vld [vmem:[#allocation2 + $0x1160] sm:$0xff]  }
 0x240   :  { %10699 = vmatpush3.bf16.msra.mxu1 %v11613_v53  ;;  %v11651_v53 = vld [vmem:[#allocation2 + $0x1118] sm:$0xff]  }
 0x241   :  { %10700 = vmatprep.subr.bf16.mxu1 %v11616_v56  ;;  %v11656_v56 = vld [vmem:[#allocation2 + $0x11e0] sm:$0xff]  }
 0x242   :  { %10679 = vmatpush3.bf16.msra.mxu0 %v11615_v55  ;;  %v11653_v55 = vld [vmem:[#allocation2 + $0x1198] sm:$0xff]  }
 0x243   :  { %10680 = vmatprep.subr.bf16.mxu0 %v11618_v58  ;;  %v11658_v58 = vld [vmem:[#allocation2 + $0x1168] sm:$0xff]  }
 0x244   :  { %10701 = vmatpush3.bf16.msra.mxu1 %v11617_v57  ;;  %v11655_v57 = vld [vmem:[#allocation2 + $0x1120] sm:$0xff]  }
 0x245   :  { %10702 = vmatprep.subr.bf16.mxu1 %v11620_v60 }
 0x246   :  { %10681 = vmatpush3.bf16.msra.mxu0 %v11619_v59  ;;  %v11657_v59 = vld [vmem:[#allocation2 + $0x11a0] sm:$0xff]  }
 0x247   :  { %10682 = vmatprep.subr.bf16.mxu0 %v11622_v62 }
 0x248   :  { %10703 = vmatpush3.bf16.msra.mxu1 %v11621_v61  ;;  %v11660_v61 = vld [vmem:[#allocation2 + $0x11e8] sm:$0xff]  }
 0x249   :  { %10704 = vmatprep.subr.bf16.mxu1 %v11624_v0 }
 0x24a   :  { %10683 = vmatpush3.bf16.msra.mxu0 %v11623_v63  ;;  %v11659_v63 = vld [vmem:[#allocation2 + $0x1128] sm:$0xff]  }
 0x24b   :  { %10684 = vmatprep.subr.bf16.mxu0 %v11626_v2 }
 0x24c   :  { %v10382_v4 = vpop.f32.mrb[36].mxu0  ;;  %10705 = vmatpush3.bf16.msra.mxu1 %v11625_v1 }
 0x24d   :  { %v10383_v6 = vpop.f32.mrb[37].mxu0  ;;  %10706 = vmatprep.subr.bf16.mxu1 %v11628_v5 }
 0x24e   :  { %v10384_v8 = vadd.f32 %v10383_v6, %v10382_v4  ;;  %v10385_v9 = vpop.f32.mrb[38].mxu0  ;;  %v10404_v10 = vpop.f32.mrb[36].mxu1  ;;  %10685 = vmatpush3.bf16.msra.mxu0 %v11627_v3  ;;  %v11661_v3 = vld [vmem:[#allocation2 + $0x11a8] sm:$0xff]   ;;  %v11662_v4 = vld [vmem:[#allocation2 + $0x1170] sm:$0xff]  }
 0x24f   :  { %v10386_v11 = vpop.f32.mrb[39].mxu0  ;;  %v10405_v12 = vpop.f32.mrb[37].mxu1  ;;  %10686 = vmatprep.subr.bf16.mxu0 %v11630_v13 }
 0x250   :  { %v7827_v15 = vadd.f32 %v10384_v8, %v12206_v39  ;;  %v10406_v16 = vadd.f32 %v10405_v12, %v10404_v10  ;;  %v10407_v18 = vpop.f32.mrb[38].mxu1  ;;  %10707 = vmatpush3.bf16.msra.mxu1 %v11629_v7  ;;  %v11642_v39 = vld [vmem:[#allocation2 + $0x1148] sm:$0xff]   ;;  %v11663_v7 = vld [vmem:[#allocation2 + $0x1130] sm:$0xff]  }
 0x251   :  { %v10408_v21 = vpop.f32.mrb[39].mxu1  ;;  %10708 = vmatprep.subr.bf16.mxu1 %v11632_v17  ;;  %v11664_v10 = vld [vmem:[#allocation2 + $0x11f0] sm:$0xff]   ;;  %v11668_v17 = vld [vmem:[#allocation2 + $0x11f8] sm:$0xff]  }
 0x252   :  { %v12211_v19 = vadd.f32 %v10406_v16, %v7827_v15  ;;  %10687 = vmatpush3.bf16.msra.mxu0 %v11631_v14  ;;  %v11665_v12 = vld [vmem:[#allocation2 + $0x11b0] sm:$0xff]   ;;  %v11666_v15 = vld [vmem:[#allocation2 + $0x1178] sm:$0xff]   ;;  %v11672_v21 = vld [vmem:[#allocation2 + $0x1200] sm:$0xff]  }
 0x253   :  { %10688 = vmatprep.subr.bf16.mxu0 %v11634_v22  ;;  %v11667_v16 = vld [vmem:[#allocation2 + $0x1138] sm:$0xff]   ;;  %v11673_v22 = vld [vmem:[#allocation2 + $0x12c0] sm:$0xff]  }
 0x254   :  { %10709 = vmatpush3.bf16.msra.mxu1 %v11633_v20  ;;  %v11670_v18 = vld [vmem:[#allocation2 + $0x11b8] sm:$0xff]   ;;  %v11671_v20 = vld [vmem:[#allocation2 + $0x1240] sm:$0xff]  }
 0x255   :  { %10710 = vmatprep.subr.bf16.mxu1 %v11636_v24 }
 0x256   :  { %10689 = vmatpush3.bf16.msra.mxu0 %v11635_v23  ;;  %v11674_v23 = vld [vmem:[#allocation2 + $0x1280] sm:$0xff]  }
 0x257   :  { %10718 = vmatprep.subr.bf16.mxu0 %v11638_v29  ;;  %v11679_v29 = vld [vmem:[#allocation2 + $0x1250] sm:$0xff]  }
 0x258   :  { %10711 = vmatpush3.bf16.msra.mxu1 %v11637_v27  ;;  %v11677_v27 = vld [vmem:[#allocation2 + $0x12c8] sm:$0xff]  }
 0x259   :  { %10740 = vmatprep.subr.bf16.mxu1 %v11640_v33  ;;  %8385 = vmatmul.mubr.bf16.vlgmr.msra.gmra.mrb[64].mxu0 %v2075_v31  ;;  %v11681_v31 = vld [vmem:[#allocation2 + $0x12d0] sm:$0xff]   ;;  %v11683_v33 = vld [vmem:[#allocation2 + $0x1258] sm:$0xff]  }
 0x25a   :  { %10719 = vmatpush3.bf16.msra.mxu0 %v11639_v36  ;;  %8464 = vmatprep.mubr.bf16.mxu0 %v2096_v42  ;;  %v11685_v36 = vld [vmem:[#allocation2 + $0x12d8] sm:$0xff]   ;;  %v11691_v42 = vld [vmem:[#allocation2 + $0x1268] sm:$0xff]  }
 0x25b   :  { %8425 = vmatmul.mubr.bf16.vlgmr.msra.gmra.mrb[64].mxu1 %v2097_v38  ;;  %10720 = vmatprep.subr.bf16.mxu0 %v11642_v39  ;;  %v11687_v38 = vld [vmem:[#allocation2 + $0x1260] sm:$0xff]  }
 0x25c   :  { %10741 = vmatpush3.bf16.msra.mxu1 %v11641_v41  ;;  %8504 = vmatprep.mubr.bf16.mxu1 %v2100_v45  ;;  %v11688_v39 = vld [vmem:[#allocation2 + $0x1220] sm:$0xff]   ;;  %v11693_v45 = vld [vmem:[#allocation2 + $0x12e8] sm:$0xff]  }
 0x25d   :  { %10742 = vmatprep.subr.bf16.mxu1 %v11644_v43  ;;  %v11690_v41 = vld [vmem:[#allocation2 + $0x12a0] sm:$0xff]   ;;  %v11692_v43 = vld [vmem:[#allocation2 + $0x1228] sm:$0xff]  }
 0x25e   :  { %10721 = vmatpush3.bf16.msra.mxu0 %v11643_v44 }
 0x25f   :  { %10722 = vmatprep.subr.bf16.mxu0 %v11646_v46 }
 0x260   :  { %10743 = vmatpush3.bf16.msra.mxu1 %v11645_v47  ;;  %v11694_v47 = vld [vmem:[#allocation2 + $0x12a8] sm:$0xff]  }
 0x261   :  { %10744 = vmatprep.subr.bf16.mxu1 %v11648_v48 }
 0x262   :  { %10723 = vmatpush3.bf16.msra.mxu0 %v11647_v49 }
 0x263   :  { %10724 = vmatprep.subr.bf16.mxu0 %v11650_v50 }
 0x264   :  { %10745 = vmatpush3.bf16.msra.mxu1 %v11649_v51 }
 0x265   :  { %10746 = vmatprep.subr.bf16.mxu1 %v11652_v52 }
 0x266   :  { %10725 = vmatpush3.bf16.msra.mxu0 %v11651_v53  ;;  %v11695_v53 = vld [vmem:[#allocation2 + $0x1270] sm:$0xff]  }
 0x267   :  { %10726 = vmatprep.subr.bf16.mxu0 %v11654_v54  ;;  %v11696_v54 = vld [vmem:[#allocation2 + $0x1230] sm:$0xff]  }
 0x268   :  { %10747 = vmatpush3.bf16.msra.mxu1 %v11653_v55 }
 0x269   :  { %10748 = vmatprep.subr.bf16.mxu1 %v11656_v56 }
 0x26a   :  { %10727 = vmatpush3.bf16.msra.mxu0 %v11655_v57  ;;  %v11697_v57 = vld [vmem:[#allocation2 + $0x12f0] sm:$0xff]  }
 0x26b   :  { %10728 = vmatprep.subr.bf16.mxu0 %v11658_v58 }
 0x26c   :  { %v10426_v60 = vpop.f32.mrb[40].mxu0  ;;  %10749 = vmatpush3.bf16.msra.mxu1 %v11657_v59 }
 0x26d   :  { %v10427_v62 = vpop.f32.mrb[41].mxu0  ;;  %10750 = vmatprep.subr.bf16.mxu1 %v11660_v61 }
 0x26e   :  { %v10428_v0 = vadd.f32 %v10427_v62, %v10426_v60  ;;  %v10429_v1 = vpop.f32.mrb[42].mxu0  ;;  %v10448_v2 = vpop.f32.mrb[40].mxu1  ;;  %10729 = vmatpush3.bf16.msra.mxu0 %v11659_v63  ;;  %v11698_v60 = vld [vmem:[#allocation2 + $0x12b0] sm:$0xff]   ;;  %v11699_v62 = vld [vmem:[#allocation2 + $0x1278] sm:$0xff]  }
 0x26f   :  { %v10430_v5 = vpop.f32.mrb[43].mxu0  ;;  %v10449_v6 = vpop.f32.mrb[41].mxu1  ;;  %10730 = vmatprep.subr.bf16.mxu0 %v11662_v4  ;;  %v11700_v63 = vld [vmem:[#allocation2 + $0x1238] sm:$0xff]   ;;  %v68_v1 = vld [vmem:[%s12332_s0 + $0x48] sm:$0xff] }
 0x270   :  { %v7907_v8 = vadd.f32 %v10428_v0, %v12211_v19  ;;  %v10450_v9 = vadd.f32 %v10449_v6, %v10448_v2  ;;  %v10451_v11 = vpop.f32.mrb[42].mxu1  ;;  %10751 = vmatpush3.bf16.msra.mxu1 %v11661_v3  ;;  %v2082_v19 = vrot.slane %v12219_v32, %v12070_v34  ;;  %v11682_v32 = vld [vmem:[#allocation2 + $0x1290] sm:$0xff]   ;;  %v11701_v0 = vld [vmem:[#allocation2 + $0x12f8] sm:$0xff]   ;;  %v2108_v2 = vrot.slane %v68_v1, %v12070_v34  ;;  %v11703_v5 = vld [vmem:[#allocation2 + $0x1340] sm:$0xff]  }
 0x271   :  { %v10452_v13 = vpop.f32.mrb[43].mxu1  ;;  %10752 = vmatprep.subr.bf16.mxu1 %v11664_v10  ;;  %v11702_v3 = vld [vmem:[#allocation2 + $0x12b8] sm:$0xff]   ;;  %v2101_v4 = vcombine.high %v68_v1, %v68_v1  ;;  %v11704_v11 = vld [vmem:[#allocation2 + $0x1300] sm:$0xff]   ;;  %v11740_v1 = vld [vmem:[#allocation2 + $0x1448] sm:$0xff]  }
 0x272   :  { %v12226_v14 = vadd.f32 %v10450_v9, %v7907_v8  ;;  %10731 = vmatpush3.bf16.msra.mxu0 %v11663_v7  ;;  %v2098_v24 = vcombine.high %v2082_v19, %v2082_v19  ;;  %v2116_v6 = vcombine.high %v2108_v2, %v2108_v2  ;;  %v2124_v7 = vrot.slane %v2108_v2, %v12070_v34  ;;  %v11705_v9 = vld [vmem:[#allocation2 + $0x13c0] sm:$0xff]   ;;  %v11741_v2 = vld [vmem:[#allocation2 + $0x1408] sm:$0xff]  }
 0x273   :  { %10732 = vmatprep.subr.bf16.mxu0 %v11666_v15  ;;  %v12239_v8 = vrot.slane %v2101_v4, %v12070_v34  ;;  %v11743_v4 = vld [vmem:[#allocation2 + $0x1488] sm:$0xff]  }
 0x274   :  { %10753 = vmatpush3.bf16.msra.mxu1 %v11665_v12  ;;  %v2138_v10 = vrot.slane %v2116_v6, %v12070_v34  ;;  %v2146_v13 = vcombine.high %v2124_v7, %v2124_v7  ;;  %v11745_v6 = vld [vmem:[#allocation2 + $0x1410] sm:$0xff]  }
 0x275   :  { %10754 = vmatprep.subr.bf16.mxu1 %v11668_v17  ;;  %v2117_v12 = vcombine.high %v12239_v8, %v12239_v8 }
 0x276   :  { %10733 = vmatpush3.bf16.msra.mxu0 %v11667_v16  ;;  %v2148_v15 = vcombine.high %v2138_v10, %v2138_v10  ;;  %v11706_v16 = vld [vmem:[#allocation2 + $0x1380] sm:$0xff]  }
 0x277   :  { %10762 = vmatprep.subr.bf16.mxu0 %v11671_v20  ;;  %v2145_v17 = vrot.slane %v2117_v12, %v12070_v34  ;;  %v11751_v12 = vld [vmem:[#allocation2 + $0x1498] sm:$0xff]  }
 0x278   :  { %10755 = vmatpush3.bf16.msra.mxu1 %v11670_v18  ;;  %v11709_v18 = vld [vmem:[#allocation2 + $0x13c8] sm:$0xff]  }
 0x279   :  { %8465 = vmatmul.mubr.bf16.vlgmr.msra.gmra.mrb[68].mxu0 %v2082_v19  ;;  %10784 = vmatprep.subr.bf16.mxu1 %v11673_v22  ;;  %v11708_v19 = vld [vmem:[#allocation2 + $0x1308] sm:$0xff]   ;;  %v2149_v20 = vcombine.high %v2145_v17, %v2145_v17 }
 0x27a   :  { %10763 = vmatpush3.bf16.msra.mxu0 %v11672_v21  ;;  %8544 = vmatprep.mubr.bf16.mxu0 %v2138_v10  ;;  %v11711_v21 = vld [vmem:[#allocation2 + $0x1350] sm:$0xff]   ;;  %v11710_v22 = vld [vmem:[#allocation2 + $0x1388] sm:$0xff]   ;;  %v11749_v10 = vld [vmem:[#allocation2 + $0x1418] sm:$0xff]  }
 0x27b   :  { %8505 = vmatmul.mubr.bf16.vlgmr.msra.gmra.mrb[68].mxu1 %v2098_v24  ;;  %10764 = vmatprep.subr.bf16.mxu0 %v11675_v25  ;;  %v11712_v24 = vld [vmem:[#allocation2 + $0x1310] sm:$0xff]   ;;  %v11715_v25 = vld [vmem:[#allocation2 + $0x1358] sm:$0xff]  }
 0x27c   :  { %10785 = vmatpush3.bf16.msra.mxu1 %v11674_v23  ;;  %8584 = vmatprep.mubr.bf16.mxu1 %v2148_v15  ;;  %v11713_v23 = vld [vmem:[#allocation2 + $0x13d0] sm:$0xff]   ;;  %v11754_v15 = vld [vmem:[#allocation2 + $0x14e0] sm:$0xff]  }
 0x27d   :  { %10786 = vmatprep.subr.bf16.mxu1 %v11677_v27  ;;  %v11717_v27 = vld [vmem:[#allocation2 + $0x13d8] sm:$0xff]  }
 0x27e   :  { %10765 = vmatpush3.bf16.msra.mxu0 %v11676_v26  ;;  %v11714_v26 = vld [vmem:[#allocation2 + $0x1390] sm:$0xff]  }
 0x27f   :  { %10766 = vmatprep.subr.bf16.mxu0 %v11679_v29  ;;  %v11719_v29 = vld [vmem:[#allocation2 + $0x1360] sm:$0xff]  }
 0x280   :  { %10787 = vmatpush3.bf16.msra.mxu1 %v11678_v28  ;;  %v11716_v28 = vld [vmem:[#allocation2 + $0x1318] sm:$0xff]  }
 0x281   :  { %10788 = vmatprep.subr.bf16.mxu1 %v11681_v31  ;;  %v11721_v31 = vld [vmem:[#allocation2 + $0x13e0] sm:$0xff]  }
 0x282   :  { %10767 = vmatpush3.bf16.msra.mxu0 %v11680_v30  ;;  %v11718_v30 = vld [vmem:[#allocation2 + $0x1398] sm:$0xff]  }
 0x283   :  { %10768 = vmatprep.subr.bf16.mxu0 %v11683_v33  ;;  %v11723_v33 = vld [vmem:[#allocation2 + $0x1368] sm:$0xff]  }
 0x284   :  { %10789 = vmatpush3.bf16.msra.mxu1 %v11682_v32  ;;  %v11720_v32 = vld [vmem:[#allocation2 + $0x1320] sm:$0xff]  }
 0x285   :  { %10790 = vmatprep.subr.bf16.mxu1 %v11685_v36 }
 0x286   :  { %10769 = vmatpush3.bf16.msra.mxu0 %v11684_v35  ;;  %v11722_v35 = vld [vmem:[#allocation2 + $0x13a0] sm:$0xff]  }
 0x287   :  { %10770 = vmatprep.subr.bf16.mxu0 %v11687_v38 }
 0x288   :  { %10791 = vmatpush3.bf16.msra.mxu1 %v11686_v37  ;;  %v11725_v37 = vld [vmem:[#allocation2 + $0x13e8] sm:$0xff]  }
 0x289   :  { %10792 = vmatprep.subr.bf16.mxu1 %v11689_v40 }
 0x28a   :  { %10771 = vmatpush3.bf16.msra.mxu0 %v11688_v39  ;;  %v11724_v39 = vld [vmem:[#allocation2 + $0x1328] sm:$0xff]  }
 0x28b   :  { %10772 = vmatprep.subr.bf16.mxu0 %v11691_v42 }
 0x28c   :  { %v10470_v44 = vpop.f32.mrb[44].mxu0  ;;  %10793 = vmatpush3.bf16.msra.mxu1 %v11690_v41 }
 0x28d   :  { %v10471_v46 = vpop.f32.mrb[45].mxu0  ;;  %10794 = vmatprep.subr.bf16.mxu1 %v11693_v45 }
 0x28e   :  { %v10472_v48 = vadd.f32 %v10471_v46, %v10470_v44  ;;  %v10473_v49 = vpop.f32.mrb[46].mxu0  ;;  %v10492_v50 = vpop.f32.mrb[44].mxu1  ;;  %10773 = vmatpush3.bf16.msra.mxu0 %v11692_v43  ;;  %v11726_v43 = vld [vmem:[#allocation2 + $0x13a8] sm:$0xff]   ;;  %v11727_v44 = vld [vmem:[#allocation2 + $0x1370] sm:$0xff]  }
 0x28f   :  { %v10474_v51 = vpop.f32.mrb[47].mxu0  ;;  %v10493_v52 = vpop.f32.mrb[45].mxu1  ;;  %10774 = vmatprep.subr.bf16.mxu0 %v11695_v53 }
 0x290   :  { %v7987_v55 = vadd.f32 %v10472_v48, %v12226_v14  ;;  %v10494_v56 = vadd.f32 %v10493_v52, %v10492_v50  ;;  %v10495_v58 = vpop.f32.mrb[46].mxu1  ;;  %10795 = vmatpush3.bf16.msra.mxu1 %v11694_v47  ;;  %v11707_v14 = vld [vmem:[#allocation2 + $0x1348] sm:$0xff]   ;;  %v11728_v47 = vld [vmem:[#allocation2 + $0x1330] sm:$0xff]  }
 0x291   :  { %v10496_v61 = vpop.f32.mrb[47].mxu1  ;;  %10796 = vmatprep.subr.bf16.mxu1 %v11697_v57  ;;  %v11729_v50 = vld [vmem:[#allocation2 + $0x13f0] sm:$0xff]   ;;  %v11733_v57 = vld [vmem:[#allocation2 + $0x13f8] sm:$0xff]  }
 0x292   :  { %v12231_v59 = vadd.f32 %v10494_v56, %v7987_v55  ;;  %10775 = vmatpush3.bf16.msra.mxu0 %v11696_v54  ;;  %v11730_v52 = vld [vmem:[#allocation2 + $0x13b0] sm:$0xff]   ;;  %v11731_v55 = vld [vmem:[#allocation2 + $0x1378] sm:$0xff]   ;;  %v11737_v61 = vld [vmem:[#allocation2 + $0x1400] sm:$0xff]  }
 0x293   :  { %10776 = vmatprep.subr.bf16.mxu0 %v11699_v62  ;;  %v11732_v56 = vld [vmem:[#allocation2 + $0x1338] sm:$0xff]   ;;  %v11738_v62 = vld [vmem:[#allocation2 + $0x14c0] sm:$0xff]  }
 0x294   :  { %10797 = vmatpush3.bf16.msra.mxu1 %v11698_v60  ;;  %v11735_v58 = vld [vmem:[#allocation2 + $0x13b8] sm:$0xff]   ;;  %v11736_v60 = vld [vmem:[#allocation2 + $0x1440] sm:$0xff]  }
 0x295   :  { %10798 = vmatprep.subr.bf16.mxu1 %v11701_v0 }
 0x296   :  { %10777 = vmatpush3.bf16.msra.mxu0 %v11700_v63  ;;  %v11739_v63 = vld [vmem:[#allocation2 + $0x1480] sm:$0xff]  }
 0x297   :  { %10806 = vmatprep.subr.bf16.mxu0 %v11703_v5  ;;  %v11744_v5 = vld [vmem:[#allocation2 + $0x1450] sm:$0xff]  }
 0x298   :  { %10799 = vmatpush3.bf16.msra.mxu1 %v11702_v3  ;;  %v11742_v3 = vld [vmem:[#allocation2 + $0x14c8] sm:$0xff]  }
 0x299   :  { %10828 = vmatprep.subr.bf16.mxu1 %v11705_v9  ;;  %8545 = vmatmul.mubr.bf16.vlgmr.msra.gmra.mrb[72].mxu0 %v2124_v7  ;;  %v11746_v7 = vld [vmem:[#allocation2 + $0x14d0] sm:$0xff]   ;;  %v11748_v9 = vld [vmem:[#allocation2 + $0x1458] sm:$0xff]  }
 0x29a   :  { %10807 = vmatpush3.bf16.msra.mxu0 %v11704_v11  ;;  %8624 = vmatprep.mubr.bf16.mxu0 %v2145_v17  ;;  %v11750_v11 = vld [vmem:[#allocation2 + $0x14d8] sm:$0xff]   ;;  %v11756_v17 = vld [vmem:[#allocation2 + $0x1468] sm:$0xff]  }
 0x29b   :  { %8585 = vmatmul.mubr.bf16.vlgmr.msra.gmra.mrb[72].mxu1 %v2146_v13  ;;  %10808 = vmatprep.subr.bf16.mxu0 %v11707_v14  ;;  %v11752_v13 = vld [vmem:[#allocation2 + $0x1460] sm:$0xff]  }
 0x29c   :  { %10829 = vmatpush3.bf16.msra.mxu1 %v11706_v16  ;;  %8664 = vmatprep.mubr.bf16.mxu1 %v2149_v20  ;;  %v11753_v14 = vld [vmem:[#allocation2 + $0x1420] sm:$0xff]   ;;  %v11758_v20 = vld [vmem:[#allocation2 + $0x14e8] sm:$0xff]  }
 0x29d   :  { %10830 = vmatprep.subr.bf16.mxu1 %v11709_v18  ;;  %v11755_v16 = vld [vmem:[#allocation2 + $0x14a0] sm:$0xff]   ;;  %v11757_v18 = vld [vmem:[#allocation2 + $0x1428] sm:$0xff]  }
 0x29e   :  { %10809 = vmatpush3.bf16.msra.mxu0 %v11708_v19 }
 0x29f   :  { %10810 = vmatprep.subr.bf16.mxu0 %v11711_v21 }
 0x2a0   :  { %10831 = vmatpush3.bf16.msra.mxu1 %v11710_v22  ;;  %v11759_v22 = vld [vmem:[#allocation2 + $0x14a8] sm:$0xff]  }
 0x2a1   :  { %10832 = vmatprep.subr.bf16.mxu1 %v11713_v23 }
 0x2a2   :  { %10811 = vmatpush3.bf16.msra.mxu0 %v11712_v24 }
 0x2a3   :  { %10812 = vmatprep.subr.bf16.mxu0 %v11715_v25 }
 0x2a4   :  { %10833 = vmatpush3.bf16.msra.mxu1 %v11714_v26 }
 0x2a5   :  { %10834 = vmatprep.subr.bf16.mxu1 %v11717_v27 }
 0x2a6   :  { %10813 = vmatpush3.bf16.msra.mxu0 %v11716_v28  ;;  %v11760_v28 = vld [vmem:[#allocation2 + $0x1470] sm:$0xff]  }
 0x2a7   :  { %10814 = vmatprep.subr.bf16.mxu0 %v11719_v29  ;;  %v11761_v29 = vld [vmem:[#allocation2 + $0x1430] sm:$0xff]  }
 0x2a8   :  { %10835 = vmatpush3.bf16.msra.mxu1 %v11718_v30 }
 0x2a9   :  { %10836 = vmatprep.subr.bf16.mxu1 %v11721_v31 }
 0x2aa   :  { %10815 = vmatpush3.bf16.msra.mxu0 %v11720_v32  ;;  %v11762_v32 = vld [vmem:[#allocation2 + $0x14f0] sm:$0xff]  }
 0x2ab   :  { %10816 = vmatprep.subr.bf16.mxu0 %v11723_v33 }
 0x2ac   :  { %v10514_v36 = vpop.f32.mrb[48].mxu0  ;;  %10837 = vmatpush3.bf16.msra.mxu1 %v11722_v35 }
 0x2ad   :  { %v10515_v38 = vpop.f32.mrb[49].mxu0  ;;  %10838 = vmatprep.subr.bf16.mxu1 %v11725_v37 }
 0x2ae   :  { %v10516_v40 = vadd.f32 %v10515_v38, %v10514_v36  ;;  %v10517_v41 = vpop.f32.mrb[50].mxu0  ;;  %v10536_v42 = vpop.f32.mrb[48].mxu1  ;;  %10817 = vmatpush3.bf16.msra.mxu0 %v11724_v39  ;;  %v11763_v36 = vld [vmem:[#allocation2 + $0x14b0] sm:$0xff]   ;;  %v11764_v38 = vld [vmem:[#allocation2 + $0x1478] sm:$0xff]  }
 0x2af   :  { %v10518_v45 = vpop.f32.mrb[51].mxu0  ;;  %v10537_v46 = vpop.f32.mrb[49].mxu1  ;;  %10818 = vmatprep.subr.bf16.mxu0 %v11727_v44  ;;  %v11765_v39 = vld [vmem:[#allocation2 + $0x1438] sm:$0xff]   ;;  %v69_v41 = vld [vmem:[%s12332_s0 + $0x50] sm:$0xff] }
 0x2b0   :  { %v8067_v48 = vadd.f32 %v10516_v40, %v12231_v59  ;;  %v10538_v49 = vadd.f32 %v10537_v46, %v10536_v42  ;;  %v10539_v51 = vpop.f32.mrb[50].mxu1  ;;  %10839 = vmatpush3.bf16.msra.mxu1 %v11726_v43  ;;  %v2131_v59 = vrot.slane %v12239_v8, %v12070_v34  ;;  %v11747_v8 = vld [vmem:[#allocation2 + $0x1490] sm:$0xff]   ;;  %v11766_v40 = vld [vmem:[#allocation2 + $0x14f8] sm:$0xff]   ;;  %v2157_v42 = vrot.slane %v69_v41, %v12070_v34  ;;  %v11768_v45 = vld [vmem:[#allocation2 + $0x1540] sm:$0xff]  }
 0x2b1   :  { %v10540_v53 = vpop.f32.mrb[51].mxu1  ;;  %10840 = vmatprep.subr.bf16.mxu1 %v11729_v50  ;;  %v11767_v43 = vld [vmem:[#allocation2 + $0x14b8] sm:$0xff]   ;;  %v2150_v44 = vcombine.high %v69_v41, %v69_v41  ;;  %v11769_v51 = vld [vmem:[#allocation2 + $0x1500] sm:$0xff]   ;;  %v11805_v41 = vld [vmem:[#allocation2 + $0x1648] sm:$0xff]  }
 0x2b2   :  { %v12246_v54 = vadd.f32 %v10538_v49, %v8067_v48  ;;  %10819 = vmatpush3.bf16.msra.mxu0 %v11728_v47  ;;  %v2147_v0 = vcombine.high %v2131_v59, %v2131_v59  ;;  %v2165_v46 = vcombine.high %v2157_v42, %v2157_v42  ;;  %v2173_v47 = vrot.slane %v2157_v42, %v12070_v34  ;;  %v11770_v49 = vld [vmem:[#allocation2 + $0x15c0] sm:$0xff]   ;;  %v11806_v42 = vld [vmem:[#allocation2 + $0x1608] sm:$0xff]  }
 0x2b3   :  { %10820 = vmatprep.subr.bf16.mxu0 %v11731_v55  ;;  %v12259_v48 = vrot.slane %v2150_v44, %v12070_v34  ;;  %v11808_v44 = vld [vmem:[#allocation2 + $0x1688] sm:$0xff]  }
 0x2b4   :  { %10841 = vmatpush3.bf16.msra.mxu1 %v11730_v52  ;;  %v2187_v50 = vrot.slane %v2165_v46, %v12070_v34  ;;  %v2195_v53 = vcombine.high %v2173_v47, %v2173_v47  ;;  %v11810_v46 = vld [vmem:[#allocation2 + $0x1610] sm:$0xff]  }
 0x2b5   :  { %10842 = vmatprep.subr.bf16.mxu1 %v11733_v57  ;;  %v2166_v52 = vcombine.high %v12259_v48, %v12259_v48 }
 0x2b6   :  { %10821 = vmatpush3.bf16.msra.mxu0 %v11732_v56  ;;  %v2197_v55 = vcombine.high %v2187_v50, %v2187_v50  ;;  %v11771_v56 = vld [vmem:[#allocation2 + $0x1580] sm:$0xff]  }
 0x2b7   :  { %10850 = vmatprep.subr.bf16.mxu0 %v11736_v60  ;;  %v2194_v57 = vrot.slane %v2166_v52, %v12070_v34  ;;  %v11816_v52 = vld [vmem:[#allocation2 + $0x1698] sm:$0xff]  }
 0x2b8   :  { %10843 = vmatpush3.bf16.msra.mxu1 %v11735_v58  ;;  %v11774_v58 = vld [vmem:[#allocation2 + $0x15c8] sm:$0xff]  }
 0x2b9   :  { %8625 = vmatmul.mubr.bf16.vlgmr.msra.gmra.mrb[76].mxu0 %v2131_v59  ;;  %10872 = vmatprep.subr.bf16.mxu1 %v11738_v62  ;;  %v11773_v59 = vld [vmem:[#allocation2 + $0x1508] sm:$0xff]   ;;  %v2198_v60 = vcombine.high %v2194_v57, %v2194_v57 }
 0x2ba   :  { %10851 = vmatpush3.bf16.msra.mxu0 %v11737_v61  ;;  %8704 = vmatprep.mubr.bf16.mxu0 %v2187_v50  ;;  %v11776_v61 = vld [vmem:[#allocation2 + $0x1550] sm:$0xff]   ;;  %v11775_v62 = vld [vmem:[#allocation2 + $0x1588] sm:$0xff]   ;;  %v11814_v50 = vld [vmem:[#allocation2 + $0x1618] sm:$0xff]  }
 0x2bb   :  { %8665 = vmatmul.mubr.bf16.vlgmr.msra.gmra.mrb[76].mxu1 %v2147_v0  ;;  %10852 = vmatprep.subr.bf16.mxu0 %v11740_v1  ;;  %v11777_v0 = vld [vmem:[#allocation2 + $0x1510] sm:$0xff]   ;;  %v11780_v1 = vld [vmem:[#allocation2 + $0x1558] sm:$0xff]  }
 0x2bc   :  { %10873 = vmatpush3.bf16.msra.mxu1 %v11739_v63  ;;  %8744 = vmatprep.mubr.bf16.mxu1 %v2197_v55  ;;  %v11778_v63 = vld [vmem:[#allocation2 + $0x15d0] sm:$0xff]   ;;  %v11819_v55 = vld [vmem:[#allocation2 + $0x16e0] sm:$0xff]  }
 0x2bd   :  { %10874 = vmatprep.subr.bf16.mxu1 %v11742_v3  ;;  %v11782_v3 = vld [vmem:[#allocation2 + $0x15d8] sm:$0xff]  }
 0x2be   :  { %10853 = vmatpush3.bf16.msra.mxu0 %v11741_v2  ;;  %v11779_v2 = vld [vmem:[#allocation2 + $0x1590] sm:$0xff]  }
 0x2bf   :  { %10854 = vmatprep.subr.bf16.mxu0 %v11744_v5  ;;  %v11784_v5 = vld [vmem:[#allocation2 + $0x1560] sm:$0xff]  }
 0x2c0   :  { %10875 = vmatpush3.bf16.msra.mxu1 %v11743_v4  ;;  %v11781_v4 = vld [vmem:[#allocation2 + $0x1518] sm:$0xff]  }
 0x2c1   :  { %10876 = vmatprep.subr.bf16.mxu1 %v11746_v7  ;;  %v11786_v7 = vld [vmem:[#allocation2 + $0x15e0] sm:$0xff]  }
 0x2c2   :  { %10855 = vmatpush3.bf16.msra.mxu0 %v11745_v6  ;;  %v11783_v6 = vld [vmem:[#allocation2 + $0x1598] sm:$0xff]  }
 0x2c3   :  { %10856 = vmatprep.subr.bf16.mxu0 %v11748_v9  ;;  %v11788_v9 = vld [vmem:[#allocation2 + $0x1568] sm:$0xff]  }
 0x2c4   :  { %10877 = vmatpush3.bf16.msra.mxu1 %v11747_v8  ;;  %v11785_v8 = vld [vmem:[#allocation2 + $0x1520] sm:$0xff]  }
 0x2c5   :  { %10878 = vmatprep.subr.bf16.mxu1 %v11750_v11 }
 0x2c6   :  { %10857 = vmatpush3.bf16.msra.mxu0 %v11749_v10  ;;  %v11787_v10 = vld [vmem:[#allocation2 + $0x15a0] sm:$0xff]  }
 0x2c7   :  { %10858 = vmatprep.subr.bf16.mxu0 %v11752_v13 }
 0x2c8   :  { %10879 = vmatpush3.bf16.msra.mxu1 %v11751_v12  ;;  %v11790_v12 = vld [vmem:[#allocation2 + $0x15e8] sm:$0xff]  }
 0x2c9   :  { %10880 = vmatprep.subr.bf16.mxu1 %v11754_v15 }
 0x2ca   :  { %10859 = vmatpush3.bf16.msra.mxu0 %v11753_v14  ;;  %v11789_v14 = vld [vmem:[#allocation2 + $0x1528] sm:$0xff]  }
 0x2cb   :  { %10860 = vmatprep.subr.bf16.mxu0 %v11756_v17 }
 0x2cc   :  { %v10558_v19 = vpop.f32.mrb[52].mxu0  ;;  %10881 = vmatpush3.bf16.msra.mxu1 %v11755_v16 }
 0x2cd   :  { %v10559_v21 = vpop.f32.mrb[53].mxu0  ;;  %10882 = vmatprep.subr.bf16.mxu1 %v11758_v20 }
 0x2ce   :  { %v10560_v23 = vadd.f32 %v10559_v21, %v10558_v19  ;;  %v10561_v24 = vpop.f32.mrb[54].mxu0  ;;  %v10580_v25 = vpop.f32.mrb[52].mxu1  ;;  %10861 = vmatpush3.bf16.msra.mxu0 %v11757_v18  ;;  %v11791_v18 = vld [vmem:[#allocation2 + $0x15a8] sm:$0xff]   ;;  %v11792_v19 = vld [vmem:[#allocation2 + $0x1570] sm:$0xff]  }
 0x2cf   :  { %v10562_v26 = vpop.f32.mrb[55].mxu0  ;;  %v10581_v27 = vpop.f32.mrb[53].mxu1  ;;  %10862 = vmatprep.subr.bf16.mxu0 %v11760_v28 }
 0x2d0   :  { %v8147_v30 = vadd.f32 %v10560_v23, %v12246_v54  ;;  %v10582_v31 = vadd.f32 %v10581_v27, %v10580_v25  ;;  %v10583_v33 = vpop.f32.mrb[54].mxu1  ;;  %10883 = vmatpush3.bf16.msra.mxu1 %v11759_v22  ;;  %v11772_v54 = vld [vmem:[#allocation2 + $0x1548] sm:$0xff]   ;;  %v11793_v22 = vld [vmem:[#allocation2 + $0x1530] sm:$0xff]  }
 0x2d1   :  { %v10584_v37 = vpop.f32.mrb[55].mxu1  ;;  %10884 = vmatprep.subr.bf16.mxu1 %v11762_v32  ;;  %v11794_v25 = vld [vmem:[#allocation2 + $0x15f0] sm:$0xff]   ;;  %v11798_v32 = vld [vmem:[#allocation2 + $0x15f8] sm:$0xff]  }
 0x2d2   :  { %v12251_v35 = vadd.f32 %v10582_v31, %v8147_v30  ;;  %10863 = vmatpush3.bf16.msra.mxu0 %v11761_v29  ;;  %v11795_v27 = vld [vmem:[#allocation2 + $0x15b0] sm:$0xff]   ;;  %v11796_v30 = vld [vmem:[#allocation2 + $0x1578] sm:$0xff]   ;;  %v11802_v37 = vld [vmem:[#allocation2 + $0x1600] sm:$0xff]  }
 0x2d3   :  { %10864 = vmatprep.subr.bf16.mxu0 %v11764_v38  ;;  %v11797_v31 = vld [vmem:[#allocation2 + $0x1538] sm:$0xff]   ;;  %v11803_v38 = vld [vmem:[#allocation2 + $0x16c0] sm:$0xff]  }
 0x2d4   :  { %10885 = vmatpush3.bf16.msra.mxu1 %v11763_v36  ;;  %v11800_v33 = vld [vmem:[#allocation2 + $0x15b8] sm:$0xff]   ;;  %v11801_v36 = vld [vmem:[#allocation2 + $0x1640] sm:$0xff]  }
 0x2d5   :  { %10886 = vmatprep.subr.bf16.mxu1 %v11766_v40 }
 0x2d6   :  { %10865 = vmatpush3.bf16.msra.mxu0 %v11765_v39  ;;  %v11804_v39 = vld [vmem:[#allocation2 + $0x1680] sm:$0xff]  }
 0x2d7   :  { %10894 = vmatprep.subr.bf16.mxu0 %v11768_v45  ;;  %v11809_v45 = vld [vmem:[#allocation2 + $0x1650] sm:$0xff]  }
 0x2d8   :  { %10887 = vmatpush3.bf16.msra.mxu1 %v11767_v43  ;;  %v11807_v43 = vld [vmem:[#allocation2 + $0x16c8] sm:$0xff]  }
 0x2d9   :  { %10916 = vmatprep.subr.bf16.mxu1 %v11770_v49  ;;  %8705 = vmatmul.mubr.bf16.vlgmr.msra.gmra.mrb[80].mxu0 %v2173_v47  ;;  %v11811_v47 = vld [vmem:[#allocation2 + $0x16d0] sm:$0xff]   ;;  %v11813_v49 = vld [vmem:[#allocation2 + $0x1658] sm:$0xff]  }
 0x2da   :  { %10895 = vmatpush3.bf16.msra.mxu0 %v11769_v51  ;;  %8784 = vmatprep.mubr.bf16.mxu0 %v2194_v57  ;;  %v11815_v51 = vld [vmem:[#allocation2 + $0x16d8] sm:$0xff]   ;;  %v11821_v57 = vld [vmem:[#allocation2 + $0x1668] sm:$0xff]  }
 0x2db   :  { %8745 = vmatmul.mubr.bf16.vlgmr.msra.gmra.mrb[80].mxu1 %v2195_v53  ;;  %10896 = vmatprep.subr.bf16.mxu0 %v11772_v54  ;;  %v11817_v53 = vld [vmem:[#allocation2 + $0x1660] sm:$0xff]  }
 0x2dc   :  { %10917 = vmatpush3.bf16.msra.mxu1 %v11771_v56  ;;  %8824 = vmatprep.mubr.bf16.mxu1 %v2198_v60  ;;  %v11818_v54 = vld [vmem:[#allocation2 + $0x1620] sm:$0xff]   ;;  %v11823_v60 = vld [vmem:[#allocation2 + $0x16e8] sm:$0xff]  }
 0x2dd   :  { %10918 = vmatprep.subr.bf16.mxu1 %v11774_v58  ;;  %v11820_v56 = vld [vmem:[#allocation2 + $0x16a0] sm:$0xff]   ;;  %v11822_v58 = vld [vmem:[#allocation2 + $0x1628] sm:$0xff]  }
 0x2de   :  { %10897 = vmatpush3.bf16.msra.mxu0 %v11773_v59 }
 0x2df   :  { %10898 = vmatprep.subr.bf16.mxu0 %v11776_v61 }
 0x2e0   :  { %10919 = vmatpush3.bf16.msra.mxu1 %v11775_v62  ;;  %v11824_v62 = vld [vmem:[#allocation2 + $0x16a8] sm:$0xff]  }
 0x2e1   :  { %10920 = vmatprep.subr.bf16.mxu1 %v11778_v63 }
 0x2e2   :  { %10899 = vmatpush3.bf16.msra.mxu0 %v11777_v0 }
 0x2e3   :  { %10900 = vmatprep.subr.bf16.mxu0 %v11780_v1 }
 0x2e4   :  { %10921 = vmatpush3.bf16.msra.mxu1 %v11779_v2 }
 0x2e5   :  { %10922 = vmatprep.subr.bf16.mxu1 %v11782_v3 }
 0x2e6   :  { %10901 = vmatpush3.bf16.msra.mxu0 %v11781_v4  ;;  %v11825_v4 = vld [vmem:[#allocation2 + $0x1670] sm:$0xff]  }
 0x2e7   :  { %10902 = vmatprep.subr.bf16.mxu0 %v11784_v5  ;;  %v11826_v5 = vld [vmem:[#allocation2 + $0x1630] sm:$0xff]  }
 0x2e8   :  { %10923 = vmatpush3.bf16.msra.mxu1 %v11783_v6 }
 0x2e9   :  { %10924 = vmatprep.subr.bf16.mxu1 %v11786_v7 }
 0x2ea   :  { %10903 = vmatpush3.bf16.msra.mxu0 %v11785_v8  ;;  %v11827_v8 = vld [vmem:[#allocation2 + $0x16f0] sm:$0xff]  }
 0x2eb   :  { %10904 = vmatprep.subr.bf16.mxu0 %v11788_v9 }
 0x2ec   :  { %v10602_v11 = vpop.f32.mrb[56].mxu0  ;;  %10925 = vmatpush3.bf16.msra.mxu1 %v11787_v10 }
 0x2ed   :  { %v10603_v13 = vpop.f32.mrb[57].mxu0  ;;  %10926 = vmatprep.subr.bf16.mxu1 %v11790_v12 }
 0x2ee   :  { %v10604_v15 = vadd.f32 %v10603_v13, %v10602_v11  ;;  %v10605_v16 = vpop.f32.mrb[58].mxu0  ;;  %v10624_v17 = vpop.f32.mrb[56].mxu1  ;;  %10905 = vmatpush3.bf16.msra.mxu0 %v11789_v14  ;;  %v11828_v11 = vld [vmem:[#allocation2 + $0x16b0] sm:$0xff]   ;;  %v11829_v13 = vld [vmem:[#allocation2 + $0x1678] sm:$0xff]  }
 0x2ef   :  { %v10606_v20 = vpop.f32.mrb[59].mxu0  ;;  %v10625_v21 = vpop.f32.mrb[57].mxu1  ;;  %10906 = vmatprep.subr.bf16.mxu0 %v11792_v19  ;;  %v11830_v14 = vld [vmem:[#allocation2 + $0x1638] sm:$0xff]  }
 0x2f0   :  { %v8227_v23 = vadd.f32 %v10604_v15, %v12251_v35  ;;  %v10626_v24 = vadd.f32 %v10625_v21, %v10624_v17  ;;  %v10627_v26 = vpop.f32.mrb[58].mxu1  ;;  %10927 = vmatpush3.bf16.msra.mxu1 %v11791_v18  ;;  %v2180_v35 = vrot.slane %v12259_v48, %v12070_v34  ;;  %v11812_v48 = vld [vmem:[#allocation2 + $0x1690] sm:$0xff]   ;;  %v11831_v15 = vld [vmem:[#allocation2 + $0x16f8] sm:$0xff]   ;;  %v11833_v20 = vld [vmem:[#allocation2 + $0x1740] sm:$0xff]  }
 0x2f1   :  { %v10628_v28 = vpop.f32.mrb[59].mxu1  ;;  %10928 = vmatprep.subr.bf16.mxu1 %v11794_v25  ;;  %v70_v16 = vld [vmem:[%s12332_s0 + $0x58] sm:$0xff]  ;;  %v11834_v26 = vld [vmem:[#allocation2 + $0x1700] sm:$0xff]  }
 0x2f2   :  { %v12266_v29 = vadd.f32 %v10626_v24, %v8227_v23  ;;  %10907 = vmatpush3.bf16.msra.mxu0 %v11793_v22  ;;  %v2196_v40 = vcombine.high %v2180_v35, %v2180_v35  ;;  %v2206_v17 = vrot.slane %v70_v16, %v12070_v34  ;;  %v11832_v18 = vld [vmem:[#allocation2 + $0x16b8] sm:$0xff]   ;;  %v2199_v19 = vcombine.high %v70_v16, %v70_v16  ;;  %v11835_v24 = vld [vmem:[#allocation2 + $0x17c0] sm:$0xff]   ;;  %v11870_v16 = vld [vmem:[#allocation2 + $0x1850] sm:$0xff]  }
 0x2f3   :  { %10908 = vmatprep.subr.bf16.mxu0 %v11796_v30 }
 0x2f4   :  { %10929 = vmatpush3.bf16.msra.mxu1 %v11795_v27  ;;  %v2214_v21 = vcombine.high %v2206_v17, %v2206_v17  ;;  %v2222_v22 = vrot.slane %v2206_v17, %v12070_v34  ;;  %v12279_v23 = vrot.slane %v2199_v19, %v12070_v34  ;;  %v11871_v17 = vld [vmem:[#allocation2 + $0x1810] sm:$0xff]   ;;  %v11873_v19 = vld [vmem:[#allocation2 + $0x1818] sm:$0xff]  }
 0x2f5   :  { %10930 = vmatprep.subr.bf16.mxu1 %v11798_v32 }
 0x2f6   :  { %10909 = vmatpush3.bf16.msra.mxu0 %v11797_v31  ;;  %v2236_v25 = vrot.slane %v2214_v21, %v12070_v34  ;;  %v2215_v27 = vcombine.high %v12279_v23, %v12279_v23  ;;  %v2244_v28 = vcombine.high %v2222_v22, %v2222_v22  ;;  %v11836_v31 = vld [vmem:[#allocation2 + $0x1780] sm:$0xff]  }
 0x2f7   :  { %10938 = vmatprep.subr.bf16.mxu0 %v11801_v36  ;;  %v9176_v21 = vld.sshfl [vmem:[%s12332_s0 + $0x60] sm:$0x11 pattern:$0x75316420] }
 0x2f8   :  { %10931 = vmatpush3.bf16.msra.mxu1 %v11800_v33  ;;  %v2246_v30 = vcombine.high %v2236_v25, %v2236_v25  ;;  %v2243_v32 = vrot.slane %v2215_v27, %v12070_v34  ;;  %v11839_v33 = vld [vmem:[#allocation2 + $0x17c8] sm:$0xff]  }
 0x2f9   :  { %8785 = vmatmul.mubr.bf16.vlgmr.msra.gmra.mrb[84].mxu0 %v2180_v35  ;;  %10960 = vmatprep.subr.bf16.mxu1 %v11803_v38  ;;  %v11838_v35 = vld [vmem:[#allocation2 + $0x1708] sm:$0xff]  }
 0x2fa   :  { %10939 = vmatpush3.bf16.msra.mxu0 %v11802_v37  ;;  %8864 = vmatprep.mubr.bf16.mxu0 %v2236_v25  ;;  %v2247_v36 = vcombine.high %v2243_v32, %v2243_v32  ;;  %v11841_v37 = vld [vmem:[#allocation2 + $0x1750] sm:$0xff]   ;;  %v11840_v38 = vld [vmem:[#allocation2 + $0x1788] sm:$0xff]  }
 0x2fb   :  { %8825 = vmatmul.mubr.bf16.vlgmr.msra.gmra.mrb[84].mxu1 %v2196_v40  ;;  %10940 = vmatprep.subr.bf16.mxu0 %v11805_v41  ;;  %v11842_v40 = vld [vmem:[#allocation2 + $0x1710] sm:$0xff]   ;;  %v11845_v41 = vld [vmem:[#allocation2 + $0x1758] sm:$0xff]  }
 0x2fc   :  { %10961 = vmatpush3.bf16.msra.mxu1 %v11804_v39  ;;  %8904 = vmatprep.mubr.bf16.mxu1 %v2246_v30  ;;  %v11843_v39 = vld [vmem:[#allocation2 + $0x17d0] sm:$0xff]  }
 0x2fd   :  { %10962 = vmatprep.subr.bf16.mxu1 %v11807_v43  ;;  %v11847_v43 = vld [vmem:[#allocation2 + $0x17d8] sm:$0xff]  }
 0x2fe   :  { %10941 = vmatpush3.bf16.msra.mxu0 %v11806_v42  ;;  %v11844_v42 = vld [vmem:[#allocation2 + $0x1790] sm:$0xff]  }
 0x2ff   :  { %10942 = vmatprep.subr.bf16.mxu0 %v11809_v45  ;;  %v11849_v45 = vld [vmem:[#allocation2 + $0x1760] sm:$0xff]  }
 0x300   :  { %10963 = vmatpush3.bf16.msra.mxu1 %v11808_v44  ;;  %v11846_v44 = vld [vmem:[#allocation2 + $0x1718] sm:$0xff]  }
 0x301   :  { %10964 = vmatprep.subr.bf16.mxu1 %v11811_v47  ;;  %v11851_v47 = vld [vmem:[#allocation2 + $0x17e0] sm:$0xff]  }
 0x302   :  { %10943 = vmatpush3.bf16.msra.mxu0 %v11810_v46  ;;  %v11848_v46 = vld [vmem:[#allocation2 + $0x1798] sm:$0xff]  }
 0x303   :  { %10944 = vmatprep.subr.bf16.mxu0 %v11813_v49  ;;  %v11853_v49 = vld [vmem:[#allocation2 + $0x1768] sm:$0xff]  }
 0x304   :  { %10965 = vmatpush3.bf16.msra.mxu1 %v11812_v48  ;;  %v11850_v48 = vld [vmem:[#allocation2 + $0x1720] sm:$0xff]  }
 0x305   :  { %10966 = vmatprep.subr.bf16.mxu1 %v11815_v51 }
 0x306   :  { %10945 = vmatpush3.bf16.msra.mxu0 %v11814_v50  ;;  %v11852_v50 = vld [vmem:[#allocation2 + $0x17a0] sm:$0xff]  }
 0x307   :  { %10946 = vmatprep.subr.bf16.mxu0 %v11817_v53 }
 0x308   :  { %10967 = vmatpush3.bf16.msra.mxu1 %v11816_v52  ;;  %v11855_v52 = vld [vmem:[#allocation2 + $0x17e8] sm:$0xff]  }
 0x309   :  { %10968 = vmatprep.subr.bf16.mxu1 %v11819_v55 }
 0x30a   :  { %10947 = vmatpush3.bf16.msra.mxu0 %v11818_v54  ;;  %v11854_v54 = vld [vmem:[#allocation2 + $0x1728] sm:$0xff]  }
 0x30b   :  { %10948 = vmatprep.subr.bf16.mxu0 %v11821_v57 }
 0x30c   :  { %v10646_v59 = vpop.f32.mrb[60].mxu0  ;;  %10969 = vmatpush3.bf16.msra.mxu1 %v11820_v56 }
 0x30d   :  { %v10647_v61 = vpop.f32.mrb[61].mxu0  ;;  %10970 = vmatprep.subr.bf16.mxu1 %v11823_v60 }
 0x30e   :  { %v10648_v63 = vadd.f32 %v10647_v61, %v10646_v59  ;;  %v10649_v0 = vpop.f32.mrb[62].mxu0  ;;  %v10668_v1 = vpop.f32.mrb[60].mxu1  ;;  %10949 = vmatpush3.bf16.msra.mxu0 %v11822_v58  ;;  %v11856_v58 = vld [vmem:[#allocation2 + $0x17a8] sm:$0xff]   ;;  %v11857_v59 = vld [vmem:[#allocation2 + $0x1770] sm:$0xff]  }
 0x30f   :  { %v10650_v2 = vpop.f32.mrb[63].mxu0  ;;  %v10669_v3 = vpop.f32.mrb[61].mxu1  ;;  %10950 = vmatprep.subr.bf16.mxu0 %v11825_v4  ;;  %v11859_v0 = vld [vmem:[#allocation2 + $0x17f0] sm:$0xff]  }
 0x310   :  { %v8307_v6 = vadd.f32 %v10648_v63, %v12266_v29  ;;  %v10670_v7 = vadd.f32 %v10669_v3, %v10668_v1  ;;  %v10671_v9 = vpop.f32.mrb[62].mxu1  ;;  %10971 = vmatpush3.bf16.msra.mxu1 %v11824_v62  ;;  %v11837_v29 = vld [vmem:[#allocation2 + $0x1748] sm:$0xff]   ;;  %v11858_v2 = vld [vmem:[#allocation2 + $0x1730] sm:$0xff]  }
 0x311   :  { %v10672_v12 = vpop.f32.mrb[63].mxu1  ;;  %10972 = vmatprep.subr.bf16.mxu1 %v11827_v8  ;;  %v11862_v8 = vld [vmem:[#allocation2 + $0x1738] sm:$0xff]   ;;  %v2229_v9 = vrot.slane %v12279_v23, %v12070_v34  ;;  %v2255_v23 = vcombine.high %v9176_v21, %v9176_v21 }
 0x312   :  { %v12271_v10 = vadd.f32 %v10670_v7, %v8307_v6  ;;  %10951 = vmatpush3.bf16.msra.mxu0 %v11826_v5  ;;  %v11861_v5 = vld [vmem:[#allocation2 + $0x1778] sm:$0xff]   ;;  %v11860_v6 = vld [vmem:[#allocation2 + $0x17b0] sm:$0xff]   ;;  %v11867_v12 = vld [vmem:[#allocation2 + $0x1800] sm:$0xff]  }
 0x313   :  { %10952 = vmatprep.subr.bf16.mxu0 %v11829_v13  ;;  %v11863_v7 = vld [vmem:[#allocation2 + $0x17f8] sm:$0xff]   ;;  %v2245_v13 = vcombine.high %v2229_v9, %v2229_v9  ;;  %v2269_v25 = vrot.slane %v2255_v23, %v12070_v34 }
 0x314   :  { %10973 = vmatpush3.bf16.msra.mxu1 %v11828_v11  ;;  %v11865_v11 = vld [vmem:[#allocation2 + $0x17b8] sm:$0xff]  }
 0x315   :  { %10974 = vmatprep.subr.bf16.mxu1 %v11831_v15  ;;  %v11869_v15 = vld [vmem:[#allocation2 + $0x1808] sm:$0xff]  }
 0x316   :  { %10953 = vmatpush3.bf16.msra.mxu0 %v11830_v14  ;;  %v11868_v14 = vld [vmem:[#allocation2 + $0x1848] sm:$0xff]  }
 0x317   :  { %10982 = vmatprep.subr.bf16.mxu0 %v11833_v20  ;;  %v11874_v20 = vld [vmem:[#allocation2 + $0x1860] sm:$0xff]  }
 0x318   :  { %10975 = vmatpush3.bf16.msra.mxu1 %v11832_v18  ;;  %v11872_v18 = vld [vmem:[#allocation2 + $0x1858] sm:$0xff]  }
 0x319   :  { %11004 = vmatprep.subr.bf16.mxu1 %v11835_v24  ;;  %8865 = vmatmul.mubr.bf16.vlgmr.msra.gmra.mrb[88].mxu0 %v2222_v22  ;;  %v11875_v22 = vld [vmem:[#allocation2 + $0x1820] sm:$0xff]   ;;  %v11876_v24 = vld [vmem:[#allocation2 + $0x1868] sm:$0xff]  }
 0x31a   :  { %10983 = vmatpush3.bf16.msra.mxu0 %v11834_v26  ;;  %8944 = vmatprep.mubr.bf16.mxu0 %v2243_v32  ;;  %v11878_v32 = vld [vmem:[#allocation2 + $0x1870] sm:$0xff]  }
 0x31b   :  { %8905 = vmatmul.mubr.bf16.vlgmr.msra.gmra.mrb[88].mxu1 %v2244_v28  ;;  %10984 = vmatprep.subr.bf16.mxu0 %v11837_v29  ;;  %v11877_v28 = vld [vmem:[#allocation2 + $0x1828] sm:$0xff]  }
 0x31c   :  { %11005 = vmatpush3.bf16.msra.mxu1 %v11836_v31  ;;  %8984 = vmatprep.mubr.bf16.mxu1 %v2247_v36 }
 0x31d   :  { %11006 = vmatprep.subr.bf16.mxu1 %v11839_v33 }
 0x31e   :  { %10985 = vmatpush3.bf16.msra.mxu0 %v11838_v35 }
 0x31f   :  { %10986 = vmatprep.subr.bf16.mxu0 %v11841_v37 }
 0x320   :  { %11007 = vmatpush3.bf16.msra.mxu1 %v11840_v38 }
 0x321   :  { %11008 = vmatprep.subr.bf16.mxu1 %v11843_v39  ;;  %v11879_v39 = vld [vmem:[#allocation2 + $0x1830] sm:$0xff]  }
 0x322   :  { %10987 = vmatpush3.bf16.msra.mxu0 %v11842_v40 }
 0x323   :  { %10988 = vmatprep.subr.bf16.mxu0 %v11845_v41 }
 0x324   :  { %11009 = vmatpush3.bf16.msra.mxu1 %v11844_v42  ;;  %v11880_v42 = vld [vmem:[#allocation2 + $0x1878] sm:$0xff]  }
 0x325   :  { %11010 = vmatprep.subr.bf16.mxu1 %v11847_v43  ;;  %v11881_v43 = vld [vmem:[#allocation2 + $0x1838] sm:$0xff]  }
 0x326   :  { %10989 = vmatpush3.bf16.msra.mxu0 %v11846_v44  ;;  %v2262_v44 = vrot.slane %v9176_v21, %v12070_v34 }
 0x327   :  { %10990 = vmatprep.subr.bf16.mxu0 %v11849_v45 }
 0x328   :  { %11011 = vmatpush3.bf16.msra.mxu1 %v11848_v46 }
 0x329   :  { %11012 = vmatprep.subr.bf16.mxu1 %v11851_v47 }
 0x32a   :  { %10991 = vmatpush3.bf16.msra.mxu0 %v11850_v48 }
 0x32b   :  { %10992 = vmatprep.subr.bf16.mxu0 %v11853_v49 }
 0x32c   :  { %v10690_v51 = vpop.f32.mrb[64].mxu0  ;;  %11013 = vmatpush3.bf16.msra.mxu1 %v11852_v50 }
 0x32d   :  { %v10691_v53 = vpop.f32.mrb[65].mxu0  ;;  %11014 = vmatprep.subr.bf16.mxu1 %v11855_v52 }
 0x32e   :  { %v10692_v55 = vadd.f32 %v10691_v53, %v10690_v51  ;;  %v10693_v56 = vpop.f32.mrb[66].mxu0  ;;  %v10712_v57 = vpop.f32.mrb[64].mxu1  ;;  %10993 = vmatpush3.bf16.msra.mxu0 %v11854_v54 }
 0x32f   :  { %v10694_v60 = vpop.f32.mrb[67].mxu0  ;;  %v10713_v61 = vpop.f32.mrb[65].mxu1  ;;  %10994 = vmatprep.subr.bf16.mxu0 %v11857_v59 }
 0x330   :  { %v8387_v62 = vadd.f32 %v10692_v55, %v12271_v10  ;;  %v10714_v63 = vadd.f32 %v10713_v61, %v10712_v57  ;;  %v10715_v1 = vpop.f32.mrb[66].mxu1  ;;  %11015 = vmatpush3.bf16.msra.mxu1 %v11856_v58  ;;  %v11866_v10 = vld [vmem:[#allocation2 + $0x1840] sm:$0xff]  }
 0x331   :  { %v10716_v3 = vpop.f32.mrb[67].mxu1  ;;  %11016 = vmatprep.subr.bf16.mxu1 %v11859_v0 }
 0x332   :  { %v8427_v4 = vadd.f32 %v10714_v63, %v8387_v62  ;;  %10995 = vmatpush3.bf16.msra.mxu0 %v11858_v2 }
 0x333   :  { %10996 = vmatprep.subr.bf16.mxu0 %v11861_v5  ;;  %v11994_v5 = vmov 0.0  }
 0x334   :  { %11017 = vmatpush3.bf16.msra.mxu1 %v11860_v6  ;;  %v11883_v6 = vld [vmem:[%s12335_s3 + $0x8] sm:$0xff]  }
 0x335   :  { %11018 = vmatprep.subr.bf16.mxu1 %v11863_v7  ;;  %v11884_v7 = vld [vmem:[%s12335_s3 + $0x10] sm:$0xff]  }
 0x336   :  { %10997 = vmatpush3.bf16.msra.mxu0 %v11862_v8  ;;  %v11885_v8 = vld [vmem:[%s12335_s3 + $0x18] sm:$0xff]  }
 0x337   :  { %11026 = vmatprep.subr.bf16.mxu0 %v11866_v10  ;;  %v11887_v10 = vld [vmem:[%s12335_s3 + $0x28] sm:$0xff]  }
 0x338   :  { %11019 = vmatpush3.bf16.msra.mxu1 %v11865_v11 }
 0x339   :  { %8945 = vmatmul.mubr.bf16.vlgmr.msra.gmra.mrb[92].mxu0 %v2229_v9  ;;  %11057 = vmatprep.subr.bf16.mxu1 %v11994_v5  ;;  %v11886_v9 = vld [vmem:[%s12335_s3 + $0x20] sm:$0xff]  }
 0x33a   :  { %11027 = vmatpush3.bf16.msra.mxu0 %v11867_v12  ;;  %9024 = vmatprep.mubr.bf16.mxu0 %v2269_v25 }
 0x33b   :  { %8985 = vmatmul.mubr.bf16.vlgmr.msra.gmra.mrb[92].mxu1 %v2245_v13  ;;  %11028 = vmatprep.subr.bf16.mxu0 %v11868_v14 }
 0x33c   :  { %11073 = vmatprep.mubr.msk.bf16.mxu1 %vm11995_vm0, %v11994_v5 }
 0x33e   :  { %11029 = vmatpush3.bf16.msra.mxu0 %v11869_v15 }
 0x33f   :  { %11030 = vmatprep.subr.bf16.mxu0 %v11870_v16  ;;  %v11888_v16 = vld [vmem:[%s12335_s3 + $0x30] sm:$0xff]  }
 0x342   :  { %11031 = vmatpush3.bf16.msra.mxu0 %v11871_v17 }
 0x343   :  { %11032 = vmatprep.subr.bf16.mxu0 %v11872_v18 }
 0x346   :  { %11033 = vmatpush3.bf16.msra.mxu0 %v11873_v19 }
 0x347   :  { %11034 = vmatprep.subr.bf16.mxu0 %v11874_v20 }
 0x34a   :  { %11035 = vmatpush3.bf16.msra.mxu0 %v11875_v22 }
 0x34b   :  { %11036 = vmatprep.subr.bf16.mxu0 %v11876_v24  ;;  %v11889_v24 = vld [vmem:[%s12335_s3 + $0x38] sm:$0xff]  }
 0x34c   :  { %v10734_v26 = vpop.f32.mrb[68].mxu0 }
 0x34d   :  { %v10735_v27 = vpop.f32.mrb[69].mxu0 }
 0x34e   :  { %v10736_v29 = vadd.f32 %v10735_v27, %v10734_v26  ;;  %v10737_v30 = vpop.f32.mrb[70].mxu0  ;;  %v10756_v31 = vpop.f32.mrb[68].mxu1  ;;  %11037 = vmatpush3.bf16.msra.mxu0 %v11877_v28 }
 0x34f   :  { %v10738_v33 = vpop.f32.mrb[71].mxu0  ;;  %v10757_v35 = vpop.f32.mrb[69].mxu1  ;;  %11038 = vmatprep.subr.bf16.mxu0 %v11878_v32 }
 0x350   :  { %v8467_v36 = vadd.f32 %v10736_v29, %v8427_v4  ;;  %v10758_v37 = vadd.f32 %v10757_v35, %v10756_v31  ;;  %v10759_v38 = vpop.f32.mrb[70].mxu1  ;;  %v11882_v4 = vld [vmem:[%s12335_s3] sm:$0xff]   ;;  %s11996_s3 = smov [#allocation8]  }
 0x351   :  { %v10760_v40 = vpop.f32.mrb[71].mxu1  ;;  %11058 = vmatpush3.bf16.msra.mxu1 %v11882_v4  ;;  %s9165_s17 = sshll.u32 %s11996_s3, 4  ;;  %s9166_s17 = int_to_ptr.vmem [resolvable:$true] %s9165_s17 }
 0x352   :  { %v8507_v41 = vadd.f32 %v10758_v37, %v8467_v36  ;;  %11039 = vmatpush3.bf16.msra.mxu0 %v11879_v39  ;;  %11059 = vmatprep.subr.bf16.mxu1 %v11994_v5  ;;  %s11960_s18 = scalar_lea.vmem %s9166_s17, 32  ;;  %p11965_p11 = scmp.lt.s32.totalorder %s9166_s17, %s9166_s17 }
 0x353   :  { %11040 = vmatprep.subr.bf16.mxu0 %v11880_v42  ;;  %p11961_p10 = scmp.ne.s32.totalorder %s9166_s17, %s11960_s18  ;;  %p11966_p12 = scmp.lt.s32.totalorder %s11960_s18, %s11960_s18 }
 0x355   :  { %11060 = vmatpush3.bf16.msra.mxu1 %v11883_v6  ;;  %p11967_p13 = por %p11966_p12, %p11965_p11 }
 0x356   :  { %11041 = vmatpush3.bf16.msra.mxu0 %v11881_v43  ;;  %11061 = vmatprep.subr.bf16.mxu1 %v11994_v5 }
 0x357   :  { %p11968_p0 = pnand %p11967_p13, %p11961_p10 }
 0x359   :  { %9025 = vmatmul.mubr.bf16.vlgmr.msra.gmra.mrb[96].mxu0 %v2262_v44  ;;  %11062 = vmatpush3.bf16.msra.mxu1 %v11884_v7 }
 0x35a   :  { %11063 = vmatprep.subr.bf16.mxu1 %v11994_v5 }
 0x35d   :  { %11064 = vmatpush3.bf16.msra.mxu1 %v11885_v8 }
 0x35e   :  { %11065 = vmatprep.subr.bf16.mxu1 %v11994_v5 }
 0x361   :  { %11066 = vmatpush3.bf16.msra.mxu1 %v11886_v9 }
 0x362   :  { %11067 = vmatprep.subr.bf16.mxu1 %v11994_v5 }
 0x365   :  { %11068 = vmatpush3.bf16.msra.mxu1 %v11887_v10 }
 0x366   :  { %11069 = vmatprep.subr.bf16.mxu1 %v11994_v5 }
 0x369   :  { %11070 = vmatpush3.bf16.msra.mxu1 %v11888_v16 }
 0x36a   :  { %11071 = vmatprep.subr.bf16.mxu1 %v11994_v5  ;;  %v9961_v5 = vld [vmem:[#allocation7] ss:$0 sm:$0xff] }
 0x36c   :  { %v10778_v45 = vpop.f32.mrb[72].mxu0 }
 0x36d   :  { %v10779_v46 = vpop.f32.mrb[73].mxu0  ;;  %11072 = vmatpush3.bf16.msra.mxu1 %v11889_v24 }
 0x36e   :  { %v10780_v47 = vadd.f32 %v10779_v46, %v10778_v45  ;;  %v10781_v48 = vpop.f32.mrb[74].mxu0  ;;  %v10800_v49 = vpop.f32.mrb[72].mxu1 }
 0x36f   :  { %v10782_v50 = vpop.f32.mrb[75].mxu0  ;;  %v10801_v51 = vpop.f32.mrb[73].mxu1 }
 0x370   :  { %v8547_v52 = vadd.f32 %v10780_v47, %v8507_v41  ;;  %v10802_v53 = vadd.f32 %v10801_v51, %v10800_v49  ;;  %v10803_v54 = vpop.f32.mrb[74].mxu1 }
 0x371   :  { %v10804_v55 = vpop.f32.mrb[75].mxu1 }
 0x372   :  { %v8587_v56 = vadd.f32 %v10802_v53, %v8547_v52 }
 0x38c   :  { %v10822_v57 = vpop.f32.mrb[76].mxu0 }
 0x38d   :  { %v10823_v58 = vpop.f32.mrb[77].mxu0 }
 0x38e   :  { %v10824_v59 = vadd.f32 %v10823_v58, %v10822_v57  ;;  %v10825_v60 = vpop.f32.mrb[78].mxu0  ;;  %v10844_v61 = vpop.f32.mrb[76].mxu1 }
 0x38f   :  { %v10826_v34 = vpop.f32.mrb[79].mxu0  ;;  %v10845_v62 = vpop.f32.mrb[77].mxu1 }
 0x390   :  { %v8627_v63 = vadd.f32 %v10824_v59, %v8587_v56  ;;  %v10846_v0 = vadd.f32 %v10845_v62, %v10844_v61  ;;  %v10847_v1 = vpop.f32.mrb[78].mxu1 }
 0x391   :  { %v10848_v2 = vpop.f32.mrb[79].mxu1 }
 0x392   :  { %v8667_v3 = vadd.f32 %v10846_v0, %v8627_v63 }
 0x3ac   :  { %v10866_v11 = vpop.f32.mrb[80].mxu0 }
 0x3ad   :  { %v10867_v12 = vpop.f32.mrb[81].mxu0 }
 0x3ae   :  { %v10868_v13 = vadd.f32 %v10867_v12, %v10866_v11  ;;  %v10869_v14 = vpop.f32.mrb[82].mxu0  ;;  %v10888_v15 = vpop.f32.mrb[80].mxu1 }
 0x3af   :  { %v10870_v17 = vpop.f32.mrb[83].mxu0  ;;  %v10889_v18 = vpop.f32.mrb[81].mxu1 }
 0x3b0   :  { %v8707_v19 = vadd.f32 %v10868_v13, %v8667_v3  ;;  %v10890_v20 = vadd.f32 %v10889_v18, %v10888_v15  ;;  %v10891_v21 = vpop.f32.mrb[82].mxu1 }
 0x3b1   :  { %v10892_v22 = vpop.f32.mrb[83].mxu1 }
 0x3b2   :  { %v8747_v23 = vadd.f32 %v10890_v20, %v8707_v19 }
 0x3cc   :  { %v10910_v25 = vpop.f32.mrb[84].mxu0 }
 0x3cd   :  { %v10911_v26 = vpop.f32.mrb[85].mxu0 }
 0x3ce   :  { %v10912_v27 = vadd.f32 %v10911_v26, %v10910_v25  ;;  %v10913_v28 = vpop.f32.mrb[86].mxu0  ;;  %v10932_v29 = vpop.f32.mrb[84].mxu1 }
 0x3cf   :  { %v10914_v30 = vpop.f32.mrb[87].mxu0  ;;  %v10933_v31 = vpop.f32.mrb[85].mxu1 }
 0x3d0   :  { %v8787_v32 = vadd.f32 %v10912_v27, %v8747_v23  ;;  %v10934_v33 = vadd.f32 %v10933_v31, %v10932_v29  ;;  %v10935_v35 = vpop.f32.mrb[86].mxu1 }
 0x3d1   :  { %v10936_v36 = vpop.f32.mrb[87].mxu1 }
 0x3d2   :  { %v8827_v37 = vadd.f32 %v10934_v33, %v8787_v32 }
 0x3ec   :  { %v10954_v38 = vpop.f32.mrb[88].mxu0 }
 0x3ed   :  { %v10955_v39 = vpop.f32.mrb[89].mxu0 }
 0x3ee   :  { %v10956_v40 = vadd.f32 %v10955_v39, %v10954_v38  ;;  %v10957_v41 = vpop.f32.mrb[90].mxu0  ;;  %v10976_v42 = vpop.f32.mrb[88].mxu1 }
 0x3ef   :  { %v10958_v43 = vpop.f32.mrb[91].mxu0  ;;  %v10977_v44 = vpop.f32.mrb[89].mxu1 }
 0x3f0   :  { %v8867_v45 = vadd.f32 %v10956_v40, %v8827_v37  ;;  %v10978_v46 = vadd.f32 %v10977_v44, %v10976_v42  ;;  %v10979_v47 = vpop.f32.mrb[90].mxu1 }
 0x3f1   :  { %v10980_v48 = vpop.f32.mrb[91].mxu1 }
 0x3f2   :  { %v8907_v49 = vadd.f32 %v10978_v46, %v8867_v45 }
 0x40c   :  { %v10998_v50 = vpop.f32.mrb[92].mxu0 }
 0x40d   :  { %v10999_v51 = vpop.f32.mrb[93].mxu0 }
 0x40e   :  { %v11000_v52 = vadd.f32 %v10999_v51, %v10998_v50  ;;  %v11001_v53 = vpop.f32.mrb[94].mxu0  ;;  %v11020_v54 = vpop.f32.mrb[92].mxu1 }
 0x40f   :  { %v11002_v55 = vpop.f32.mrb[95].mxu0  ;;  %v11021_v56 = vpop.f32.mrb[93].mxu1 }
 0x410   :  { %v8947_v57 = vadd.f32 %v11000_v52, %v8907_v49  ;;  %v11022_v58 = vadd.f32 %v11021_v56, %v11020_v54  ;;  %v11023_v59 = vpop.f32.mrb[94].mxu1 }
 0x411   :  { %v11024_v60 = vpop.f32.mrb[95].mxu1 }
 0x412   :  { %v8987_v61 = vadd.f32 %v11022_v58, %v8947_v57 }
 0x42c   :  { %v11042_v34 = vpop.f32.mrb[96].mxu0 }
 0x42d   :  { %v11043_v62 = vpop.f32.mrb[97].mxu0 }
 0x42e   :  { %v11044_v63 = vadd.f32 %v11043_v62, %v11042_v34  ;;  %v11045_v0 = vpop.f32.mrb[98].mxu0 }
 0x42f   :  { %v11046_v1 = vpop.f32.mrb[99].mxu0 }
 0x430   :  { %v9027_v2 = vadd.f32 %v11044_v63, %v8987_v61 }
 0x432   :  { %v9032_v3 = vmax.f32 %v9027_v2, 0.0 }
 0x434   :  { %v9033_v4 = vpack.c.bf16 %v9032_v3, %v9032_v3 }
 0x436   :  { %11074 = vmatmul.mubr.bf16.vlgmr.msra.gmra.mrb[96].mxu1 %v9033_v4 }
 0x509   :  { %v9139_v6 = vpop.f32.mrb[96].mxu1 }
 0x50a   :  { %v9140_v7 = vadd.f32 %v9961_v5, %v9139_v6  ;;  %v11075_v8 = vpop.f32.mrb[97].mxu1 }
 0x50b   :  { %v9142_v9 = vpop.f32.mrb[98].mxu1 }
 0x50c   :  { %v11076_v10 = vpop.f32.mrb[99].mxu1  ;;  %v9146_v11 = vsel %vm9145_vm1, %v9140_v7, -inf }
 0x50d   :  { %9147 = vmax.xlane.f32.xlu0 %v9146_v11 }
 0x59a   :  { %v9148_v12 = vpop.xlane.xlu0 %9147 }
 0x59b   :  { %v9149_v13 = vsub.f32 %v9140_v7, %v9148_v12 }
 0x59d   :  { %v9150_v14 = vmul.f32 1.442695, %v9149_v13 }
 0x59f   :  { %11890 = vpow2.f32 %v9150_v14 }
 0x5a9   :  { %v11891_v15 = vpop.eup %11890 }
 0x5aa   :  { %v9152_v16 = vsel %vm9145_vm1, %v11891_v15, 0.0 }
 0x5ab   :  { %9153 = vadd.xlane.f32.xlu0 %v9152_v16 }
 0x638   :  { %v9154_v17 = vpop.xlane.xlu0 %9153 }
 0x639   :  { %11892 = vlog2.f32 %v9154_v17 }
 0x643   :  { %v11893_v18 = vpop.eup %11892 }
 0x644   :  { %v9156_v19 = vmul.f32 0.6931472, %v11893_v18 }
 0x646   :  { %v9157_v20 = vsub.f32 %v9149_v13, %v9156_v19 }
 0x648   :  { %9158 = vst.msk [vmem:[#allocation8] sm:$0x3] %vm9145_vm1, %v9157_v20 }
 0x649   :  { %11971 = shalt.err (!%p11968_p0)
}
 0x64a   :  { %s11972_s22 = scalar_lea.hbm %s12337_s5, 32 }
 0x64b   :  { %p11973_p1 = scmp.ne.s32.totalorder %s12337_s5, %s11972_s22  ;;  %p11976_p2 = scmp.lt.u32.totalorder %s11972_s22, %s12337_s5 }
 0x64d   :  { %p11978_p3 = pnand %p11976_p2, %p11973_p1 }
 0x64f   :  { %11981 = shalt.err (!%p11978_p3)
}
 0x650   :  { %9168 = dma.vmem_to_hbm [thread:$0]  %s9166_s17, 32, %s12337_s5, [#allocation4]  }
 0x651   :  { %11986 = dma.done.wait [#allocation4], 32  }
 0x652   :  { %11987 = vsyncadd [#allocation4], 4294967264 }
 0x653   :  { %9172 = vsyncpa [#allocation3], 1 }
 0x654   :  { %9173 = vsyncpa [#allocation6], 1 }
 0x655   :  { %9174 = vsyncpa [#allocation4], 1 }

</bundles_post_ra>
